<compile_context>
chip_gen: v6e
topology: v6e:2x2x1
jax: 0.10.0
libtpu: 0.0.40
codegen_flags: <defaults>
</compile_context>

<pallas_src>
import functools
import math

import numpy as np
import jax
import jax.numpy as jnp
from jax.experimental import pallas as pl
from jax.experimental.pallas import tpu as pltpu

# ---------------- HarmonicSTFT default hyper-parameters ----------------
SAMPLE_RATE = 16000
N_FFT = 513
HOP = N_FFT // 2                 # torchaudio default: hop = win_length // 2 = 256
N_FREQ = N_FFT // 2 + 1          # 257 one-sided bins
N_HARMONIC = 6
SEMITONE_SCALE = 2
BW_ALPHA = 0.1079
BW_BETA = 24.7
# TODO(synk): with the module default learn_bw=None, self.bw_Q is never created and the PyTorch
#             forward would raise; we use bw_Q=1.0 (the constructor default, as with learn_bw='fix').
BW_Q = 1.0
AMIN = 1e-10                     # AmplitudeToDB(stype='power', top_db=None): 10*log10(clamp(x,1e-10))
LN10 = float(np.log(10.0))

# filterbank geometry (initialize_filterbank, librosa-free):
_LOW_MIDI = 24                                                                  # note_to_midi('C1')
_HIGH_MIDI = int(round(12.0 * math.log2((SAMPLE_RATE / (2 * N_HARMONIC)) / 440.0) + 69.0))  # 88
LEVEL = (_HIGH_MIDI - _LOW_MIDI) * SEMITONE_SCALE                               # 128
N_FILT = N_HARMONIC * LEVEL                                                     # 768


# ---------------- constant construction (parameter preprocessing, host-side) ----------------
def _f0_hz():
    midi = np.linspace(_LOW_MIDI, _HIGH_MIDI, LEVEL + 1)
    hz = 440.0 * 2.0 ** ((midi[:-1] - 69.0) / 12.0)
    return np.concatenate([hz * (i + 1) for i in range(N_HARMONIC)])            # (N_FILT,)


def build_filterbank(bw_q=BW_Q):
    """Triangular harmonic filterbank fb[freq_bin, harmonic*level] == get_harmonic_fb()."""
    f0 = _f0_hz()
    bw = (BW_ALPHA * f0 + BW_BETA) / bw_q
    fft_bins = np.linspace(0.0, SAMPLE_RATE // 2, N_FREQ)
    up = fft_bins[:, None] * (2.0 / bw)[None, :] + 1.0 - 2.0 * f0 / bw
    down = fft_bins[:, None] * (-2.0 / bw)[None, :] + 1.0 + 2.0 * f0 / bw
    return np.maximum(0.0, np.minimum(down, up)).astype(np.float32)             # (N_FREQ, N_FILT)


def dft_constants():
    """Transposed one-sided DFT basis (n_freq, n_fft) and periodic Hann window (float64)."""
    k = np.arange(N_FREQ)
    n = np.arange(N_FFT)
    ang = 2.0 * np.pi * ((np.outer(k, n) % N_FFT).astype(np.float64) / N_FFT)
    cos_t = np.cos(ang)
    sin_t = -np.sin(ang)
    window = 0.5 - 0.5 * np.cos(2.0 * np.pi * np.arange(N_FFT) / N_FFT)         # torch.hann_window
    return cos_t, sin_t, window


def num_frames(length):
    return 1 + (length + 2 * (N_FFT // 2) - N_FFT) // HOP                       # center=True STFT


# ---------------- fused Pallas kernel: DFT -> power -> filterbank -> dB ----------------
def _hstft_kernel(frames_ref, cos_ref, sin_ref, fb_ref, o_ref):
    f = frames_ref[...]                                                         # (n_fft, TT) bf16
    re = jnp.dot(cos_ref[...], f, preferred_element_type=jnp.float32)           # (n_freq, TT) f32
    im = jnp.dot(sin_ref[...], f, preferred_element_type=jnp.float32)
    power = re * re + im * im                                                   # |STFT|^2 (power=2)
    hs = jnp.dot(fb_ref[...], power.astype(jnp.bfloat16),
                 preferred_element_type=jnp.float32)                            # (n_filt, TT) f32
    o_ref[...] = (10.0 / LN10) * jnp.log(jnp.maximum(hs, AMIN))                 # AmplitudeToDB


# ---------------- glue: framing + windowing (time-major so time sits on the lane dim) ----------
def prepare_frames(waveform, window_f32, tile_t):
    """Reflect-centered framing + Hann window -> (B, n_fft, T_pad) bf16, plus true frame count."""
    pad = N_FFT // 2
    length = waveform.shape[-1]
    t = num_frames(length)
    t_pad = pl.cdiv(t, tile_t) * tile_t
    xp = jnp.pad(waveform, ((0, 0), (pad, pad)), mode="reflect")
    idx = jnp.arange(t)[None, :] * HOP + jnp.arange(N_FFT)[:, None]             # (n_fft, T)
    frames = xp[:, idx] * window_f32[None, :, None]                             # (B, n_fft, T) f32
    if t_pad != t:
        frames = jnp.pad(frames, ((0, 0), (0, 0), (0, t_pad - t)))
    return frames.astype(jnp.bfloat16), t


def harmonic_stft_forward(waveform, cos_bf, sin_bf, fb_bf, window_f32, *, tile_t=128):
    """HarmonicSTFT.forward: waveform (B, L) -> dB harmonic spec (B, n_harmonic, level, T)."""
    b = waveform.shape[0]
    frames_bf, t = prepare_frames(waveform, window_f32, tile_t)
    t_pad = frames_bf.shape[-1]

    out = pl.pallas_call(
        _hstft_kernel,
        out_shape=jax.ShapeDtypeStruct((b, N_FILT, t_pad), jnp.float32),
        grid=(b, t_pad // tile_t),
        in_specs=[
            pl.BlockSpec((None, N_FFT, tile_t), lambda i, j: (i, 0, j)),        # frames tile
            pl.BlockSpec((N_FREQ, N_FFT), lambda i, j: (0, 0)),                 # DFT cos (resident)
            pl.BlockSpec((N_FREQ, N_FFT), lambda i, j: (0, 0)),                 # DFT sin (resident)
            pl.BlockSpec((N_FILT, N_FREQ), lambda i, j: (0, 0)),                # filterbank (resident)
        ],
        out_specs=pl.BlockSpec((None, N_FILT, tile_t), lambda i, j: (i, 0, j)), # lane-dense stores
        compiler_params=pltpu.CompilerParams(
            dimension_semantics=("parallel", "parallel")),                      # megacore / v7x
    )(frames_bf, cos_bf, sin_bf, fb_bf)

    out = out[:, :, :t]                                                         # drop frame padding
    return out.reshape(b, N_HARMONIC, LEVEL, t)                                 # (B, 6, level, T)


# ---------------- references for the self-check ----------------
def _to_f64_via_bf16(a):
    """Round to bfloat16 (as the kernel operands are) and return float64 numpy."""
    return np.asarray(jnp.asarray(a).astype(jnp.bfloat16).astype(jnp.float32), dtype=np.float64)


def reference_matched(waveform, cos_bf, sin_bf, fb_bf, window_f32, tile_t):
    """float64 reference using the SAME bf16-rounded operands as the kernel; checks the Pallas
    grid / BlockSpec / matmul / dB plumbing to ~1e-2 dB."""
    frames_bf, t = prepare_frames(waveform, window_f32, tile_t)
    f = np.asarray(frames_bf.astype(jnp.float32), dtype=np.float64)             # (B, n_fft, T_pad)
    cos64 = np.asarray(cos_bf.astype(jnp.float32), dtype=np.float64)
    sin64 = np.asarray(sin_bf.astype(jnp.float32), dtype=np.float64)
    fb64 = np.asarray(fb_bf.astype(jnp.float32), dtype=np.float64)
    re = np.einsum("fn,bnt->bft", cos64, f)
    im = np.einsum("fn,bnt->bft", sin64, f)
    power = _to_f64_via_bf16((re * re + im * im).astype(np.float32))            # kernel casts to bf16
    hs = np.einsum("pf,bft->bpt", fb64, power)
    db = 10.0 * np.log10(np.maximum(hs, AMIN))[:, :, :t]
    return db.reshape(db.shape[0], N_HARMONIC, LEVEL, t)


def reference_full(waveform_np, fb_np):
    """Full-precision (float64, exact rfft) reference of the PyTorch forward."""
    b, length = waveform_np.shape
    pad = N_FFT // 2
    t = num_frames(length)
    _, _, window = dft_constants()
    xp = np.pad(waveform_np.astype(np.float64), ((0, 0), (pad, pad)), mode="reflect")
    idx = np.arange(t)[:, None] * HOP + np.arange(N_FFT)[None, :]
    frames = xp[:, idx] * window[None, None, :]                                 # (B, T, n_fft)
    spec = np.abs(np.fft.rfft(frames, n=N_FFT, axis=-1)) ** 2                   # (B, T, n_freq)
    hs = spec @ fb_np.astype(np.float64)                                        # (B, T, n_filt)
    db = 10.0 * np.log10(np.maximum(hs, AMIN))
    return np.transpose(db, (0, 2, 1)).reshape(b, N_HARMONIC, LEVEL, t)


# ---------------- demo / self-check ----------------
if __name__ == "__main__":
    B, L = 2, 65536              # 2 clips x 4 s of 16 kHz audio -> 256 STFT frames per clip
    TILE_T = 128                 # 128 frames per tile (use 256-512 for long audio on v6e/v7x)

    key = jax.random.PRNGKey(0)
    waveform = jax.random.normal(key, (B, L), jnp.float32)

    fb_np = build_filterbank(BW_Q)                                              # (257, 768) f32
    cos_t, sin_t, window = dft_constants()
    cos_bf = jnp.asarray(cos_t, jnp.bfloat16)                                   # (257, 513)
    sin_bf = jnp.asarray(sin_t, jnp.bfloat16)                                   # (257, 513)
    fb_bf = jnp.asarray(fb_np.T, jnp.bfloat16)                                  # (768, 257)
    window_f32 = jnp.asarray(window, jnp.float32)                               # (513,)

    forward = jax.jit(functools.partial(harmonic_stft_forward, tile_t=TILE_T))
    out = jax.block_until_ready(forward(waveform, cos_bf, sin_bf, fb_bf, window_f32))

    T = num_frames(L)
    assert out.shape == (B, N_HARMONIC, LEVEL, T), out.shape
    out_np = np.asarray(out)

    # 1) Tight check against a float64 reference built from the same bf16-rounded operands:
    #    validates the Pallas tiling / DMA / matmul / dB epilogue exactly.
    ref_m = reference_matched(waveform, cos_bf, sin_bf, fb_bf, window_f32, TILE_T)
    err_m = float(np.max(np.abs(out_np - ref_m)))
    assert err_m < 1e-1, ("matched-precision mismatch", err_m)

    # 2) Sanity check against the exact full-precision forward. Individual near-silent DFT bins
    #    can shift by ~1 dB under bf16 MXU operand rounding, so bound the mean deviation.
    ref_f = reference_full(np.asarray(waveform, dtype=np.float64), fb_np)
    mean_err = float(np.mean(np.abs(out_np - ref_f)))
    assert mean_err < 0.1, ("mean dB deviation vs full-precision reference", mean_err)

    print("KERNEL_OK")
</pallas_src>

<mosaic_0001>
module attributes {stable_mosaic.version = 11 : i64} {
  func.func @_hstft_kernel(%arg0: i32, %arg1: i32, %arg2: memref<1x513x128xbf16, #tpu.memory_space<vmem>>, %arg3: memref<257x513xbf16, #tpu.memory_space<vmem>>, %arg4: memref<257x513xbf16, #tpu.memory_space<vmem>>, %arg5: memref<768x257xbf16, #tpu.memory_space<vmem>>, %arg6: memref<1x768x128xf32, #tpu.memory_space<vmem>>) attributes {dimension_semantics = [#tpu.dimension_semantics<parallel>, #tpu.dimension_semantics<parallel>], iteration_bounds = array<i64: 2, 2>, scalar_prefetch = 0 : i64, scratch_operands = 0 : i64, tpu.core_type = #tpu.core_type<tc>, window_params = [{transform_indices = @transform_0, window_bounds = array<i64: 1, 513, 128>}, {pipeline_mode = #tpu.pipeline_mode<synchronous>, transform_indices = @transform_1, window_bounds = array<i64: 257, 513>}, {pipeline_mode = #tpu.pipeline_mode<synchronous>, transform_indices = @transform_2, window_bounds = array<i64: 257, 513>}, {pipeline_mode = #tpu.pipeline_mode<synchronous>, transform_indices = @transform_3, window_bounds = array<i64: 768, 257>}, {transform_indices = @transform_4, window_bounds = array<i64: 1, 768, 128>}]} {
    %c0 = arith.constant 0 : index
    %c0_0 = arith.constant 0 : index
    %c0_1 = arith.constant 0 : index
    %0 = vector.load %arg2[%c0, %c0_0, %c0_1] : memref<1x513x128xbf16, #tpu.memory_space<vmem>>, vector<1x513x128xbf16>
    %1 = vector.shape_cast %0 : vector<1x513x128xbf16> to vector<513x128xbf16>
    %c0_2 = arith.constant 0 : index
    %c0_3 = arith.constant 0 : index
    %2 = vector.load %arg3[%c0_2, %c0_3] : memref<257x513xbf16, #tpu.memory_space<vmem>>, vector<257x513xbf16>
    %cst = arith.constant dense<0.000000e+00> : vector<257x128xf32>
    %3 = tpu.matmul %2, %1, %cst {dimension_numbers = #tpu.dot_dimension_numbers<[1], [0], [0], [1], [0, 0, 1, 1], [], []>} : vector<257x513xbf16>, vector<513x128xbf16>, vector<257x128xf32> -> vector<257x128xf32>
    %c0_4 = arith.constant 0 : index
    %c0_5 = arith.constant 0 : index
    %4 = vector.load %arg4[%c0_4, %c0_5] : memref<257x513xbf16, #tpu.memory_space<vmem>>, vector<257x513xbf16>
    %cst_6 = arith.constant dense<0.000000e+00> : vector<257x128xf32>
    %5 = tpu.matmul %4, %1, %cst_6 {dimension_numbers = #tpu.dot_dimension_numbers<[1], [0], [0], [1], [0, 0, 1, 1], [], []>} : vector<257x513xbf16>, vector<513x128xbf16>, vector<257x128xf32> -> vector<257x128xf32>
    %6 = arith.mulf %3, %3 : vector<257x128xf32>
    %7 = arith.mulf %5, %5 : vector<257x128xf32>
    %8 = arith.addf %6, %7 : vector<257x128xf32>
    %c0_7 = arith.constant 0 : index
    %c0_8 = arith.constant 0 : index
    %9 = vector.load %arg5[%c0_7, %c0_8] : memref<768x257xbf16, #tpu.memory_space<vmem>>, vector<768x257xbf16>
    %10 = arith.truncf %8 : vector<257x128xf32> to vector<257x128xbf16>
    %cst_9 = arith.constant dense<0.000000e+00> : vector<768x128xf32>
    %11 = tpu.matmul %9, %10, %cst_9 {dimension_numbers = #tpu.dot_dimension_numbers<[1], [0], [0], [1], [0, 0, 1, 1], [], []>} : vector<768x257xbf16>, vector<257x128xbf16>, vector<768x128xf32> -> vector<768x128xf32>
    %cst_10 = arith.constant 1.000000e-10 : f32
    %12 = vector.broadcast %cst_10 : f32 to vector<768x128xf32>
    %13 = arith.maximumf %11, %12 : vector<768x128xf32>
    %14 = math.log %13 : vector<768x128xf32>
    %cst_11 = arith.constant 4.34294462 : f32
    %15 = vector.broadcast %cst_11 : f32 to vector<768x128xf32>
    %16 = arith.mulf %15, %14 : vector<768x128xf32>
    %c0_12 = arith.constant 0 : index
    %c0_13 = arith.constant 0 : index
    %c0_14 = arith.constant 0 : index
    %17 = vector.load %arg6[%c0_12, %c0_13, %c0_14] : memref<1x768x128xf32, #tpu.memory_space<vmem>>, vector<1x768x128xf32>
    %18 = vector.shape_cast %17 : vector<1x768x128xf32> to vector<768x128xf32>
    %19 = vector.shape_cast %16 : vector<768x128xf32> to vector<1x768x128xf32>
    tpu.vector_store %arg6[%c0_12, %c0_13, %c0_14], %19 {strides = array<i32>} : memref<1x768x128xf32, #tpu.memory_space<vmem>>, vector<1x768x128xf32>,
    return
  }
  func.func @transform_0(%arg0: i32, %arg1: i32) -> (i32, i32, i32) {
    %c0_i32 = arith.constant 0 : i32
    %c0_i32_0 = arith.constant 0 : i32
    return %arg0, %c0_i32, %arg1 : i32, i32, i32
  }
  func.func @transform_1(%arg0: i32, %arg1: i32) -> (i32, i32) {
    %c0_i32 = arith.constant 0 : i32
    %c0_i32_0 = arith.constant 0 : i32
    %c0_i32_1 = arith.constant 0 : i32
    return %c0_i32, %c0_i32_0 : i32, i32
  }
  func.func @transform_2(%arg0: i32, %arg1: i32) -> (i32, i32) {
    %c0_i32 = arith.constant 0 : i32
    %c0_i32_0 = arith.constant 0 : i32
    %c0_i32_1 = arith.constant 0 : i32
    return %c0_i32, %c0_i32_0 : i32, i32
  }
  func.func @transform_3(%arg0: i32, %arg1: i32) -> (i32, i32) {
    %c0_i32 = arith.constant 0 : i32
    %c0_i32_0 = arith.constant 0 : i32
    %c0_i32_1 = arith.constant 0 : i32
    return %c0_i32, %c0_i32_0 : i32, i32
  }
  func.func @transform_4(%arg0: i32, %arg1: i32) -> (i32, i32, i32) {
    %c0_i32 = arith.constant 0 : i32
    %c0_i32_0 = arith.constant 0 : i32
    return %arg0, %c0_i32, %arg1 : i32, i32, i32
  }
}

</mosaic_0001>

<bundles_post_ra>
// kernel: harmonic_stft_forward.1
= control target key start
LH: loop header
LB: loop body
LE: loop exit
PB: predicated region body
PF: predicated region fallthrough
CT: control target
= control target key end

     0   :  { %9 = vsyncpa [#allocation4], 0  ;;  %s9460_s0 = inlined_call_operand.vmem [shape: bf16[2,513,256], index: 0, kind: input, shape index: {}]   ;;  %s9461_s1 = inlined_call_operand.vmem [shape: bf16[257,513], index: 1, kind: input, shape index: {}]   ;;  %s9462_s2 = inlined_call_operand.vmem [shape: bf16[257,513], index: 2, kind: input, shape index: {}]   ;;  %s9463_s3 = inlined_call_operand.vmem [shape: bf16[768,257], index: 3, kind: input, shape index: {}]   ;;  %s9464_s4 = inlined_call_operand.hbm [shape: f32[2,768,256], index: 4, kind: output, shape index: {}]  }
   0x1   :  { %11 = vsyncpa [#allocation4 + $0x1], 0  ;;  %s7178_s15 = smov 0   ;;  %s7180_s16 = smov 0  }
   0x2   :  { %s7182_s17 = smov 0   ;;  %s7184_s18 = smov 0  }
   0x3   :  { %s7186_s19 = smov 0   ;;  %s7188_s20 = smov 0  }
   0x4   :  { %s7190_s21 = smov 0   ;;  %s7192_s22 = smov 0  }
   0x5 LB: > { %s5510_s23 = sadd.s32 4294967295, %s7144_s22   ;;  %s5511_s24 = sadd.s32 4294967294, %s7144_s22   ;;  %s7144_s22 = sphi %s7192_s22, %s17_s22   ;;  %s7140_s21 = sphi %s7190_s21, %s9519_s21   ;;  %s7136_s20 = sphi %s7188_s20, %s9518_s20   ;;  %s7132_s19 = sphi %s7186_s19, %s9517_s19   ;;  %s7128_s18 = sphi %s7184_s18, %s9516_s18   ;;  %s7124_s17 = sphi %s7182_s17, %s9515_s17   ;;  %s7120_s16 = sphi %s7180_s16, %s9514_s16   ;;  %s7116_s15 = sphi %s7178_s15, %s9513_s15  }
   0x6   : > { %s26_s25 = sadd.s32 1, %s7136_s20  ;;  %s29_s26 = sadd.s32 1, %s7140_s21 }
   0x7   : > { %p27_p0 = scmp.ge.s32.totalorder %s26_s25, 2  ;;  %p45_p1 = scmp.ne.s32.totalorder %s7124_s17, %s7120_s16 }
   0x8   : > { %p46_p2 = scmp.eq.s32.totalorder %s7144_s22, 0  ;;  %p140_p5 = scmp.eq.s32.totalorder %s5510_s23, 3 }
   0x9   : > { %s9521_s25 = smov (%p27_p0, %s26_s25), 0  ;;  %s9523_s26 = smov (!%p27_p0, %s29_s26), %s7140_s21 }
   0xa   : > { %s34_s27 = ssub.s32 %s7136_s20, %s9521_s25  ;;  %p7230_p3 = por %p46_p2, %p45_p1 }
   0xb   : > { %p31_p4 = scmp.ge.s32.totalorder %s9523_s26, 2  ;;  %p145_p6 = scmp.ne.s32.totalorder %s7120_s16, %s7116_s15 }
   0xc   : > { %p146_p7 = scmp.eq.s32.totalorder %s5511_s24, 3  ;;  %p7238_p8 = por %p140_p5, %p45_p1 }
   0xd   : > { %s9525_s26 = smov (%p31_p4, %s9523_s26), 0  ;;  %s38_s7 = sadd.s32 1, %s7124_s17 }
   0xe   : > { %p7242_p9 = por %p146_p7, %p145_p6  ;;  %s33_s5 = ssub.s32 %s7140_s21, %s9525_s26 }
   0xf   : > { %s35_s6 = sor.u32 %s34_s27, %s33_s5  ;;  %p5513_p11 = scmp.ge.s32.totalorder %s7144_s22, 4 }
  0x10   : > { %p36_p10 = scmp.eq.s32.totalorder %s35_s6, 0 }
  0x11   : > { %171 = sbr.rel (%p5513_p11) target bundleno = 72 (0x48), region = 28 }
  0x12   : > { %s7250_s8 = scalar_select %p36_p10, %s7124_s17, %s38_s7  }
  0x16   : > { %174 = sbr.rel (!%p7230_p3) target bundleno = 72 (0x48), region = 32  ;;  %s176_s9 = sand.u32 (%p7230_p3), 1, %s7124_s17  }
  0x17   : > { %s6304_s10 = smul.u32 (%p7230_p3), 130, %s7140_s21 }
  0x18   : > { %s6303_s11 = smul.u32 (%p7230_p3), 260, %s176_s9 }
  0x19   : > { %s180_s12 = sadd.s32 (%p7230_p3), %s7136_s20, %s6304_s10 }
  0x1a   : > { %s5514_s13 = sshll.u32 (%p7230_p3), %s180_s12, 2  ;;  %s7266_s27 = scalar_lea.vmem (%p7230_p3), [#allocation2], %s6303_s11 }
  0x1b   : > { %s7261_s24 = scalar_lea.vmem %s9460_s0, %s5514_s13 }
  0x1c   : > { %v199_v0 = vld [vmem:[%s7261_s24] sm:$0xf]  ;;  %v201_v1 = vld [vmem:[%s7261_s24 + $0x8] sm:$0xf]  ;;  %v203_v2 = vld [vmem:[%s7261_s24 + $0x10] sm:$0xf] }
  0x1d   : > { %200 = vst [vmem:[%s7266_s27] sm:$0xf] %v199_v0  ;;  %202 = vst [vmem:[%s7266_s27 + $0x4] sm:$0xf] %v201_v1  ;;  %v205_v3 = vld [vmem:[%s7261_s24 + $0x18] sm:$0xf] }
  0x1e   : > { %204 = vst [vmem:[%s7266_s27 + $0x8] sm:$0xf] %v203_v2  ;;  %v207_v4 = vld [vmem:[%s7261_s24 + $0x20] sm:$0xf]  ;;  %v209_v5 = vld [vmem:[%s7261_s24 + $0x28] sm:$0xf] }
  0x1f   : > { %206 = vst [vmem:[%s7266_s27 + $0xc] sm:$0xf] %v205_v3  ;;  %208 = vst [vmem:[%s7266_s27 + $0x10] sm:$0xf] %v207_v4  ;;  %v211_v6 = vld [vmem:[%s7261_s24 + $0x30] sm:$0xf] }
  0x20   : > { %210 = vst [vmem:[%s7266_s27 + $0x14] sm:$0xf] %v209_v5  ;;  %v213_v7 = vld [vmem:[%s7261_s24 + $0x38] sm:$0xf]  ;;  %v215_v8 = vld [vmem:[%s7261_s24 + $0x40] sm:$0xf] }
  0x21   : > { %212 = vst [vmem:[%s7266_s27 + $0x18] sm:$0xf] %v211_v6  ;;  %214 = vst [vmem:[%s7266_s27 + $0x1c] sm:$0xf] %v213_v7  ;;  %v217_v9 = vld [vmem:[%s7261_s24 + $0x48] sm:$0xf] }
  0x22   : > { %216 = vst [vmem:[%s7266_s27 + $0x20] sm:$0xf] %v215_v8  ;;  %v219_v10 = vld [vmem:[%s7261_s24 + $0x50] sm:$0xf]  ;;  %v221_v11 = vld [vmem:[%s7261_s24 + $0x58] sm:$0xf] }
  0x23   : > { %218 = vst [vmem:[%s7266_s27 + $0x24] sm:$0xf] %v217_v9  ;;  %220 = vst [vmem:[%s7266_s27 + $0x28] sm:$0xf] %v219_v10  ;;  %v223_v12 = vld [vmem:[%s7261_s24 + $0x60] sm:$0xf] }
  0x24   : > { %222 = vst [vmem:[%s7266_s27 + $0x2c] sm:$0xf] %v221_v11  ;;  %v225_v13 = vld [vmem:[%s7261_s24 + $0x68] sm:$0xf]  ;;  %v227_v14 = vld [vmem:[%s7261_s24 + $0x70] sm:$0xf] }
  0x25   : > { %224 = vst [vmem:[%s7266_s27 + $0x30] sm:$0xf] %v223_v12  ;;  %226 = vst [vmem:[%s7266_s27 + $0x34] sm:$0xf] %v225_v13  ;;  %v229_v15 = vld [vmem:[%s7261_s24 + $0x78] sm:$0xf] }
  0x26   : > { %228 = vst [vmem:[%s7266_s27 + $0x38] sm:$0xf] %v227_v14  ;;  %v231_v16 = vld [vmem:[%s7261_s24 + $0x80] sm:$0xf]  ;;  %v233_v17 = vld [vmem:[%s7261_s24 + $0x88] sm:$0xf] }
  0x27   : > { %230 = vst [vmem:[%s7266_s27 + $0x3c] sm:$0xf] %v229_v15  ;;  %232 = vst [vmem:[%s7266_s27 + $0x40] sm:$0xf] %v231_v16  ;;  %v235_v18 = vld [vmem:[%s7261_s24 + $0x90] sm:$0xf] }
  0x28   : > { %234 = vst [vmem:[%s7266_s27 + $0x44] sm:$0xf] %v233_v17  ;;  %v237_v19 = vld [vmem:[%s7261_s24 + $0x98] sm:$0xf]  ;;  %v239_v20 = vld [vmem:[%s7261_s24 + $0xa0] sm:$0xf] }
  0x29   : > { %236 = vst [vmem:[%s7266_s27 + $0x48] sm:$0xf] %v235_v18  ;;  %238 = vst [vmem:[%s7266_s27 + $0x4c] sm:$0xf] %v237_v19  ;;  %v241_v21 = vld [vmem:[%s7261_s24 + $0xa8] sm:$0xf] }
  0x2a   : > { %240 = vst [vmem:[%s7266_s27 + $0x50] sm:$0xf] %v239_v20  ;;  %v243_v22 = vld [vmem:[%s7261_s24 + $0xb0] sm:$0xf]  ;;  %v245_v23 = vld [vmem:[%s7261_s24 + $0xb8] sm:$0xf] }
  0x2b   : > { %242 = vst [vmem:[%s7266_s27 + $0x54] sm:$0xf] %v241_v21  ;;  %244 = vst [vmem:[%s7266_s27 + $0x58] sm:$0xf] %v243_v22  ;;  %v247_v24 = vld [vmem:[%s7261_s24 + $0xc0] sm:$0xf] }
  0x2c   : > { %246 = vst [vmem:[%s7266_s27 + $0x5c] sm:$0xf] %v245_v23  ;;  %v249_v25 = vld [vmem:[%s7261_s24 + $0xc8] sm:$0xf]  ;;  %v251_v26 = vld [vmem:[%s7261_s24 + $0xd0] sm:$0xf] }
  0x2d   : > { %248 = vst [vmem:[%s7266_s27 + $0x60] sm:$0xf] %v247_v24  ;;  %250 = vst [vmem:[%s7266_s27 + $0x64] sm:$0xf] %v249_v25  ;;  %v253_v27 = vld [vmem:[%s7261_s24 + $0xd8] sm:$0xf] }
  0x2e   : > { %252 = vst [vmem:[%s7266_s27 + $0x68] sm:$0xf] %v251_v26  ;;  %v255_v28 = vld [vmem:[%s7261_s24 + $0xe0] sm:$0xf]  ;;  %v257_v29 = vld [vmem:[%s7261_s24 + $0xe8] sm:$0xf] }
  0x2f   : > { %254 = vst [vmem:[%s7266_s27 + $0x6c] sm:$0xf] %v253_v27  ;;  %256 = vst [vmem:[%s7266_s27 + $0x70] sm:$0xf] %v255_v28  ;;  %v259_v30 = vld [vmem:[%s7261_s24 + $0xf0] sm:$0xf] }
  0x30   : > { %258 = vst [vmem:[%s7266_s27 + $0x74] sm:$0xf] %v257_v29  ;;  %v261_v31 = vld [vmem:[%s7261_s24 + $0xf8] sm:$0xf]  ;;  %v263_v32 = vld [vmem:[%s7261_s24 + $0x100] sm:$0xf] }
  0x31   : > { %260 = vst [vmem:[%s7266_s27 + $0x78] sm:$0xf] %v259_v30  ;;  %262 = vst [vmem:[%s7266_s27 + $0x7c] sm:$0xf] %v261_v31  ;;  %v265_v33 = vld [vmem:[%s7261_s24 + $0x108] sm:$0xf] }
  0x32   : > { %264 = vst [vmem:[%s7266_s27 + $0x80] sm:$0xf] %v263_v32  ;;  %v267_v34 = vld [vmem:[%s7261_s24 + $0x110] sm:$0xf]  ;;  %v269_v35 = vld [vmem:[%s7261_s24 + $0x118] sm:$0xf] }
  0x33   : > { %266 = vst [vmem:[%s7266_s27 + $0x84] sm:$0xf] %v265_v33  ;;  %268 = vst [vmem:[%s7266_s27 + $0x88] sm:$0xf] %v267_v34  ;;  %v271_v36 = vld [vmem:[%s7261_s24 + $0x120] sm:$0xf] }
  0x34   : > { %270 = vst [vmem:[%s7266_s27 + $0x8c] sm:$0xf] %v269_v35  ;;  %v273_v37 = vld [vmem:[%s7261_s24 + $0x128] sm:$0xf]  ;;  %v275_v38 = vld [vmem:[%s7261_s24 + $0x130] sm:$0xf] }
  0x35   : > { %272 = vst [vmem:[%s7266_s27 + $0x90] sm:$0xf] %v271_v36  ;;  %274 = vst [vmem:[%s7266_s27 + $0x94] sm:$0xf] %v273_v37  ;;  %v277_v39 = vld [vmem:[%s7261_s24 + $0x138] sm:$0xf] }
  0x36   : > { %276 = vst [vmem:[%s7266_s27 + $0x98] sm:$0xf] %v275_v38  ;;  %v279_v40 = vld [vmem:[%s7261_s24 + $0x140] sm:$0xf]  ;;  %v281_v41 = vld [vmem:[%s7261_s24 + $0x148] sm:$0xf] }
  0x37   : > { %278 = vst [vmem:[%s7266_s27 + $0x9c] sm:$0xf] %v277_v39  ;;  %280 = vst [vmem:[%s7266_s27 + $0xa0] sm:$0xf] %v279_v40  ;;  %v283_v42 = vld [vmem:[%s7261_s24 + $0x150] sm:$0xf] }
  0x38   : > { %282 = vst [vmem:[%s7266_s27 + $0xa4] sm:$0xf] %v281_v41  ;;  %v285_v43 = vld [vmem:[%s7261_s24 + $0x158] sm:$0xf]  ;;  %v287_v44 = vld [vmem:[%s7261_s24 + $0x160] sm:$0xf] }
  0x39   : > { %284 = vst [vmem:[%s7266_s27 + $0xa8] sm:$0xf] %v283_v42  ;;  %286 = vst [vmem:[%s7266_s27 + $0xac] sm:$0xf] %v285_v43  ;;  %v289_v45 = vld [vmem:[%s7261_s24 + $0x168] sm:$0xf] }
  0x3a   : > { %288 = vst [vmem:[%s7266_s27 + $0xb0] sm:$0xf] %v287_v44  ;;  %v291_v46 = vld [vmem:[%s7261_s24 + $0x170] sm:$0xf]  ;;  %v293_v47 = vld [vmem:[%s7261_s24 + $0x178] sm:$0xf] }
  0x3b   : > { %290 = vst [vmem:[%s7266_s27 + $0xb4] sm:$0xf] %v289_v45  ;;  %292 = vst [vmem:[%s7266_s27 + $0xb8] sm:$0xf] %v291_v46  ;;  %v295_v48 = vld [vmem:[%s7261_s24 + $0x180] sm:$0xf] }
  0x3c   : > { %294 = vst [vmem:[%s7266_s27 + $0xbc] sm:$0xf] %v293_v47  ;;  %v297_v49 = vld [vmem:[%s7261_s24 + $0x188] sm:$0xf]  ;;  %v299_v50 = vld [vmem:[%s7261_s24 + $0x190] sm:$0xf] }
  0x3d   : > { %296 = vst [vmem:[%s7266_s27 + $0xc0] sm:$0xf] %v295_v48  ;;  %298 = vst [vmem:[%s7266_s27 + $0xc4] sm:$0xf] %v297_v49  ;;  %v301_v51 = vld [vmem:[%s7261_s24 + $0x198] sm:$0xf] }
  0x3e   : > { %300 = vst [vmem:[%s7266_s27 + $0xc8] sm:$0xf] %v299_v50  ;;  %v303_v52 = vld [vmem:[%s7261_s24 + $0x1a0] sm:$0xf]  ;;  %v305_v53 = vld [vmem:[%s7261_s24 + $0x1a8] sm:$0xf] }
  0x3f   : > { %302 = vst [vmem:[%s7266_s27 + $0xcc] sm:$0xf] %v301_v51  ;;  %304 = vst [vmem:[%s7266_s27 + $0xd0] sm:$0xf] %v303_v52  ;;  %v307_v54 = vld [vmem:[%s7261_s24 + $0x1b0] sm:$0xf] }
  0x40   : > { %306 = vst [vmem:[%s7266_s27 + $0xd4] sm:$0xf] %v305_v53  ;;  %v309_v55 = vld [vmem:[%s7261_s24 + $0x1b8] sm:$0xf]  ;;  %v311_v56 = vld [vmem:[%s7261_s24 + $0x1c0] sm:$0xf] }
  0x41   : > { %308 = vst [vmem:[%s7266_s27 + $0xd8] sm:$0xf] %v307_v54  ;;  %310 = vst [vmem:[%s7266_s27 + $0xdc] sm:$0xf] %v309_v55  ;;  %v313_v57 = vld [vmem:[%s7261_s24 + $0x1c8] sm:$0xf] }
  0x42   : > { %312 = vst [vmem:[%s7266_s27 + $0xe0] sm:$0xf] %v311_v56  ;;  %v315_v58 = vld [vmem:[%s7261_s24 + $0x1d0] sm:$0xf]  ;;  %v317_v59 = vld [vmem:[%s7261_s24 + $0x1d8] sm:$0xf] }
  0x43   : > { %314 = vst [vmem:[%s7266_s27 + $0xe4] sm:$0xf] %v313_v57  ;;  %316 = vst [vmem:[%s7266_s27 + $0xe8] sm:$0xf] %v315_v58  ;;  %v319_v60 = vld [vmem:[%s7261_s24 + $0x1e0] sm:$0xf] }
  0x44   : > { %318 = vst [vmem:[%s7266_s27 + $0xec] sm:$0xf] %v317_v59  ;;  %v321_v61 = vld [vmem:[%s7261_s24 + $0x1e8] sm:$0xf]  ;;  %v323_v62 = vld [vmem:[%s7261_s24 + $0x1f0] sm:$0xf] }
  0x45   : > { %320 = vst [vmem:[%s7266_s27 + $0xf0] sm:$0xf] %v319_v60  ;;  %322 = vst [vmem:[%s7266_s27 + $0xf4] sm:$0xf] %v321_v61  ;;  %v325_v63 = vld [vmem:[%s7261_s24 + $0x1f8] sm:$0xf] }
  0x46   : > { %324 = vst [vmem:[%s7266_s27 + $0xf8] sm:$0xf] %v323_v62  ;;  %v327_v0 = vld [vmem:[%s7261_s24 + $0x200] sm:$0xf]  ;;  %326 = vst [vmem:[%s7266_s27 + $0xfc] sm:$0xf] %v325_v63 }
  0x47   : > { %328 = vst [vmem:[%s7266_s27 + $0x100] sm:$0xf] %v327_v0 }
  0x48 PF: > { %p5515_p12 = scmp.ge.s32.totalorder %s7144_s22, 1  ;;  %p481_p13 = scmp.lt.s32.totalorder %s7144_s22, 5 }
  0x4a   : > { %p482_p0 = pnand %p5515_p12, %p481_p13 }
  0x4c   : > { %485 = sbr.rel (%p482_p0) target bundleno = 1483 (0x5cb), region = 73 }
  0x51   : > { %s7398_s28 = sand.u32 1, %s7120_s16   ;;  %v9465_v1 = vmov 0   ;;  %v6403_v2 = vld [vmem:[%s9461_s1 + $0xcc] ss:$20 sps:$4 sm:$0xff]   ;;  %v6430_v11 = vld [vmem:[%s9461_s1 + $0x4] ss:$20 sps:$4 sm:$0xff]  }
  0x52   : > { %6271 = vmatprep.subr.bf16.mxu1 %v9465_v1  ;;  %s6305_s5 = smul.u32 260, %s7398_s28  ;;  %1348 = vmatprep.subr.bf16.mxu0 %v9465_v1  ;;  %vm1342_vm0 = vcmask 1040384   ;;  %v6401_v20 = vld [vmem:[%s9461_s1 + $0xc8] ss:$20 sps:$4 sm:$0xff]   ;;  %v6428_v23 = vld [vmem:[%s9461_s1] ss:$20 sps:$4 sm:$0xff]  }
  0x53   : > { %1420 = vmatprep.mubr.bf16.mxu1 %v6403_v2  ;;  %1380 = vmatprep.mubr.bf16.mxu0 %v6430_v11  ;;  %v6404_v21 = vld [vmem:[%s9461_s1 + $0xf4] ss:$20 sps:$4 sm:$0xff]   ;;  %v7471_v25 = vsel %vm1342_vm0, 65535, %v9465_v1  ;;  %v6436_v26 = vld [vmem:[%s9461_s1 + $0x2c] ss:$20 sps:$4 sm:$0xff]   ;;  %v9467_v27 = vmov 0.0  }
  0x54   : > { %s7406_s9 = scalar_lea.vmem [#allocation2], %s6305_s5  ;;  %9473 = vst [vmem:[#allocation6_spill] sm:$0xff] %v7471_v25  ;;  %v6406_v30 = vld [vmem:[%s9461_s1 + $0xf0] ss:$20 sps:$4 sm:$0xff]   ;;  %v6440_v31 = vld [vmem:[%s9461_s1 + $0x28] ss:$20 sps:$4 sm:$0xff]  }
  0x55   : > { %v6385_v3 = vld [vmem:[%s7406_s9 + $0x38] sm:$0xff]   ;;  %v6386_v4 = vld [vmem:[%s7406_s9 + $0x30] sm:$0xff]   ;;  %v6387_v5 = vld [vmem:[%s7406_s9 + $0x28] sm:$0xff]   ;;  %vm7148_vm1 = vmmov 0   ;;  %vm1290_vm2 = vcmask 7168   ;;  %s6306_s10 = smul.u32 768, %s7398_s28 }
  0x56   : > { %6287 = vmatpush1.bf16.msra.mxu1 %v6385_v3  ;;  %1349 = vmatpush1.bf16.msra.mxu0 %v6385_v3  ;;  %v6388_v6 = vld [vmem:[%s7406_s9 + $0x20] sm:$0xff]   ;;  %v6389_v7 = vld [vmem:[%s7406_s9 + $0x18] sm:$0xff]   ;;  %v6390_v8 = vld [vmem:[%s7406_s9 + $0x10] sm:$0xff]   ;;  %s6307_s13 = smul.u32 192, %s7132_s19  ;;  %s7149_s7 = smov [#allocation3]  }
  0x57   : > { %6272 = vmatprep.subr.bf16.mxu1 %v9465_v1  ;;  %1350 = vmatprep.subr.bf16.mxu0 %v9465_v1  ;;  %v6391_v9 = vld [vmem:[%s7406_s9 + $0x8] sm:$0xff]   ;;  %v6392_v10 = vld [vmem:[%s7406_s9] sm:$0xff]   ;;  %v6393_v12 = vld [vmem:[%s7406_s9 + $0x78] sm:$0xff]   ;;  %s9168_s23 = scalar_lea.vmem [#allocation3], %s6306_s10  ;;  %s7056_s10 = sshll.u32 %s7149_s7, 4  ;;  %s7057_s10 = int_to_ptr.vmem [resolvable:$false] %s7056_s10 }
  0x58   : > { %v6394_v13 = vld [vmem:[%s7406_s9 + $0x70] sm:$0xff]   ;;  %v6395_v14 = vld [vmem:[%s7406_s9 + $0x68] sm:$0xff]   ;;  %v6396_v15 = vld [vmem:[%s7406_s9 + $0x60] sm:$0xff]   ;;  %s5424_s14 = sadd.s32 %s7128_s18, %s6307_s13  ;;  %s5413_s18 = scalar_lea.sflag [#allocation4], %s7398_s28 }
  0x59   : > { %v6397_v16 = vld [vmem:[%s7406_s9 + $0x58] sm:$0xff]   ;;  %v6398_v17 = vld [vmem:[%s7406_s9 + $0x50] sm:$0xff]   ;;  %v6399_v18 = vld [vmem:[%s7406_s9 + $0x48] sm:$0xff]   ;;  %s5945_s24 = sshll.u32 %s5424_s14, 7  ;;  %s7058_s11 = scalar_lea.vmem %s7057_s10, 24576 }
  0x5a   : > { %6288 = vmatpush1.bf16.msra.mxu1 %v6386_v4  ;;  %1351 = vmatpush1.bf16.msra.mxu0 %v6386_v4  ;;  %v6400_v19 = vld [vmem:[%s7406_s9 + $0x40] sm:$0xff]   ;;  %v7464_v22 = vld [vmem:[%s7406_s9 + $0xb8] sm:$0xff]   ;;  %v7483_v29 = vld [vmem:[%s7406_s9 + $0xb0] sm:$0xff]   ;;  %s9404_s19 = scalar_lea.hbm %s9464_s4, %s5945_s24 }
  0x5b   : > { %6273 = vmatprep.subr.bf16.mxu1 %v9465_v1  ;;  %1352 = vmatprep.subr.bf16.mxu0 %v9465_v1  ;;  %v6467_v24 = vld [vmem:[%s7406_s9 + $0x100] ss:$0 sps:$4 sm:$0x11]   ;;  %v6407_v32 = vld [vmem:[%s9461_s1 + $0x11c] ss:$20 sps:$4 sm:$0xff]  }
  0x5c   : > { %v7479_v28 = vand.u32 %v6467_v24, %v7471_v25  ;;  %v7496_v33 = vld [vmem:[%s7406_s9 + $0xa8] sm:$0xff]   ;;  %v7507_v35 = vld [vmem:[%s7406_s9 + $0xa0] sm:$0xff]   ;;  %v7520_v39 = vld [vmem:[%s7406_s9 + $0x98] sm:$0xff]  }
  0x5d   : > { %v6444_v34 = vld [vmem:[%s9461_s1 + $0x54] ss:$20 sps:$4 sm:$0xff]   ;;  %v6409_v36 = vld [vmem:[%s9461_s1 + $0x118] ss:$20 sps:$4 sm:$0xff]   ;;  %v6448_v37 = vld [vmem:[%s9461_s1 + $0x50] ss:$20 sps:$4 sm:$0xff]  }
  0x5e   : > { %6289 = vmatpush1.bf16.msra.mxu1 %v6387_v5  ;;  %1353 = vmatpush1.bf16.msra.mxu0 %v6387_v5  ;;  %v6410_v38 = vld [vmem:[%s9461_s1 + $0x144] ss:$20 sps:$4 sm:$0xff]   ;;  %v6452_v40 = vld [vmem:[%s9461_s1 + $0x7c] ss:$20 sps:$4 sm:$0xff]   ;;  %v6412_v42 = vld [vmem:[%s9461_s1 + $0x140] ss:$20 sps:$4 sm:$0xff]  }
  0x5f   : > { %6274 = vmatprep.subr.bf16.mxu1 %v9465_v1  ;;  %1354 = vmatprep.subr.bf16.mxu0 %v9465_v1  ;;  %v7529_v41 = vld [vmem:[%s7406_s9 + $0x90] sm:$0xff]   ;;  %v6413_v44 = vld [vmem:[%s9461_s1 + $0x16c] ss:$20 sps:$4 sm:$0xff]   ;;  %v6415_v48 = vld [vmem:[%s9461_s1 + $0x168] ss:$20 sps:$4 sm:$0xff]  }
  0x60   : > { %v6456_v43 = vld [vmem:[%s9461_s1 + $0x78] ss:$20 sps:$4 sm:$0xff]   ;;  %v7551_v47 = vld [vmem:[%s7406_s9 + $0x80] sm:$0xff]   ;;  %v6423_v55 = vld [vmem:[%s9461_s1 + $0x1bc] ss:$20 sps:$4 sm:$0xff]  }
  0x61   : > { %v7542_v45 = vld [vmem:[%s7406_s9 + $0x88] sm:$0xff]   ;;  %v6460_v46 = vld [vmem:[%s9461_s1 + $0xa4] ss:$20 sps:$4 sm:$0xff]   ;;  %v6463_v49 = vld [vmem:[%s9461_s1 + $0xa0] ss:$20 sps:$4 sm:$0xff]  }
  0x62   : > { %6290 = vmatpush1.bf16.msra.mxu1 %v6388_v6  ;;  %1355 = vmatpush1.bf16.msra.mxu0 %v6388_v6  ;;  %v6418_v50 = vld [vmem:[%s9461_s1 + $0x194] ss:$20 sps:$4 sm:$0xff]   ;;  %v7564_v51 = vld [vmem:[%s7406_s9 + $0xf8] sm:$0xff]   ;;  %v6420_v53 = vld [vmem:[%s9461_s1 + $0x190] ss:$20 sps:$4 sm:$0xff]  }
  0x63   : > { %6275 = vmatprep.subr.bf16.mxu1 %v9465_v1  ;;  %1356 = vmatprep.subr.bf16.mxu0 %v9465_v1  ;;  %v7570_v52 = vld [vmem:[%s7406_s9 + $0xf0] sm:$0xff]   ;;  %v7585_v56 = vld [vmem:[%s7406_s9 + $0xe8] sm:$0xff]   ;;  %v7592_v57 = vld [vmem:[%s7406_s9 + $0xe0] sm:$0xff]  }
  0x64   : > { %v6471_v54 = vld [vmem:[%s9461_s1 + $0x10] ss:$20 sps:$4 sm:$0xff]   ;;  %v6425_v58 = vld [vmem:[%s9461_s1 + $0x1b8] ss:$20 sps:$4 sm:$0xff]   ;;  %v6433_v63 = vld [vmem:[%s9461_s1 + $0x1e0] ss:$20 sps:$4 sm:$0xff]  }
  0x65   : > { %v6475_v59 = vld [vmem:[%s9461_s1 + $0x38] ss:$20 sps:$4 sm:$0xff]   ;;  %v6479_v0 = vld [vmem:[%s9461_s1 + $0x60] ss:$20 sps:$4 sm:$0xff]   ;;  %v6441_v5 = vld [vmem:[%s9461_s1 + $0x208] ss:$20 sps:$4 sm:$0xff]  }
  0x66   : > { %6291 = vmatpush1.bf16.msra.mxu1 %v6389_v7  ;;  %1357 = vmatpush1.bf16.msra.mxu0 %v6389_v7  ;;  %v6431_v60 = vld [vmem:[%s9461_s1 + $0x1e4] ss:$20 sps:$4 sm:$0xff]   ;;  %v6438_v2 = vld [vmem:[%s9461_s1 + $0x20c] ss:$20 sps:$4 sm:$0xff]   ;;  %v6483_v6 = vld [vmem:[%s9461_s1 + $0x88] ss:$20 sps:$4 sm:$0xff]  }
  0x67   : > { %6276 = vmatprep.subr.bf16.mxu1 %v9465_v1  ;;  %1358 = vmatprep.subr.bf16.mxu0 %v9465_v1  ;;  %v7607_v61 = vld [vmem:[%s7406_s9 + $0xd8] sm:$0xff]   ;;  %v7617_v62 = vld [vmem:[%s7406_s9 + $0xd0] sm:$0xff]   ;;  %v7632_v3 = vld [vmem:[%s7406_s9 + $0xc8] sm:$0xff]  }
  0x68   : > { %v7640_v4 = vld [vmem:[%s7406_s9 + $0xc0] sm:$0xff]   ;;  %v6476_v24 = vld [vmem:[%s9461_s1 + $0x5c] ss:$20 sps:$4 sm:$0xff]  }
  0x69   : > { %v6446_v7 = vld [vmem:[%s9461_s1 + $0x234] ss:$20 sps:$4 sm:$0xff]   ;;  %v675_v11 = vld [vmem:[%s9461_s1 + $0x280] sm:$0x11] }
  0x6a   : > { %6292 = vmatpush1.bf16.msra.mxu1 %v6390_v8  ;;  %1359 = vmatpush1.bf16.msra.mxu0 %v6390_v8  ;;  %v6449_v8 = vld [vmem:[%s9461_s1 + $0x230] ss:$20 sps:$4 sm:$0xff]  }
  0x6b   : > { %6277 = vmatprep.subr.bf16.mxu1 %v9465_v1  ;;  %1360 = vmatprep.subr.bf16.mxu0 %v9465_v1 }
  0x6e   : > { %6293 = vmatpush1.bf16.msra.mxu1 %v6391_v9  ;;  %1361 = vmatpush1.bf16.msra.mxu0 %v6391_v9  ;;  %v6487_v9 = vld [vmem:[%s9461_s1 + $0xb0] ss:$20 sps:$4 sm:$0xff]  }
  0x6f   : > { %6278 = vmatprep.subr.bf16.mxu1 %v9465_v1  ;;  %1362 = vmatprep.subr.bf16.mxu0 %v9465_v1 }
  0x72   : > { %6294 = vmatpush1.bf16.msra.mxu1 %v6392_v10  ;;  %1363 = vmatpush1.bf16.msra.mxu0 %v6392_v10  ;;  %v6454_v10 = vld [vmem:[%s9461_s1 + $0x25c] ss:$20 sps:$4 sm:$0xff]  }
  0x73   : > { %6279 = vmatprep.subr.bf16.mxu1 %v9465_v1  ;;  %1364 = vmatprep.subr.bf16.mxu0 %v9465_v1 }
  0x76   : > { %6295 = vmatpush2.bf16.msra.mxu1 %v6393_v12  ;;  %1365 = vmatpush2.bf16.msra.mxu0 %v6393_v12  ;;  %v6457_v12 = vld [vmem:[%s9461_s1 + $0x258] ss:$20 sps:$4 sm:$0xff]  }
  0x77   : > { %6280 = vmatprep.subr.bf16.mxu1 %v9465_v1  ;;  %1366 = vmatprep.subr.bf16.mxu0 %v9465_v1 }
  0x7a   : > { %6296 = vmatpush2.bf16.msra.mxu1 %v6394_v13  ;;  %1367 = vmatpush2.bf16.msra.mxu0 %v6394_v13  ;;  %v6491_v13 = vld [vmem:[%s9461_s1 + $0xd8] ss:$20 sps:$4 sm:$0xff]  }
  0x7b   : > { %6281 = vmatprep.subr.bf16.mxu1 %v9465_v1  ;;  %1368 = vmatprep.subr.bf16.mxu0 %v9465_v1 }
  0x7e   : > { %6297 = vmatpush2.bf16.msra.mxu1 %v6395_v14  ;;  %1369 = vmatpush2.bf16.msra.mxu0 %v6395_v14  ;;  %v5597_v14 = vcombine.high %v675_v11, %v675_v11 }
  0x7f   : > { %6282 = vmatprep.subr.bf16.mxu1 %v9465_v1  ;;  %1370 = vmatprep.subr.bf16.mxu0 %v9465_v1 }
  0x82   : > { %6298 = vmatpush2.bf16.msra.mxu1 %v6396_v15  ;;  %1371 = vmatpush2.bf16.msra.mxu0 %v6396_v15  ;;  %v6495_v15 = vld [vmem:[%s9461_s1 + $0x100] ss:$20 sps:$4 sm:$0xff]  }
  0x83   : > { %6283 = vmatprep.subr.bf16.mxu1 %v9465_v1  ;;  %1372 = vmatprep.subr.bf16.mxu0 %v9465_v1 }
  0x86   : > { %6299 = vmatpush2.bf16.msra.mxu1 %v6397_v16  ;;  %1373 = vmatpush2.bf16.msra.mxu0 %v6397_v16  ;;  %v5596_v16 = vcombine.low %v675_v11, %v675_v11  ;;  %v6516_v11 = vld [vmem:[%s9461_s1 + $0x1ec] ss:$20 sps:$4 sm:$0xff]  }
  0x87   : > { %6284 = vmatprep.subr.bf16.mxu1 %v9465_v1  ;;  %1374 = vmatprep.subr.bf16.mxu0 %v9465_v1 }
  0x8a   : > { %6300 = vmatpush2.bf16.msra.mxu1 %v6398_v17  ;;  %1375 = vmatpush2.bf16.msra.mxu0 %v6398_v17  ;;  %v6470_v17 = vld [vmem:[%s9461_s1 + $0xc] ss:$20 sps:$4 sm:$0xff]  }
  0x8b   : > { %6285 = vmatprep.subr.bf16.mxu1 %v9465_v1  ;;  %1376 = vmatprep.subr.bf16.mxu0 %v9465_v1 }
  0x8e   : > { %6301 = vmatpush2.bf16.msra.mxu1 %v6399_v18  ;;  %1377 = vmatpush2.bf16.msra.mxu0 %v6399_v18  ;;  %v6468_v18 = vld [vmem:[%s9461_s1 + $0x8] ss:$20 sps:$4 sm:$0xff]  }
  0x8f   : > { %6286 = vmatprep.subr.bf16.mxu1 %v9465_v1  ;;  %1378 = vmatprep.subr.bf16.mxu0 %v9465_v1 }
  0x92   : > { %6302 = vmatpush2.bf16.msra.mxu1 %v6400_v19  ;;  %1379 = vmatpush2.bf16.msra.mxu0 %v6400_v19  ;;  %v6472_v19 = vld [vmem:[%s9461_s1 + $0x34] ss:$20 sps:$4 sm:$0xff]  }
  0x93   : > { %1516 = vmatprep.subr.bf16.mxu1 %v9465_v1  ;;  %6033 = vmatprep.subr.bf16.mxu0 %v9467_v27 }
  0x95   : > { %1421 = vmatmul.mubr.bf16.vlgmr.msra.gmra.mxu1 %v6401_v20  ;;  %1381 = vmatmul.mubr.bf16.vlgmr.msra.gmra.mxu0 %v6428_v23  ;;  %v6499_v20 = vld [vmem:[%s9461_s1 + $0x128] ss:$20 sps:$4 sm:$0xff]   ;;  %v6503_v23 = vld [vmem:[%s9461_s1 + $0x150] ss:$20 sps:$4 sm:$0xff]  }
  0x96   : > { %1428 = vmatprep.mubr.bf16.mxu1 %v6404_v21  ;;  %1517 = vmatpush1.bf16.msra.mxu1 %v7464_v22  ;;  %v7036_v21 = vld [vmem:[%s7406_s9 + $0x38] sm:$0xff]  }
  0x97   : > { %1518 = vmatprep.subr.bf16.mxu1 %v9465_v1  ;;  %1388 = vmatprep.mubr.bf16.mxu0 %v6436_v26  ;;  %v7037_v26 = vld [vmem:[%s7406_s9 + $0x30] sm:$0xff]  }
  0x98   : > { %6034 = vmatpush3.bf16.msra.mxu0 %v7479_v28 }
  0x99   : > { %2587 = vmatprep.subr.bf16.mxu0 %v9465_v1 }
  0x9a   : > { %1519 = vmatpush1.bf16.msra.mxu1 %v7483_v29 }
  0x9b   : > { %1520 = vmatprep.subr.bf16.mxu1 %v9465_v1 }
  0x9d   : > { %1429 = vmatmul.mubr.bf16.gmra.mxu1 %v6406_v30  ;;  %1389 = vmatmul.mubr.bf16.gmra.mxu0 %v6440_v31  ;;  %v6478_v30 = vld [vmem:[%s9461_s1 + $0x58] ss:$20 sps:$4 sm:$0xff]  }
  0x9e   : > { %1436 = vmatprep.mubr.bf16.mxu1 %v6407_v32  ;;  %1521 = vmatpush1.bf16.msra.mxu1 %v7496_v33  ;;  %v6507_v31 = vld [vmem:[%s9461_s1 + $0x178] ss:$20 sps:$4 sm:$0xff]  }
  0x9f   : > { %1522 = vmatprep.subr.bf16.mxu1 %v9465_v1  ;;  %1396 = vmatprep.mubr.bf16.mxu0 %v6444_v34  ;;  %v6480_v32 = vld [vmem:[%s9461_s1 + $0x84] ss:$20 sps:$4 sm:$0xff]  }
  0xa0   : > { %v7040_v34 = vld [vmem:[%s7406_s9 + $0x18] sm:$0xff]  }
  0xa2   : > { %1523 = vmatpush1.bf16.msra.mxu1 %v7507_v35 }
  0xa3   : > { %1524 = vmatprep.subr.bf16.mxu1 %v9465_v1 }
  0xa5   : > { %1437 = vmatmul.mubr.bf16.gmra.mxu1 %v6409_v36  ;;  %1397 = vmatmul.mubr.bf16.gmra.mxu0 %v6448_v37  ;;  %v6511_v36 = vld [vmem:[%s9461_s1 + $0x1a0] ss:$20 sps:$4 sm:$0xff]  }
  0xa6   : > { %1444 = vmatprep.mubr.bf16.mxu1 %v6410_v38  ;;  %1525 = vmatpush1.bf16.msra.mxu1 %v7520_v39  ;;  %v6484_v37 = vld [vmem:[%s9461_s1 + $0xac] ss:$20 sps:$4 sm:$0xff]   ;;  %v7041_v38 = vld [vmem:[%s7406_s9 + $0x10] sm:$0xff]  }
  0xa7   : > { %1526 = vmatprep.subr.bf16.mxu1 %v9465_v1  ;;  %1404 = vmatprep.mubr.bf16.mxu0 %v6452_v40  ;;  %v6486_v40 = vld [vmem:[%s9461_s1 + $0xa8] ss:$20 sps:$4 sm:$0xff]  }
  0xaa   : > { %1527 = vmatpush1.bf16.msra.mxu1 %v7529_v41 }
  0xab   : > { %1528 = vmatprep.subr.bf16.mxu1 %v9465_v1 }
  0xad   : > { %1445 = vmatmul.mubr.bf16.gmra.mxu1 %v6412_v42  ;;  %1405 = vmatmul.mubr.bf16.gmra.mxu0 %v6456_v43  ;;  %v6488_v42 = vld [vmem:[%s9461_s1 + $0xd4] ss:$20 sps:$4 sm:$0xff]  }
  0xae   : > { %1452 = vmatprep.mubr.bf16.mxu1 %v6413_v44  ;;  %1529 = vmatpush1.bf16.msra.mxu1 %v7542_v45  ;;  %v7043_v43 = vld [vmem:[%s7406_s9] sm:$0xff]   ;;  %v7044_v44 = vld [vmem:[%s7406_s9 + $0x78] sm:$0xff]  }
  0xaf   : > { %1530 = vmatprep.subr.bf16.mxu1 %v9465_v1  ;;  %1412 = vmatprep.mubr.bf16.mxu0 %v6460_v46  ;;  %v6519_v46 = vld [vmem:[%s9461_s1 + $0x1f0] ss:$20 sps:$4 sm:$0xff]  }
  0xb2   : > { %1531 = vmatpush1.bf16.msra.mxu1 %v7551_v47 }
  0xb3   : > { %1532 = vmatprep.subr.bf16.mxu1 %v9465_v1 }
  0xb5   : > { %1453 = vmatmul.mubr.bf16.gmra.mxu1 %v6415_v48  ;;  %1413 = vmatmul.mubr.bf16.gmra.mxu0 %v6463_v49  ;;  %v7045_v48 = vld [vmem:[%s7406_s9 + $0x70] sm:$0xff]   ;;  %v7046_v49 = vld [vmem:[%s7406_s9 + $0x68] sm:$0xff]  }
  0xb6   : > { %1460 = vmatprep.mubr.bf16.mxu1 %v6418_v50  ;;  %1533 = vmatpush2.bf16.msra.mxu1 %v7564_v51  ;;  %v6494_v50 = vld [vmem:[%s9461_s1 + $0xf8] ss:$20 sps:$4 sm:$0xff]  }
  0xb7   : > { %1534 = vmatprep.subr.bf16.mxu1 %v9465_v1  ;;  %6035 = vmatprep.mubr.msk.bf16.mxu0 %vm7148_vm1, %v9467_v27 }
  0xba   : > { %1535 = vmatpush2.bf16.msra.mxu1 %v7570_v52 }
  0xbb   : > { %1536 = vmatprep.subr.bf16.mxu1 %v9465_v1 }
  0xbd   : > { %1461 = vmatmul.mubr.bf16.gmra.mxu1 %v6420_v53  ;;  %6036 = vmatmul.mubr.msk.bf16.vlgmr.msra.gmra.mxu0 %vm1290_vm2, %v6471_v54  ;;  %v7047_v53 = vld [vmem:[%s7406_s9 + $0x60] sm:$0xff]   ;;  %v7048_v54 = vld [vmem:[%s7406_s9 + $0x58] sm:$0xff]  }
  0xbe   : > { %1468 = vmatprep.mubr.bf16.mxu1 %v6423_v55  ;;  %1537 = vmatpush2.bf16.msra.mxu1 %v7585_v56  ;;  %v6498_v55 = vld [vmem:[%s9461_s1 + $0x120] ss:$20 sps:$4 sm:$0xff]  }
  0xbf   : > { %1538 = vmatprep.subr.bf16.mxu1 %v9465_v1  ;;  %6039 = vmatprep.mubr.msk.bf16.mxu0 %vm7148_vm1, %v9467_v27 }
  0xc0   : > { %2588 = vmatpush1.bf16.msra.mxu0 %v7464_v22  ;;  %v6474_v22 = vld [vmem:[%s9461_s1 + $0x30] ss:$20 sps:$4 sm:$0xff]  }
  0xc1   : > { %2589 = vmatprep.subr.bf16.mxu0 %v9465_v1 }
  0xc2   : > { %1539 = vmatpush2.bf16.msra.mxu1 %v7592_v57 }
  0xc3   : > { %1540 = vmatprep.subr.bf16.mxu1 %v9465_v1 }
  0xc4   : > { %2590 = vmatpush1.bf16.msra.mxu0 %v7483_v29  ;;  %v7038_v29 = vld [vmem:[%s7406_s9 + $0x28] sm:$0xff]  }
  0xc5   : > { %1469 = vmatmul.mubr.bf16.gmra.mxu1 %v6425_v58  ;;  %6040 = vmatmul.mubr.msk.bf16.gmra.mxu0 %vm1290_vm2, %v6475_v59  ;;  %v7049_v58 = vld [vmem:[%s7406_s9 + $0x50] sm:$0xff]   ;;  %v7050_v59 = vld [vmem:[%s7406_s9 + $0x48] sm:$0xff]  }
  0xc6   : > { %1476 = vmatprep.mubr.bf16.mxu1 %v6431_v60  ;;  %1541 = vmatpush2.bf16.msra.mxu1 %v7607_v61  ;;  %v6502_v60 = vld [vmem:[%s9461_s1 + $0x148] ss:$20 sps:$4 sm:$0xff]  }
  0xc7   : > { %1542 = vmatprep.subr.bf16.mxu1 %v9465_v1  ;;  %6043 = vmatprep.mubr.msk.bf16.mxu0 %vm7148_vm1, %v9467_v27 }
  0xc8   : > { %2591 = vmatprep.subr.bf16.mxu0 %v9465_v1 }
  0xc9   : > { %2592 = vmatpush1.bf16.msra.mxu0 %v7496_v33  ;;  %v7039_v33 = vld [vmem:[%s7406_s9 + $0x20] sm:$0xff]  }
  0xca   : > { %1543 = vmatpush2.bf16.msra.mxu1 %v7617_v62  ;;  %2593 = vmatprep.subr.bf16.mxu0 %v9465_v1 }
  0xcb   : > { %1544 = vmatprep.subr.bf16.mxu1 %v9465_v1 }
  0xcd   : > { %1477 = vmatmul.mubr.bf16.gmra.mxu1 %v6433_v63  ;;  %6044 = vmatmul.mubr.msk.bf16.gmra.mxu0 %vm1290_vm2, %v6479_v0  ;;  %v7051_v63 = vld [vmem:[%s7406_s9 + $0x40] sm:$0xff]  }
  0xce   : > { %1484 = vmatprep.mubr.bf16.mxu1 %v6438_v2  ;;  %1545 = vmatpush2.bf16.msra.mxu1 %v7632_v3  ;;  %v6506_v0 = vld [vmem:[%s9461_s1 + $0x170] ss:$20 sps:$4 sm:$0xff]  }
  0xcf   : > { %1546 = vmatprep.subr.bf16.mxu1 %v9465_v1  ;;  %6047 = vmatprep.mubr.msk.bf16.mxu0 %vm7148_vm1, %v9467_v27  ;;  %v6534_v2 = vld [vmem:[%s9461_s1 + $0x290] ss:$0 sps:$4 sm:$0x11]  }
  0xd0   : > { %2594 = vmatpush1.bf16.msra.mxu0 %v7507_v35  ;;  %v6482_v35 = vld [vmem:[%s9461_s1 + $0x80] ss:$20 sps:$4 sm:$0xff]  }
  0xd1   : > { %2595 = vmatprep.subr.bf16.mxu0 %v9465_v1 }
  0xd2   : > { %1547 = vmatpush2.bf16.msra.mxu1 %v7640_v4 }
  0xd3   : > { %2419 = vmatprep.subr.bf16.mxu1 %v9465_v1 }
  0xd4   : > { %2596 = vmatpush1.bf16.msra.mxu0 %v7520_v39  ;;  %v7042_v39 = vld [vmem:[%s7406_s9 + $0x8] sm:$0xff]   ;;  %s5427_s9 = sshll.u32 %s9168_s23, 4  ;;  %s9406_s9 = int_to_ptr.vmem [resolvable:$true] %s5427_s9 }
  0xd5   : > { %1485 = vmatmul.mubr.bf16.gmra.mxu1 %v6441_v5  ;;  %6048 = vmatmul.mubr.msk.bf16.gmra.mxu0 %vm1290_vm2, %v6483_v6  ;;  %v6510_v5 = vld [vmem:[%s9461_s1 + $0x198] ss:$20 sps:$4 sm:$0xff]   ;;  %v6538_v6 = vld [vmem:[%s9462_s2 + $0x8] ss:$20 sps:$4 sm:$0xff]   ;;  %s7052_s6 = scalar_lea.vmem %s9406_s9, 12288  ;;  %p7059_p4 = scmp.lt.s32.totalorder %s9406_s9, %s7057_s10 }
  0xd6   : > { %1492 = vmatprep.mubr.bf16.mxu1 %v6446_v7  ;;  %6051 = vmatprep.mubr.msk.bf16.mxu0 %vm7148_vm1, %v9467_v27  ;;  %v6512_v7 = vld [vmem:[%s9461_s1 + $0x1c4] ss:$20 sps:$4 sm:$0xff]   ;;  %p7053_p1 = scmp.ne.s32.totalorder %s9406_s9, %s7052_s6  ;;  %p7060_p5 = scmp.lt.s32.totalorder %s7058_s11, %s7052_s6 }
  0xd7   : > { %2597 = vmatprep.subr.bf16.mxu0 %v9465_v1 }
  0xd8   : > { %2598 = vmatpush1.bf16.msra.mxu0 %v7529_v41  ;;  %v6515_v41 = vld [vmem:[%s9461_s1 + $0x1c8] ss:$20 sps:$4 sm:$0xff]   ;;  %p7054_p2 = pnand %p7053_p1, %p7238_p8  ;;  %p7061_p6 = por %p7060_p5, %p7059_p4 }
  0xd9   : > { %2599 = vmatprep.subr.bf16.mxu0 %v9465_v1 }
  0xda   : > { %p7055_p3 = pneg %p7054_p2 }
  0xdc   : > { %2600 = vmatpush1.bf16.msra.mxu0 %v7542_v45  ;;  %v6490_v45 = vld [vmem:[%s9461_s1 + $0xd0] ss:$20 sps:$4 sm:$0xff]   ;;  %p7062_p7 = pnand %p7061_p6, %p7055_p3 }
  0xdd   : > { %1493 = vmatmul.mubr.bf16.gmra.mxu1 %v6449_v8  ;;  %6052 = vmatmul.mubr.msk.bf16.gmra.mxu0 %vm1290_vm2, %v6487_v9  ;;  %v6544_v8 = vld [vmem:[%s9462_s2 + $0x34] ss:$20 sps:$4 sm:$0xff]  }
  0xde   : > { %1500 = vmatprep.mubr.bf16.mxu1 %v6454_v10  ;;  %6055 = vmatprep.mubr.msk.bf16.mxu0 %vm7148_vm1, %v9467_v27  ;;  %v6514_v9 = vld [vmem:[%s9461_s1 + $0x1c0] ss:$20 sps:$4 sm:$0xff]   ;;  %v6546_v10 = vld [vmem:[%s9462_s2 + $0x30] ss:$20 sps:$4 sm:$0xff]  }
  0xdf   : > { %2601 = vmatprep.subr.bf16.mxu0 %v9465_v1 }
  0xe0   : > { %2602 = vmatpush1.bf16.msra.mxu0 %v7551_v47  ;;  %v6492_v47 = vld [vmem:[%s9461_s1 + $0xfc] ss:$20 sps:$4 sm:$0xff]  }
  0xe1   : > { %2603 = vmatprep.subr.bf16.mxu0 %v9465_v1 }
  0xe4   : > { %2604 = vmatpush2.bf16.msra.mxu0 %v7564_v51  ;;  %v6523_v51 = vld [vmem:[%s9461_s1 + $0x218] ss:$20 sps:$4 sm:$0xff]  }
  0xe5   : > { %1501 = vmatmul.mubr.bf16.gmra.mxu1 %v6457_v12  ;;  %6056 = vmatmul.mubr.msk.bf16.gmra.mxu0 %vm1290_vm2, %v6491_v13  ;;  %v6550_v12 = vld [vmem:[%s9462_s2 + $0x5c] ss:$20 sps:$4 sm:$0xff]  }
  0xe6   : > { %1508 = vmatprep.mubr.bf16.mxu1 %v5597_v14  ;;  %6059 = vmatprep.mubr.msk.bf16.mxu0 %vm7148_vm1, %v9467_v27  ;;  %v6518_v13 = vld [vmem:[%s9461_s1 + $0x1e8] ss:$20 sps:$4 sm:$0xff]   ;;  %v6552_v14 = vld [vmem:[%s9462_s2 + $0x58] ss:$20 sps:$4 sm:$0xff]  }
  0xe7   : > { %2605 = vmatprep.subr.bf16.mxu0 %v9465_v1 }
  0xe8   : > { %2606 = vmatpush2.bf16.msra.mxu0 %v7570_v52  ;;  %v6496_v52 = vld [vmem:[%s9461_s1 + $0x124] ss:$20 sps:$4 sm:$0xff]  }
  0xe9   : > { %2607 = vmatprep.subr.bf16.mxu0 %v9465_v1 }
  0xec   : > { %2608 = vmatpush2.bf16.msra.mxu0 %v7585_v56  ;;  %v6527_v56 = vld [vmem:[%s9461_s1 + $0x240] ss:$20 sps:$4 sm:$0xff]  }
  0xed   : > { %1509 = vmatmul.mubr.bf16.gmra.mxu1 %v5596_v16  ;;  %6060 = vmatmul.mubr.msk.bf16.gmra.mxu0 %vm1290_vm2, %v6495_v15  ;;  %v6520_v15 = vld [vmem:[%s9461_s1 + $0x214] ss:$20 sps:$4 sm:$0xff]   ;;  %v6556_v16 = vld [vmem:[%s9462_s2 + $0x84] ss:$20 sps:$4 sm:$0xff]  }
  0xee   : > { %1548 = vmatprep.mubr.bf16.mxu1 %v6470_v17  ;;  %6063 = vmatprep.mubr.msk.bf16.mxu0 %vm7148_vm1, %v9467_v27 }
  0xef   : > { %2609 = vmatprep.subr.bf16.mxu0 %v9465_v1 }
  0xf0   : > { %2610 = vmatpush2.bf16.msra.mxu0 %v7592_v57  ;;  %v6500_v57 = vld [vmem:[%s9461_s1 + $0x14c] ss:$20 sps:$4 sm:$0xff]  }
  0xf1   : > { %2611 = vmatprep.subr.bf16.mxu0 %v9465_v1 }
  0xf4   : > { %2612 = vmatpush2.bf16.msra.mxu0 %v7607_v61  ;;  %v6531_v61 = vld [vmem:[%s9461_s1 + $0x268] ss:$20 sps:$4 sm:$0xff]  }
  0xf5   : > { %1549 = vmatmul.mubr.bf16.vlgmr.msra.gmra.mxu1 %v6468_v18  ;;  %6064 = vmatmul.mubr.msk.bf16.gmra.mxu0 %vm1290_vm2, %v6499_v20 }
  0xf6   : > { %1556 = vmatprep.mubr.bf16.mxu1 %v6472_v19  ;;  %2420 = vmatpush1.bf16.msra.mxu1 %v7036_v21 }
  0xf7   : > { %2421 = vmatprep.subr.bf16.mxu1 %v9465_v1  ;;  %6067 = vmatprep.mubr.msk.bf16.mxu0 %vm7148_vm1, %v9467_v27 }
  0xf8   : > { %2613 = vmatprep.subr.bf16.mxu0 %v9465_v1 }
  0xf9   : > { %2614 = vmatpush2.bf16.msra.mxu0 %v7617_v62  ;;  %v6504_v62 = vld [vmem:[%s9461_s1 + $0x174] ss:$20 sps:$4 sm:$0xff]  }
  0xfa   : > { %2422 = vmatpush1.bf16.msra.mxu1 %v7037_v26  ;;  %2615 = vmatprep.subr.bf16.mxu0 %v9465_v1  ;;  %v6524_v26 = vld [vmem:[%s9461_s1 + $0x23c] ss:$20 sps:$4 sm:$0xff]  }
  0xfb   : > { %2423 = vmatprep.subr.bf16.mxu1 %v9465_v1 }
  0xfd   : > { %1557 = vmatmul.mubr.bf16.gmra.mxu1 %v6474_v22  ;;  %6068 = vmatmul.mubr.msk.bf16.gmra.mxu0 %vm1290_vm2, %v6503_v23  ;;  %v6522_v22 = vld [vmem:[%s9461_s1 + $0x210] ss:$20 sps:$4 sm:$0xff]  }
  0xfe   : > { %1564 = vmatprep.mubr.bf16.mxu1 %v6476_v24  ;;  %2424 = vmatpush1.bf16.msra.mxu1 %v7038_v29  ;;  %v6558_v24 = vld [vmem:[%s9462_s2 + $0x80] ss:$20 sps:$4 sm:$0xff]  }
  0xff   : > { %2425 = vmatprep.subr.bf16.mxu1 %v9465_v1  ;;  %6071 = vmatprep.mubr.msk.bf16.mxu0 %vm7148_vm1, %v9467_v27  ;;  %v6562_v29 = vld [vmem:[%s9462_s2 + $0xac] ss:$20 sps:$4 sm:$0xff]  }
 0x100   : > { %2616 = vmatpush2.bf16.msra.mxu0 %v7632_v3  ;;  %v6508_v3 = vld [vmem:[%s9461_s1 + $0x19c] ss:$20 sps:$4 sm:$0xff]  }
 0x101   : > { %2617 = vmatprep.subr.bf16.mxu0 %v9465_v1 }
 0x102   : > { %2426 = vmatpush1.bf16.msra.mxu1 %v7039_v33 }
 0x103   : > { %2427 = vmatprep.subr.bf16.mxu1 %v9465_v1 }
 0x104   : > { %2618 = vmatpush2.bf16.msra.mxu0 %v7640_v4  ;;  %v6540_v4 = vld [vmem:[%s9462_s2 + $0xc] ss:$20 sps:$4 sm:$0xff]  }
 0x105   : > { %1565 = vmatmul.mubr.bf16.gmra.mxu1 %v6478_v30  ;;  %6072 = vmatmul.mubr.msk.bf16.gmra.mxu0 %vm1290_vm2, %v6507_v31 }
 0x106   : > { %1572 = vmatprep.mubr.bf16.mxu1 %v6480_v32  ;;  %2428 = vmatpush1.bf16.msra.mxu1 %v7040_v34 }
 0x107   : > { %6075 = vmatprep.mubr.msk.bf16.mxu0 %vm7148_vm1, %v9467_v27  ;;  %2429 = vmatprep.subr.bf16.mxu1 %v9465_v1 }
 0x108   : > { %4098 = vmatprep.subr.bf16.mxu0 %v9465_v1 }
 0x10a   : > { %2430 = vmatpush1.bf16.msra.mxu1 %v7041_v38 }
 0x10b   : > { %2431 = vmatprep.subr.bf16.mxu1 %v9465_v1 }
 0x10d   : > { %1573 = vmatmul.mubr.bf16.gmra.mxu1 %v6482_v35  ;;  %6076 = vmatmul.mubr.msk.bf16.gmra.mxu0 %vm1290_vm2, %v6511_v36 }
 0x10e   : > { %1580 = vmatprep.mubr.bf16.mxu1 %v6484_v37  ;;  %6079 = vmatprep.mubr.msk.bf16.mxu0 %vm7148_vm1, %v9467_v27  ;;  %v6526_v37 = vld [vmem:[%s9461_s1 + $0x238] ss:$20 sps:$4 sm:$0xff]  }
 0x10f   : > { %2432 = vmatpush1.bf16.msra.mxu1 %v7042_v39  ;;  %v6564_v39 = vld [vmem:[%s9462_s2 + $0xa8] ss:$20 sps:$4 sm:$0xff]  }
 0x110   : > { %2433 = vmatprep.subr.bf16.mxu1 %v9465_v1 }
 0x113   : > { %2434 = vmatpush1.bf16.msra.mxu1 %v7043_v43 }
 0x114   : > { %2435 = vmatprep.subr.bf16.mxu1 %v9465_v1 }
 0x115   : > { %1581 = vmatmul.mubr.bf16.gmra.mxu1 %v6486_v40  ;;  %6080 = vmatmul.mubr.msk.bf16.gmra.mxu0 %vm1290_vm2, %v6515_v41  ;;  %v6528_v40 = vld [vmem:[%s9461_s1 + $0x264] ss:$20 sps:$4 sm:$0xff]   ;;  %v6568_v41 = vld [vmem:[%s9462_s2 + $0xd4] ss:$20 sps:$4 sm:$0xff]  }
 0x116   : > { %1588 = vmatprep.mubr.bf16.mxu1 %v6488_v42  ;;  %6083 = vmatprep.mubr.msk.bf16.mxu0 %vm7148_vm1, %v9467_v27 }
 0x117   : > { %2436 = vmatpush2.bf16.msra.mxu1 %v7044_v44 }
 0x118   : > { %2437 = vmatprep.subr.bf16.mxu1 %v9465_v1 }
 0x11b   : > { %2438 = vmatpush2.bf16.msra.mxu1 %v7045_v48 }
 0x11c   : > { %2439 = vmatprep.subr.bf16.mxu1 %v9465_v1 }
 0x11d   : > { %1589 = vmatmul.mubr.bf16.gmra.mxu1 %v6490_v45  ;;  %6084 = vmatmul.mubr.msk.bf16.gmra.mxu0 %vm1290_vm2, %v6519_v46 }
 0x11e   : > { %1596 = vmatprep.mubr.bf16.mxu1 %v6492_v47  ;;  %6087 = vmatprep.mubr.msk.bf16.mxu0 %vm7148_vm1, %v9467_v27  ;;  %v676_v47 = vld [vmem:[%s9461_s1 + $0x288] sm:$0x11] }
 0x11f   : > { %2440 = vmatpush2.bf16.msra.mxu1 %v7046_v49 }
 0x120   : > { %2441 = vmatprep.subr.bf16.mxu1 %v9465_v1 }
 0x123   : > { %2442 = vmatpush2.bf16.msra.mxu1 %v7047_v53  ;;  %v5599_v53 = vcombine.high %v676_v47, %v676_v47 }
 0x124   : > { %2443 = vmatprep.subr.bf16.mxu1 %v9465_v1 }
 0x125   : > { %1597 = vmatmul.mubr.bf16.gmra.mxu1 %v6494_v50  ;;  %6088 = vmatmul.mubr.msk.bf16.gmra.mxu0 %vm1290_vm2, %v6523_v51  ;;  %v6530_v50 = vld [vmem:[%s9461_s1 + $0x260] ss:$20 sps:$4 sm:$0xff]  }
 0x126   : > { %1604 = vmatprep.mubr.bf16.mxu1 %v6496_v52  ;;  %6091 = vmatprep.mubr.msk.bf16.mxu0 %vm7148_vm1, %v9467_v27  ;;  %v6570_v52 = vld [vmem:[%s9462_s2 + $0xd0] ss:$20 sps:$4 sm:$0xff]  }
 0x127   : > { %2444 = vmatpush2.bf16.msra.mxu1 %v7048_v54  ;;  %v6576_v54 = vld [vmem:[%s9462_s2 + $0xfc] ss:$20 sps:$4 sm:$0xff]  }
 0x128   : > { %2445 = vmatprep.subr.bf16.mxu1 %v9465_v1 }
 0x12b   : > { %2446 = vmatpush2.bf16.msra.mxu1 %v7049_v58 }
 0x12c   : > { %2447 = vmatprep.subr.bf16.mxu1 %v9465_v1 }
 0x12d   : > { %1605 = vmatmul.mubr.bf16.gmra.mxu1 %v6498_v55  ;;  %6092 = vmatmul.mubr.msk.bf16.gmra.mxu0 %vm1290_vm2, %v6527_v56 }
 0x12e   : > { %1612 = vmatprep.mubr.bf16.mxu1 %v6500_v57  ;;  %6095 = vmatprep.mubr.msk.bf16.mxu0 %vm7148_vm1, %v9467_v27 }
 0x12f   : > { %2448 = vmatpush2.bf16.msra.mxu1 %v7050_v59 }
 0x130   : > { %2449 = vmatprep.subr.bf16.mxu1 %v9465_v1 }
 0x133   : > { %2450 = vmatpush2.bf16.msra.mxu1 %v7051_v63 }
 0x134   : > { %6103 = vmatprep.subr.bf16.mxu1 %v9467_v27 }
 0x135   : > { %1613 = vmatmul.mubr.bf16.gmra.mxu1 %v6502_v60  ;;  %6096 = vmatmul.mubr.msk.bf16.gmra.mxu0 %vm1290_vm2, %v6531_v61 }
 0x136   : > { %1620 = vmatprep.mubr.bf16.mxu1 %v6504_v62  ;;  %6099 = vmatprep.mubr.msk.bf16.mxu0 %vm7148_vm1, %v9467_v27  ;;  %v5598_v62 = vcombine.low %v676_v47, %v676_v47  ;;  %v6547_v47 = vld [vmem:[%s9462_s2 + $0x50] ss:$20 sps:$4 sm:$0xff]  }
 0x13d   : > { %1621 = vmatmul.mubr.bf16.gmra.mxu1 %v6506_v0  ;;  %6100 = vmatmul.mubr.msk.bf16.gmra.mxu0 %vm1290_vm2, %v6534_v2  ;;  %v6574_v0 = vld [vmem:[%s9462_s2 + $0xf8] ss:$20 sps:$4 sm:$0xff]  }
 0x13e   : > { %1628 = vmatprep.mubr.bf16.mxu1 %v6508_v3  ;;  %2619 = vmatprep.mubr.bf16.mxu0 %v6540_v4  ;;  %v6537_v2 = vld [vmem:[%s9462_s2 + $0x4] ss:$20 sps:$4 sm:$0xff]  }
 0x13f   : > { %v6582_v3 = vld [vmem:[%s9462_s2 + $0x124] ss:$20 sps:$4 sm:$0xff]  }
 0x145   : > { %1629 = vmatmul.mubr.bf16.gmra.mxu1 %v6510_v5  ;;  %2620 = vmatmul.mubr.bf16.vlgmr.msra.gmra.mxu0 %v6538_v6 }
 0x146   : > { %1636 = vmatprep.mubr.bf16.mxu1 %v6512_v7  ;;  %2627 = vmatprep.mubr.bf16.mxu0 %v6544_v8 }
 0x14d   : > { %1637 = vmatmul.mubr.bf16.gmra.mxu1 %v6514_v9  ;;  %2628 = vmatmul.mubr.bf16.gmra.mxu0 %v6546_v10 }
 0x14e   : > { %1644 = vmatprep.mubr.bf16.mxu1 %v6516_v11  ;;  %2635 = vmatprep.mubr.bf16.mxu0 %v6550_v12  ;;  %v6535_v11 = vld [vmem:[%s9462_s2] ss:$20 sps:$4 sm:$0xff]  }
 0x155   : > { %v7909_v17 = vpop.f32.mrf.mxu1  ;;  %1645 = vmatmul.mubr.bf16.gmra.mxu1 %v6518_v13  ;;  %v7911_v18 = vpop.f32.mrf.mxu0  ;;  %2636 = vmatmul.mubr.bf16.gmra.mxu0 %v6552_v14  ;;  %v6580_v13 = vld [vmem:[%s9462_s2 + $0x120] ss:$20 sps:$4 sm:$0xff]  }
 0x156   : > { %1652 = vmatprep.mubr.bf16.mxu1 %v6520_v15  ;;  %2643 = vmatprep.mubr.bf16.mxu0 %v6556_v16  ;;  %v6543_v14 = vld [vmem:[%s9462_s2 + $0x2c] ss:$20 sps:$4 sm:$0xff]  }
 0x157   : > { %v1424_v19 = vpop.f32.mrf.mxu1  ;;  %v1384_v20 = vpop.f32.mrf.mxu0 }
 0x158   : > { %v6588_v19 = vld [vmem:[%s9462_s2 + $0x14c] ss:$20 sps:$4 sm:$0xff]  }
 0x159   : > { %v7913_v21 = vpop.f32.mrf.mxu1  ;;  %v7918_v23 = vpop.f32.mrf.mxu0 }
 0x15b   : > { %v1427_v30 = vpop.f32.mrf.mxu1  ;;  %v1387_v31 = vpop.f32.mrf.mxu0 }
 0x15c   : > { %v6541_v30 = vld [vmem:[%s9462_s2 + $0x28] ss:$20 sps:$4 sm:$0xff]  }
 0x15d   : > { %v7929_v32 = vpop.f32.mrf.mxu1  ;;  %1653 = vmatmul.mubr.bf16.gmra.mxu1 %v6522_v22  ;;  %v7931_v33 = vpop.f32.mrf.mxu0  ;;  %2644 = vmatmul.mubr.bf16.gmra.mxu0 %v6558_v24 }
 0x15e   : > { %1660 = vmatprep.mubr.bf16.mxu1 %v6524_v26  ;;  %2651 = vmatprep.mubr.bf16.mxu0 %v6562_v29 }
 0x15f   : > { %v1432_v34 = vpop.f32.mrf.mxu1  ;;  %v1392_v35 = vpop.f32.mrf.mxu0 }
 0x160   : > { %v6586_v34 = vld [vmem:[%s9462_s2 + $0x148] ss:$20 sps:$4 sm:$0xff]  }
 0x161   : > { %v7933_v36 = vpop.f32.mrf.mxu1  ;;  %v7938_v38 = vpop.f32.mrf.mxu0  ;;  %v6549_v35 = vld [vmem:[%s9462_s2 + $0x54] ss:$20 sps:$4 sm:$0xff]  }
 0x163   : > { %v1435_v42 = vpop.f32.mrf.mxu1  ;;  %v1395_v43 = vpop.f32.mrf.mxu0 }
 0x165   : > { %v7949_v44 = vpop.f32.mrf.mxu1  ;;  %1661 = vmatmul.mubr.bf16.gmra.mxu1 %v6526_v37  ;;  %v7951_v45 = vpop.f32.mrf.mxu0  ;;  %2652 = vmatmul.mubr.bf16.gmra.mxu0 %v6564_v39 }
 0x166   : > { %1668 = vmatprep.mubr.bf16.mxu1 %v6528_v40  ;;  %2659 = vmatprep.mubr.bf16.mxu0 %v6568_v41 }
 0x167   : > { %v1440_v46 = vpop.f32.mrf.mxu1  ;;  %v1400_v48 = vpop.f32.mrf.mxu0 }
 0x169   : > { %v7956_v49 = vpop.f32.mrf.mxu1  ;;  %v7961_v51 = vpop.f32.mrf.mxu0 }
 0x16b   : > { %v1443_v55 = vpop.f32.mrf.mxu1  ;;  %v1403_v56 = vpop.f32.mrf.mxu0 }
 0x16d   : > { %v7969_v57 = vpop.f32.mrf.mxu1  ;;  %1669 = vmatmul.mubr.bf16.gmra.mxu1 %v6530_v50  ;;  %v7971_v58 = vpop.f32.mrf.mxu0  ;;  %2660 = vmatmul.mubr.bf16.gmra.mxu0 %v6570_v52  ;;  %v6592_v50 = vld [vmem:[%s9462_s2 + $0x170] ss:$20 sps:$4 sm:$0xff]  }
 0x16e   : > { %1676 = vmatprep.mubr.bf16.mxu1 %v5599_v53  ;;  %2667 = vmatprep.mubr.bf16.mxu0 %v6576_v54  ;;  %v6555_v52 = vld [vmem:[%s9462_s2 + $0x7c] ss:$20 sps:$4 sm:$0xff]  }
 0x16f   : > { %v1448_v59 = vpop.f32.mrf.mxu1  ;;  %v1408_v60 = vpop.f32.mrf.mxu0  ;;  %v6600_v53 = vld [vmem:[%s9462_s2 + $0x19c] ss:$20 sps:$4 sm:$0xff]  }
 0x171   : > { %v7973_v61 = vpop.f32.mrf.mxu1  ;;  %v7975_v63 = vpop.f32.mrf.mxu0 }
 0x173   : > { %v1451_v4 = vpop.f32.mrf.mxu1  ;;  %v1411_v5 = vpop.f32.mrf.mxu0 }
 0x174   : > { %v6598_v4 = vld [vmem:[%s9462_s2 + $0x198] ss:$20 sps:$4 sm:$0xff]  }
 0x175   : > { %v7986_v6 = vpop.f32.mrf.mxu1  ;;  %1677 = vmatmul.mubr.bf16.gmra.mxu1 %v5598_v62  ;;  %v7988_v7 = vpop.f32.mrf.mxu0  ;;  %2668 = vmatmul.mubr.bf16.gmra.mxu0 %v6574_v0  ;;  %v6561_v5 = vld [vmem:[%s9462_s2 + $0xa4] ss:$20 sps:$4 sm:$0xff]  }
 0x176   : > { %2451 = vmatprep.mubr.bf16.mxu1 %v6537_v2  ;;  %2675 = vmatprep.mubr.bf16.mxu0 %v6582_v3  ;;  %v6553_v2 = vld [vmem:[%s9462_s2 + $0x78] ss:$20 sps:$4 sm:$0xff]  }
 0x177   : > { %v1456_v8 = vpop.f32.mrf.mxu1  ;;  %v1416_v9 = vpop.f32.mrf.mxu0 }
 0x178   : > { %v6606_v8 = vld [vmem:[%s9462_s2 + $0x1c4] ss:$20 sps:$4 sm:$0xff]  }
 0x179   : > { %v7990_v10 = vpop.f32.mrf.mxu1  ;;  %v7995_v12 = vpop.f32.mrf.mxu0 }
 0x17b   : > { %v1459_v15 = vpop.f32.mrf.mxu1  ;;  %v1419_v16 = vpop.f32.mrf.mxu0 }
 0x17d   : > { %v8006_v20 = vpop.f32.mrf.mxu1  ;;  %2452 = vmatmul.mubr.bf16.vlgmr.msra.gmra.mxu1 %v6535_v11  ;;  %v8008_v22 = vpop.f32.mrf.mxu0  ;;  %2676 = vmatmul.mubr.bf16.gmra.mxu0 %v6580_v13 }
 0x17e   : > { %2459 = vmatprep.mubr.bf16.mxu1 %v6543_v14  ;;  %6104 = vmatpush3.bf16.msra.mxu1 %v7479_v28  ;;  %v6594_v28 = vld [vmem:[%s9462_s2 + $0x174] ss:$20 sps:$4 sm:$0xff]  }
 0x17f   : > { %v1464_v24 = vpop.f32.mrf.mxu1  ;;  %v6037_v26 = vpop.f32.mrf.mxu0  ;;  %2683 = vmatprep.mubr.bf16.mxu0 %v6588_v19 }
 0x180   : > { %v6559_v24 = vld [vmem:[%s9462_s2 + $0xa0] ss:$20 sps:$4 sm:$0xff]  }
 0x181   : > { %v8011_v29 = vpop.f32.mrf.mxu1  ;;  %v8016_v31 = vpop.f32.mrf.mxu0 }
 0x183   : > { %v1467_v37 = vpop.f32.mrf.mxu1  ;;  %v6038_v39 = vpop.f32.mrf.mxu0 }
 0x185   : > { %v8027_v40 = vpop.f32.mrf.mxu1  ;;  %2460 = vmatmul.mubr.bf16.gmra.mxu1 %v6541_v30  ;;  %v8029_v41 = vpop.f32.mrf.mxu0  ;;  %2684 = vmatmul.mubr.bf16.gmra.mxu0 %v6586_v34  ;;  %v6604_v30 = vld [vmem:[%s9462_s2 + $0x1c0] ss:$20 sps:$4 sm:$0xff]  }
 0x186   : > { %2467 = vmatprep.mubr.bf16.mxu1 %v6549_v35  ;;  %2691 = vmatprep.mubr.bf16.mxu0 %v6594_v28  ;;  %v6567_v34 = vld [vmem:[%s9462_s2 + $0xcc] ss:$20 sps:$4 sm:$0xff]  }
 0x187   : > { %v1472_v42 = vpop.f32.mrf.mxu1  ;;  %v6041_v43 = vpop.f32.mrf.mxu0  ;;  %v6612_v35 = vld [vmem:[%s9462_s2 + $0x1ec] ss:$20 sps:$4 sm:$0xff]  }
 0x189   : > { %v8031_v46 = vpop.f32.mrf.mxu1  ;;  %v8036_v48 = vpop.f32.mrf.mxu0 }
 0x18b   : > { %v1475_v54 = vpop.f32.mrf.mxu1  ;;  %v6042_v55 = vpop.f32.mrf.mxu0 }
 0x18c   : > { %v6610_v54 = vld [vmem:[%s9462_s2 + $0x1e8] ss:$20 sps:$4 sm:$0xff]  }
 0x18d   : > { %v8047_v56 = vpop.f32.mrf.mxu1  ;;  %2468 = vmatmul.mubr.bf16.gmra.mxu1 %v6547_v47  ;;  %v8049_v59 = vpop.f32.mrf.mxu0  ;;  %2692 = vmatmul.mubr.bf16.gmra.mxu0 %v6592_v50  ;;  %v6573_v55 = vld [vmem:[%s9462_s2 + $0xf4] ss:$20 sps:$4 sm:$0xff]  }
 0x18e   : > { %2475 = vmatprep.mubr.bf16.mxu1 %v6555_v52  ;;  %2699 = vmatprep.mubr.bf16.mxu0 %v6600_v53  ;;  %v6565_v52 = vld [vmem:[%s9462_s2 + $0xc8] ss:$20 sps:$4 sm:$0xff]  }
 0x18f   : > { %v1480_v60 = vpop.f32.mrf.mxu1  ;;  %v6045_v62 = vpop.f32.mrf.mxu0 }
 0x190   : > { %v6618_v60 = vld [vmem:[%s9462_s2 + $0x214] ss:$20 sps:$4 sm:$0xff]  }
 0x191   : > { %v8051_v0 = vpop.f32.mrf.mxu1  ;;  %v8056_v3 = vpop.f32.mrf.mxu0 }
 0x193   : > { %v1483_v9 = vpop.f32.mrf.mxu1  ;;  %v6046_v11 = vpop.f32.mrf.mxu0 }
 0x195   : > { %v8067_v13 = vpop.f32.mrf.mxu1  ;;  %2476 = vmatmul.mubr.bf16.gmra.mxu1 %v6553_v2  ;;  %v8069_v14 = vpop.f32.mrf.mxu0  ;;  %2700 = vmatmul.mubr.bf16.gmra.mxu0 %v6598_v4 }
 0x196   : > { %2483 = vmatprep.mubr.bf16.mxu1 %v6561_v5  ;;  %2707 = vmatprep.mubr.bf16.mxu0 %v6606_v8 }
 0x197   : > { %v1488_v15 = vpop.f32.mrf.mxu1  ;;  %v6049_v16 = vpop.f32.mrf.mxu0 }
 0x198   : > { %v6571_v15 = vld [vmem:[%s9462_s2 + $0xf0] ss:$20 sps:$4 sm:$0xff]  }
 0x199   : > { %v8071_v19 = vpop.f32.mrf.mxu1  ;;  %v8076_v26 = vpop.f32.mrf.mxu0 }
 0x19b   : > { %v1491_v28 = vpop.f32.mrf.mxu1  ;;  %v6050_v37 = vpop.f32.mrf.mxu0 }
 0x19d   : > { %v8087_v39 = vpop.f32.mrf.mxu1  ;;  %2484 = vmatmul.mubr.bf16.gmra.mxu1 %v6559_v24  ;;  %v8089_v42 = vpop.f32.mrf.mxu0  ;;  %2708 = vmatmul.mubr.bf16.gmra.mxu0 %v6604_v30  ;;  %v6616_v24 = vld [vmem:[%s9462_s2 + $0x210] ss:$20 sps:$4 sm:$0xff]  }
 0x19e   : > { %2491 = vmatprep.mubr.bf16.mxu1 %v6567_v34  ;;  %2715 = vmatprep.mubr.bf16.mxu0 %v6612_v35  ;;  %v6579_v30 = vld [vmem:[%s9462_s2 + $0x11c] ss:$20 sps:$4 sm:$0xff]  }
 0x19f   : > { %v1496_v43 = vpop.f32.mrf.mxu1  ;;  %v6053_v47 = vpop.f32.mrf.mxu0  ;;  %v6624_v34 = vld [vmem:[%s9462_s2 + $0x23c] ss:$20 sps:$4 sm:$0xff]  }
 0x1a1   : > { %v8091_v50 = vpop.f32.mrf.mxu1  ;;  %v8096_v53 = vpop.f32.mrf.mxu0 }
 0x1a3   : > { %v1499_v62 = vpop.f32.mrf.mxu1  ;;  %v6054_v2 = vpop.f32.mrf.mxu0 }
 0x1a4   : > { %v6622_v62 = vld [vmem:[%s9462_s2 + $0x238] ss:$20 sps:$4 sm:$0xff]  }
 0x1a5   : > { %v8107_v4 = vpop.f32.mrf.mxu1  ;;  %2492 = vmatmul.mubr.bf16.gmra.mxu1 %v6565_v52  ;;  %v8109_v5 = vpop.f32.mrf.mxu0  ;;  %2716 = vmatmul.mubr.bf16.gmra.mxu0 %v6610_v54  ;;  %v6585_v2 = vld [vmem:[%s9462_s2 + $0x144] ss:$20 sps:$4 sm:$0xff]  }
 0x1a6   : > { %2499 = vmatprep.mubr.bf16.mxu1 %v6573_v55  ;;  %2723 = vmatprep.mubr.bf16.mxu0 %v6618_v60  ;;  %v6577_v55 = vld [vmem:[%s9462_s2 + $0x118] ss:$20 sps:$4 sm:$0xff]  }
 0x1a7   : > { %v1504_v8 = vpop.f32.mrf.mxu1  ;;  %v6057_v9 = vpop.f32.mrf.mxu0 }
 0x1a8   : > { %v6630_v8 = vld [vmem:[%s9462_s2 + $0x264] ss:$20 sps:$4 sm:$0xff]  }
 0x1a9   : > { %v8111_v11 = vpop.f32.mrf.mxu1  ;;  %v8116_v16 = vpop.f32.mrf.mxu0 }
 0x1ab   : > { %v1507_v35 = vpop.f32.mrf.mxu1  ;;  %v6058_v28 = vpop.f32.mrf.mxu0 }
 0x1ad   : > { %v8127_v37 = vpop.f32.mrf.mxu1  ;;  %2500 = vmatmul.mubr.bf16.gmra.mxu1 %v6571_v15  ;;  %v8129_v43 = vpop.f32.mrf.mxu0  ;;  %2724 = vmatmul.mubr.bf16.gmra.mxu0 %v6616_v24 }
 0x1ae   : > { %2507 = vmatprep.mubr.bf16.mxu1 %v6579_v30  ;;  %2731 = vmatprep.mubr.bf16.mxu0 %v6624_v34 }
 0x1af   : > { %v1512_v47 = vpop.f32.mrf.mxu1  ;;  %v6061_v52 = vpop.f32.mrf.mxu0 }
 0x1b0   : > { %v1949_v47 = vld [vmem:[%s9462_s2 + $0x288] sm:$0x11] }
 0x1b1   : > { %v1513_v54 = vpop.f32.mrf.mxu1  ;;  %v8134_v60 = vpop.f32.mrf.mxu0 }
 0x1b3   : > { %v1514_v9 = vpop.f32.mrf.mxu1  ;;  %v6062_v15 = vpop.f32.mrf.mxu0 }
 0x1b5   : > { %v1550_v24 = vpop.f32.mrf.mxu1  ;;  %2508 = vmatmul.mubr.bf16.gmra.mxu1 %v6577_v55  ;;  %v8145_v30 = vpop.f32.mrf.mxu0  ;;  %2732 = vmatmul.mubr.bf16.gmra.mxu0 %v6622_v62  ;;  %v6583_v55 = vld [vmem:[%s9462_s2 + $0x140] ss:$20 sps:$4 sm:$0xff]  }
 0x1b6   : > { %v1551_v34 = vadd.f32 %v1550_v24, %v7911_v18  ;;  %2515 = vmatprep.mubr.bf16.mxu1 %v6585_v2  ;;  %2739 = vmatprep.mubr.bf16.mxu0 %v6630_v8  ;;  %v6628_v18 = vld [vmem:[%s9462_s2 + $0x260] ss:$20 sps:$4 sm:$0xff]   ;;  %v5734_v8 = vcombine.high %v1949_v47, %v1949_v47 }
 0x1b7   : > { %v1552_v35 = vpop.f32.mrf.mxu1  ;;  %v6065_v28 = vpop.f32.mrf.mxu0  ;;  %v6591_v2 = vld [vmem:[%s9462_s2 + $0x16c] ss:$20 sps:$4 sm:$0xff]  }
 0x1b8   : > { %v8152_v52 = vadd.f32 %v8008_v22, %v1551_v34 }
 0x1b9   : > { %v1553_v54 = vpop.f32.mrf.mxu1  ;;  %v8157_v9 = vpop.f32.mrf.mxu0 }
 0x1ba   : > { %v1554_v62 = vadd.f32 %v1553_v54, %v7918_v23 }
 0x1bb   : > { %v1555_v22 = vpop.f32.mrf.mxu1  ;;  %v6066_v15 = vpop.f32.mrf.mxu0 }
 0x1bc   : > { %v8167_v24 = vadd.f32 %v8016_v31, %v1554_v62  ;;  %v6589_v31 = vld [vmem:[%s9462_s2 + $0x168] ss:$20 sps:$4 sm:$0xff]  }
 0x1bd   : > { %v1558_v34 = vpop.f32.mrf.mxu1  ;;  %2516 = vmatmul.mubr.bf16.gmra.mxu1 %v6583_v55  ;;  %v8169_v35 = vpop.f32.mrf.mxu0  ;;  %2740 = vmatmul.mubr.bf16.gmra.mxu0 %v6628_v18  ;;  %v5733_v55 = vcombine.low %v1949_v47, %v1949_v47 }
 0x1be   : > { %v1559_v28 = vadd.f32 %v1558_v34, %v7931_v33  ;;  %2523 = vmatprep.mubr.bf16.mxu1 %v6591_v2  ;;  %2747 = vmatprep.mubr.bf16.mxu0 %v5734_v8  ;;  %v6597_v33 = vld [vmem:[%s9462_s2 + $0x194] ss:$20 sps:$4 sm:$0xff]  }
 0x1bf   : > { %v1560_v23 = vpop.f32.mrf.mxu1  ;;  %v6069_v54 = vpop.f32.mrf.mxu0 }
 0x1c0   : > { %v8173_v1 = vadd.f32 %v8029_v41, %v1559_v28  ;;  %v6595_v23 = vld [vmem:[%s9462_s2 + $0x190] ss:$20 sps:$4 sm:$0xff]  }
 0x1c1   : > { %v1561_v27 = vpop.f32.mrf.mxu1  ;;  %v8178_v62 = vpop.f32.mrf.mxu0 }
 0x1c2   : > { %v1562_v22 = vadd.f32 %v1561_v27, %v7938_v38 }
 0x1c3   : > { %v1563_v18 = vpop.f32.mrf.mxu1  ;;  %v6070_v2 = vpop.f32.mrf.mxu0 }
 0x1c4   : > { %v8185_v8 = vadd.f32 %v8036_v48, %v1562_v22 }
 0x1c5   : > { %v1566_v41 = vpop.f32.mrf.mxu1  ;;  %2524 = vmatmul.mubr.bf16.gmra.mxu1 %v6589_v31  ;;  %v8187_v15 = vpop.f32.mrf.mxu0  ;;  %2748 = vmatmul.mubr.bf16.gmra.mxu0 %v5733_v55  ;;  %v6603_v31 = vld [vmem:[%s9462_s2 + $0x1bc] ss:$20 sps:$4 sm:$0xff]  }
 0x1c6   : > { %v1567_v34 = vadd.f32 %v1566_v41, %v7951_v45  ;;  %2531 = vmatprep.mubr.bf16.mxu1 %v6597_v33 }
 0x1c7   : > { %v1568_v47 = vpop.f32.mrf.mxu1  ;;  %v6073_v28 = vpop.f32.mrf.mxu0 }
 0x1c8   : > { %v8191_v27 = vadd.f32 %v8049_v59, %v1567_v34  ;;  %v6601_v47 = vld [vmem:[%s9462_s2 + $0x1b8] ss:$20 sps:$4 sm:$0xff]  }
 0x1c9   : > { %v1569_v38 = vpop.f32.mrf.mxu1  ;;  %v8196_v48 = vpop.f32.mrf.mxu0 }
 0x1ca   : > { %v1570_v54 = vadd.f32 %v1569_v38, %v7961_v51  ;;  %v6609_v38 = vld [vmem:[%s9462_s2 + $0x1e4] ss:$20 sps:$4 sm:$0xff]  }
 0x1cb   : > { %v1571_v45 = vpop.f32.mrf.mxu1  ;;  %v6074_v55 = vpop.f32.mrf.mxu0 }
 0x1cc   : > { %v8203_v22 = vadd.f32 %v8056_v3, %v1570_v54 }
 0x1cd   : > { %v1574_v59 = vpop.f32.mrf.mxu1  ;;  %2532 = vmatmul.mubr.bf16.gmra.mxu1 %v6595_v23  ;;  %v8205_v33 = vpop.f32.mrf.mxu0 }
 0x1ce   : > { %v1575_v18 = vadd.f32 %v1574_v59, %v7971_v58  ;;  %2539 = vmatprep.mubr.bf16.mxu1 %v6603_v31 }
 0x1cf   : > { %v1576_v2 = vpop.f32.mrf.mxu1  ;;  %v6077_v41 = vpop.f32.mrf.mxu0 }
 0x1d0   : > { %v8209_v51 = vadd.f32 %v8069_v14, %v1575_v18  ;;  %v6607_v2 = vld [vmem:[%s9462_s2 + $0x1e0] ss:$20 sps:$4 sm:$0xff]  }
 0x1d1   : > { %v1577_v34 = vpop.f32.mrf.mxu1  ;;  %v8214_v28 = vpop.f32.mrf.mxu0 }
 0x1d2   : > { %v1578_v3 = vadd.f32 %v1577_v34, %v7975_v63  ;;  %v6615_v34 = vld [vmem:[%s9462_s2 + $0x20c] ss:$20 sps:$4 sm:$0xff]  }
 0x1d3   : > { %v1579_v58 = vpop.f32.mrf.mxu1  ;;  %v6078_v23 = vpop.f32.mrf.mxu0 }
 0x1d4   : > { %v8221_v54 = vadd.f32 %v8076_v26, %v1578_v3 }
 0x1d5   : > { %v1582_v14 = vpop.f32.mrf.mxu1  ;;  %2540 = vmatmul.mubr.bf16.gmra.mxu1 %v6601_v47  ;;  %v8223_v31 = vpop.f32.mrf.mxu0 }
 0x1d6   : > { %v1583_v45 = vadd.f32 %v1582_v14, %v7988_v7  ;;  %2547 = vmatprep.mubr.bf16.mxu1 %v6609_v38 }
 0x1d7   : > { %v1584_v55 = vpop.f32.mrf.mxu1  ;;  %v6081_v59 = vpop.f32.mrf.mxu0 }
 0x1d8   : > { %v8227_v63 = vadd.f32 %v8089_v42, %v1583_v45  ;;  %v6613_v55 = vld [vmem:[%s9462_s2 + $0x208] ss:$20 sps:$4 sm:$0xff]  }
 0x1d9   : > { %v1585_v18 = vpop.f32.mrf.mxu1  ;;  %v8232_v41 = vpop.f32.mrf.mxu0 }
 0x1da   : > { %v1586_v26 = vadd.f32 %v1585_v18, %v7995_v12  ;;  %v6621_v18 = vld [vmem:[%s9462_s2 + $0x234] ss:$20 sps:$4 sm:$0xff]  }
 0x1db   : > { %v1587_v7 = vpop.f32.mrf.mxu1  ;;  %v6082_v47 = vpop.f32.mrf.mxu0 }
 0x1dc   : > { %v8239_v3 = vadd.f32 %v8096_v53, %v1586_v26 }
 0x1dd   : > { %v1590_v42 = vpop.f32.mrf.mxu1  ;;  %2548 = vmatmul.mubr.bf16.gmra.mxu1 %v6607_v2  ;;  %v8241_v38 = vpop.f32.mrf.mxu0 }
 0x1de   : > { %v1591_v58 = vadd.f32 %v1590_v42, %v7909_v17  ;;  %2555 = vmatprep.mubr.bf16.mxu1 %v6615_v34 }
 0x1df   : > { %v1592_v23 = vpop.f32.mrf.mxu1  ;;  %v6085_v14 = vpop.f32.mrf.mxu0 }
 0x1e0   : > { %v8245_v12 = vadd.f32 %v8109_v5, %v1591_v58  ;;  %v6619_v23 = vld [vmem:[%s9462_s2 + $0x230] ss:$20 sps:$4 sm:$0xff]  }
 0x1e1   : > { %v1593_v45 = vpop.f32.mrf.mxu1  ;;  %v8250_v59 = vpop.f32.mrf.mxu0 }
 0x1e2   : > { %v1594_v53 = vadd.f32 %v1593_v45, %v7913_v21  ;;  %v6627_v45 = vld [vmem:[%s9462_s2 + $0x25c] ss:$20 sps:$4 sm:$0xff]  }
 0x1e3   : > { %v1595_v17 = vpop.f32.mrf.mxu1  ;;  %v6086_v2 = vpop.f32.mrf.mxu0 }
 0x1e4   : > { %v8257_v26 = vadd.f32 %v8116_v16, %v1594_v53 }
 0x1e5   : > { %v1598_v5 = vpop.f32.mrf.mxu1  ;;  %2556 = vmatmul.mubr.bf16.gmra.mxu1 %v6613_v55  ;;  %v8259_v34 = vpop.f32.mrf.mxu0 }
 0x1e6   : > { %v1599_v7 = vadd.f32 %v1598_v5, %v7929_v32  ;;  %2563 = vmatprep.mubr.bf16.mxu1 %v6621_v18 }
 0x1e7   : > { %v1600_v47 = vpop.f32.mrf.mxu1  ;;  %v6089_v42 = vpop.f32.mrf.mxu0 }
 0x1e8   : > { %v8263_v21 = vadd.f32 %v8129_v43, %v1599_v7 }
 0x1e9   : > { %v1601_v58 = vpop.f32.mrf.mxu1  ;;  %v8268_v14 = vpop.f32.mrf.mxu0 }
 0x1ea   : > { %v1602_v16 = vadd.f32 %v1601_v58, %v7933_v36  ;;  %v1948_v36 = vld [vmem:[%s9462_s2 + $0x280] sm:$0x11] }
 0x1eb   : > { %v1603_v32 = vpop.f32.mrf.mxu1  ;;  %v6090_v55 = vpop.f32.mrf.mxu0 }
 0x1ec   : > { %v8275_v53 = vadd.f32 %v8134_v60, %v1602_v16  ;;  %v6625_v60 = vld [vmem:[%s9462_s2 + $0x258] ss:$20 sps:$4 sm:$0xff]  }
 0x1ed   : > { %v1606_v43 = vpop.f32.mrf.mxu1  ;;  %2564 = vmatmul.mubr.bf16.gmra.mxu1 %v6619_v23  ;;  %v8277_v18 = vpop.f32.mrf.mxu0 }
 0x1ee   : > { %v1607_v17 = vadd.f32 %v1606_v43, %v7949_v44  ;;  %2571 = vmatprep.mubr.bf16.mxu1 %v6627_v45  ;;  %v5732_v44 = vcombine.high %v1948_v36, %v1948_v36 }
 0x1ef   : > { %v1608_v2 = vpop.f32.mrf.mxu1  ;;  %v6093_v5 = vpop.f32.mrf.mxu0 }
 0x1f0   : > { %v8284_v7 = vadd.f32 %v8145_v30, %v1607_v17 }
 0x1f1   : > { %v1609_v47 = vpop.f32.mrf.mxu1  ;;  %v8289_v42 = vpop.f32.mrf.mxu0 }
 0x1f2   : > { %v1610_v58 = vadd.f32 %v1609_v47, %v7956_v49  ;;  %v5731_v49 = vcombine.low %v1948_v36, %v1948_v36 }
 0x1f3   : > { %v1611_v23 = vpop.f32.mrf.mxu1  ;;  %v6094_v16 = vpop.f32.mrf.mxu0 }
 0x1f4   : > { %v8293_v45 = vadd.f32 %v8157_v9, %v1610_v58 }
 0x1f5   : > { %v1614_v32 = vpop.f32.mrf.mxu1  ;;  %2572 = vmatmul.mubr.bf16.gmra.mxu1 %v6625_v60  ;;  %v8295_v55 = vpop.f32.mrf.mxu0 }
 0x1f6   : > { %v1615_v30 = vadd.f32 %v1614_v32, %v7969_v57  ;;  %2579 = vmatprep.mubr.bf16.mxu1 %v5732_v44  ;;  %v9475_v32 = vmov 0.0  }
 0x1f7   : > { %v1616_v43 = vpop.f32.mrf.mxu1  ;;  %v6097_v17 = vpop.f32.mrf.mxu0 }
 0x1f8   : > { %v8299_v2 = vadd.f32 %v8169_v35, %v1615_v30 }
 0x1f9   : > { %v1617_v5 = vpop.f32.mrf.mxu1  ;;  %v8301_v47 = vpop.f32.mrf.mxu0 }
 0x1fa   : > { %v1618_v23 = vadd.f32 %v1617_v5, %v7973_v61 }
 0x1fb   : > { %v1619_v9 = vpop.f32.mrf.mxu1  ;;  %v6098_v58 = vpop.f32.mrf.mxu0 }
 0x1fc   : > { %v8305_v60 = vadd.f32 %v8178_v62, %v1618_v23  ;;  %v6635_v62 = vld [vmem:[%s9462_s2 + $0x10] ss:$20 sps:$4 sm:$0xff]  }
 0x1fd   : > { %v1622_v16 = vpop.f32.mrf.mxu1  ;;  %2580 = vmatmul.mubr.bf16.gmra.mxu1 %v5731_v49  ;;  %v8307_v57 = vpop.f32.mrf.mxu0 }
 0x1fe   : > { %9474 = vst [vmem:[#allocation7_spill] sm:$0xff] %v8305_v60  ;;  %v1623_v44 = vadd.f32 %v1622_v16, %v7986_v6  ;;  %6105 = vmatprep.mubr.msk.bf16.mxu1 %vm7148_vm1, %v9475_v32 }
 0x1ff   : > { %v1624_v35 = vpop.f32.mrf.mxu1  ;;  %v6101_v36 = vpop.f32.mrf.mxu0 }
 0x200   : > { %v8313_v30 = vadd.f32 %v8187_v15, %v1623_v44 }
 0x201   : > { %v1625_v61 = vpop.f32.mrf.mxu1  ;;  %v1849_v43 = vpop.f32.mrf.mxu0 }
 0x202   : > { %9476 = vst [vmem:[#allocation8_spill] sm:$0xff] %v8313_v30  ;;  %v1626_v17 = vadd.f32 %v1625_v61, %v7990_v10 }
 0x203   : > { %v1627_v5 = vpop.f32.mrf.mxu1  ;;  %v6102_v49 = vpop.f32.mrf.mxu0 }
 0x204   : > { %v8320_v6 = vadd.f32 %v8196_v48, %v1626_v17  ;;  %v6636_v48 = vld [vmem:[%s9462_s2 + $0x38] ss:$20 sps:$4 sm:$0xff]  }
 0x205   : > { %v1630_v23 = vpop.f32.mrf.mxu1  ;;  %6106 = vmatmul.mubr.msk.bf16.vlgmr.msra.gmra.mxu1 %vm1290_vm2, %v6635_v62  ;;  %v8323_v9 = vpop.f32.mrf.mxu0 }
 0x206   : > { %9477 = vst [vmem:[#allocation9_spill] sm:$0xff] %v8320_v6  ;;  %v1631_v15 = vadd.f32 %v1630_v23, %v8006_v20  ;;  %6109 = vmatprep.mubr.msk.bf16.mxu1 %vm7148_vm1, %v9475_v32 }
 0x207   : > { %v1632_v58 = vpop.f32.mrf.mxu1  ;;  %v2623_v16 = vpop.f32.mrf.mxu0 }
 0x208   : > { %v8329_v44 = vadd.f32 %v8205_v33, %v1631_v15 }
 0x209   : > { %v1633_v10 = vpop.f32.mrf.mxu1  ;;  %v8334_v35 = vpop.f32.mrf.mxu0 }
 0x20a   : > { %9478 = vst [vmem:[#allocation10_spill] sm:$0xff] %v8329_v44  ;;  %v1634_v36 = vadd.f32 %v1633_v10, %v8011_v29 }
 0x20b   : > { %v1635_v61 = vpop.f32.mrf.mxu1  ;;  %v2626_v62 = vpop.f32.mrf.mxu0 }
 0x20c   : > { %v8338_v20 = vadd.f32 %v8214_v28, %v1634_v36  ;;  %v6637_v28 = vld [vmem:[%s9462_s2 + $0x60] ss:$20 sps:$4 sm:$0xff]  }
 0x20d   : > { %v1638_v43 = vpop.f32.mrf.mxu1  ;;  %6110 = vmatmul.mubr.msk.bf16.gmra.mxu1 %vm1290_vm2, %v6636_v48  ;;  %v8341_v17 = vpop.f32.mrf.mxu0 }
 0x20e   : > { %9479 = vst [vmem:[#allocation11_spill] sm:$0xff] %v8338_v20  ;;  %v1639_v33 = vadd.f32 %v1638_v43, %v8027_v40  ;;  %6113 = vmatprep.mubr.msk.bf16.mxu1 %vm7148_vm1, %v9475_v32 }
 0x20f   : > { %v1640_v5 = vpop.f32.mrf.mxu1  ;;  %v2631_v49 = vpop.f32.mrf.mxu0 }
 0x210   : > { %v8347_v23 = vadd.f32 %v8223_v31, %v1639_v33 }
 0x211   : > { %v1641_v29 = vpop.f32.mrf.mxu1  ;;  %v8352_v15 = vpop.f32.mrf.mxu0 }
 0x212   : > { %9480 = vst [vmem:[#allocation12_spill] sm:$0xff] %v8347_v23  ;;  %v1642_v58 = vadd.f32 %v1641_v29, %v8031_v46 }
 0x213   : > { %v1643_v16 = vpop.f32.mrf.mxu1  ;;  %v2634_v10 = vpop.f32.mrf.mxu0 }
 0x214   : > { %v8356_v40 = vadd.f32 %v8232_v41, %v1642_v58  ;;  %v6638_v41 = vld [vmem:[%s9462_s2 + $0x88] ss:$20 sps:$4 sm:$0xff]  }
 0x215   : > { %v1646_v48 = vpop.f32.mrf.mxu1  ;;  %6114 = vmatmul.mubr.msk.bf16.gmra.mxu1 %vm1290_vm2, %v6637_v28  ;;  %v8359_v36 = vpop.f32.mrf.mxu0 }
 0x216   : > { %9481 = vst [vmem:[#allocation13_spill] sm:$0xff] %v8356_v40  ;;  %v1647_v31 = vadd.f32 %v1646_v48, %v8047_v56  ;;  %6117 = vmatprep.mubr.msk.bf16.mxu1 %vm7148_vm1, %v9475_v32 }
 0x217   : > { %v1648_v61 = vpop.f32.mrf.mxu1  ;;  %v2639_v62 = vpop.f32.mrf.mxu0 }
 0x218   : > { %v8365_v43 = vadd.f32 %v8241_v38, %v1647_v31 }
 0x219   : > { %v1649_v46 = vpop.f32.mrf.mxu1  ;;  %v8370_v33 = vpop.f32.mrf.mxu0 }
 0x21a   : > { %9482 = vst [vmem:[#allocation14_spill] sm:$0xff] %v8365_v43  ;;  %v1650_v5 = vadd.f32 %v1649_v46, %v8051_v0 }
 0x21b   : > { %v1651_v49 = vpop.f32.mrf.mxu1  ;;  %v2642_v29 = vpop.f32.mrf.mxu0 }
 0x21c   : > { %v8374_v56 = vadd.f32 %v8250_v59, %v1650_v5  ;;  %v6639_v59 = vld [vmem:[%s9462_s2 + $0xb0] ss:$20 sps:$4 sm:$0xff]  }
 0x21d   : > { %v1654_v28 = vpop.f32.mrf.mxu1  ;;  %6118 = vmatmul.mubr.msk.bf16.gmra.mxu1 %vm1290_vm2, %v6638_v41  ;;  %v8377_v58 = vpop.f32.mrf.mxu0 }
 0x21e   : > { %9483 = vst [vmem:[#allocation15_spill] sm:$0xff] %v8374_v56  ;;  %v1655_v38 = vadd.f32 %v1654_v28, %v8067_v13  ;;  %6121 = vmatprep.mubr.msk.bf16.mxu1 %vm7148_vm1, %v9475_v32 }
 0x21f   : > { %v1656_v16 = vpop.f32.mrf.mxu1  ;;  %v2647_v10 = vpop.f32.mrf.mxu0 }
 0x220   : > { %v8383_v48 = vadd.f32 %v8259_v34, %v1655_v38 }
 0x221   : > { %v1657_v0 = vpop.f32.mrf.mxu1  ;;  %v8388_v31 = vpop.f32.mrf.mxu0 }
 0x222   : > { %9484 = vst [vmem:[#allocation16_spill] sm:$0xff] %v8383_v48  ;;  %v1658_v61 = vadd.f32 %v1657_v0, %v8071_v19 }
 0x223   : > { %v1659_v62 = vpop.f32.mrf.mxu1  ;;  %v2650_v46 = vpop.f32.mrf.mxu0 }
 0x224   : > { %v8392_v13 = vadd.f32 %v8268_v14, %v1658_v61  ;;  %v6640_v14 = vld [vmem:[%s9462_s2 + $0xd8] ss:$20 sps:$4 sm:$0xff]  }
 0x225   : > { %v1662_v41 = vpop.f32.mrf.mxu1  ;;  %6122 = vmatmul.mubr.msk.bf16.gmra.mxu1 %vm1290_vm2, %v6639_v59  ;;  %v8395_v5 = vpop.f32.mrf.mxu0 }
 0x226   : > { %9485 = vst [vmem:[#allocation17_spill] sm:$0xff] %v8392_v13  ;;  %v1663_v34 = vadd.f32 %v1662_v41, %v8087_v39  ;;  %6125 = vmatprep.mubr.msk.bf16.mxu1 %vm7148_vm1, %v9475_v32 }
 0x227   : > { %v1664_v49 = vpop.f32.mrf.mxu1  ;;  %v2655_v29 = vpop.f32.mrf.mxu0 }
 0x228   : > { %v8401_v28 = vadd.f32 %v8277_v18, %v1663_v34 }
 0x229   : > { %v1665_v19 = vpop.f32.mrf.mxu1  ;;  %v8406_v38 = vpop.f32.mrf.mxu0 }
 0x22a   : > { %9486 = vst [vmem:[#allocation18_spill] sm:$0xff] %v8401_v28  ;;  %v1666_v16 = vadd.f32 %v1665_v19, %v8091_v50 }
 0x22b   : > { %v1667_v10 = vpop.f32.mrf.mxu1  ;;  %v2658_v0 = vpop.f32.mrf.mxu0 }
 0x22c   : > { %v8410_v39 = vadd.f32 %v8289_v42, %v1666_v16  ;;  %v6641_v42 = vld [vmem:[%s9462_s2 + $0x100] ss:$20 sps:$4 sm:$0xff]  }
 0x22d   : > { %v1670_v59 = vpop.f32.mrf.mxu1  ;;  %6126 = vmatmul.mubr.msk.bf16.gmra.mxu1 %vm1290_vm2, %v6640_v14  ;;  %v8413_v61 = vpop.f32.mrf.mxu0 }
 0x22e   : > { %9487 = vst [vmem:[#allocation19_spill] sm:$0xff] %v8410_v39  ;;  %v1671_v18 = vadd.f32 %v1670_v59, %v8107_v4  ;;  %6129 = vmatprep.mubr.msk.bf16.mxu1 %vm7148_vm1, %v9475_v32 }
 0x22f   : > { %v1672_v62 = vpop.f32.mrf.mxu1  ;;  %v2663_v46 = vpop.f32.mrf.mxu0 }
 0x230   : > { %v8419_v41 = vadd.f32 %v8295_v55, %v1671_v18 }
 0x231   : > { %v1673_v50 = vpop.f32.mrf.mxu1  ;;  %v8424_v34 = vpop.f32.mrf.mxu0 }
 0x232   : > { %9488 = vst [vmem:[#allocation20_spill] sm:$0xff] %v8419_v41  ;;  %v1674_v49 = vadd.f32 %v1673_v50, %v8111_v11 }
 0x233   : > { %v1675_v29 = vpop.f32.mrf.mxu1  ;;  %v2666_v19 = vpop.f32.mrf.mxu0 }
 0x234   : > { %v8428_v4 = vadd.f32 %v8301_v47, %v1674_v49  ;;  %v6642_v47 = vld [vmem:[%s9462_s2 + $0x128] ss:$20 sps:$4 sm:$0xff]   ;;  %v6643_v19 = vld [vmem:[%s9462_s2 + $0x150] ss:$20 sps:$4 sm:$0xff]  }
 0x235   : > { %v1678_v14 = vpop.f32.mrf.mxu1  ;;  %6130 = vmatmul.mubr.msk.bf16.gmra.mxu1 %vm1290_vm2, %v6641_v42  ;;  %v8431_v16 = vpop.f32.mrf.mxu0 }
 0x236   : > { %9489 = vst [vmem:[#allocation21_spill] sm:$0xff] %v8428_v4  ;;  %v1679_v55 = vadd.f32 %v1678_v14, %v8127_v37  ;;  %6133 = vmatprep.mubr.msk.bf16.mxu1 %vm7148_vm1, %v9475_v32 }
 0x237   : > { %v1680_v10 = vpop.f32.mrf.mxu1  ;;  %v2671_v0 = vpop.f32.mrf.mxu0 }
 0x238   : > { %v8437_v59 = vadd.f32 %v8307_v57, %v1679_v55 }
 0x239   : > { %v1681_v11 = vpop.f32.mrf.mxu1  ;;  %v8442_v18 = vpop.f32.mrf.mxu0 }
 0x23a   : > { %9490 = vst [vmem:[#allocation22_spill] sm:$0xff] %v8437_v59 }
 0x23b   : > { %v1682_v62 = vpop.f32.mrf.mxu1  ;;  %v2674_v46 = vpop.f32.mrf.mxu0 }
 0x23d   : > { %v2453_v50 = vpop.f32.mrf.mxu1  ;;  %6134 = vmatmul.mubr.msk.bf16.gmra.mxu1 %vm1290_vm2, %v6642_v47  ;;  %v8445_v37 = vpop.f32.mrf.mxu0 }
 0x23e   : > { %v8448_v42 = vadd.f32 %v8323_v9, %v2453_v50  ;;  %6137 = vmatprep.mubr.msk.bf16.mxu1 %vm7148_vm1, %v9475_v32 }
 0x23f   : > { %v2455_v57 = vpop.f32.mrf.mxu1  ;;  %v2679_v49 = vpop.f32.mrf.mxu0 }
 0x241   : > { %v2456_v29 = vpop.f32.mrf.mxu1  ;;  %v8455_v14 = vpop.f32.mrf.mxu0 }
 0x242   : > { %v8458_v55 = vadd.f32 %v8334_v35, %v2456_v29  ;;  %v6644_v35 = vld [vmem:[%s9462_s2 + $0x178] ss:$20 sps:$4 sm:$0xff]  }
 0x243   : > { %v2458_v10 = vpop.f32.mrf.mxu1  ;;  %v2682_v0 = vpop.f32.mrf.mxu0 }
 0x245   : > { %v2461_v11 = vpop.f32.mrf.mxu1  ;;  %6138 = vmatmul.mubr.msk.bf16.gmra.mxu1 %vm1290_vm2, %v6643_v19  ;;  %v8461_v9 = vpop.f32.mrf.mxu0 }
 0x246   : > { %v8464_v47 = vadd.f32 %v8341_v17, %v2461_v11  ;;  %6141 = vmatprep.mubr.msk.bf16.mxu1 %vm7148_vm1, %v9475_v32 }
 0x247   : > { %v2463_v62 = vpop.f32.mrf.mxu1  ;;  %v2687_v46 = vpop.f32.mrf.mxu0 }
 0x249   : > { %v2464_v50 = vpop.f32.mrf.mxu1  ;;  %v8471_v57 = vpop.f32.mrf.mxu0 }
 0x24a   : > { %v8474_v49 = vadd.f32 %v8352_v15, %v2464_v50  ;;  %v6645_v15 = vld [vmem:[%s9462_s2 + $0x1a0] ss:$20 sps:$4 sm:$0xff]  }
 0x24b   : > { %v2466_v29 = vpop.f32.mrf.mxu1  ;;  %v2690_v19 = vpop.f32.mrf.mxu0 }
 0x24d   : > { %v2469_v10 = vpop.f32.mrf.mxu1  ;;  %6142 = vmatmul.mubr.msk.bf16.gmra.mxu1 %vm1290_vm2, %v6644_v35  ;;  %v8477_v17 = vpop.f32.mrf.mxu0 }
 0x24e   : > { %v8480_v0 = vadd.f32 %v8359_v36, %v2469_v10  ;;  %6145 = vmatprep.mubr.msk.bf16.mxu1 %vm7148_vm1, %v9475_v32 }
 0x24f   : > { %v2471_v11 = vpop.f32.mrf.mxu1  ;;  %v2695_v62 = vpop.f32.mrf.mxu0 }
 0x251   : > { %v2472_v46 = vpop.f32.mrf.mxu1  ;;  %v8487_v50 = vpop.f32.mrf.mxu0 }
 0x252   : > { %v8490_v29 = vadd.f32 %v8370_v33, %v2472_v46  ;;  %v6646_v33 = vld [vmem:[%s9462_s2 + $0x1c8] ss:$20 sps:$4 sm:$0xff]  }
 0x253   : > { %v2474_v35 = vpop.f32.mrf.mxu1  ;;  %v2698_v19 = vpop.f32.mrf.mxu0 }
 0x255   : > { %v2477_v25 = vpop.f32.mrf.mxu1  ;;  %6146 = vmatmul.mubr.msk.bf16.gmra.mxu1 %vm1290_vm2, %v6645_v15  ;;  %v8493_v36 = vpop.f32.mrf.mxu0 }
 0x256   : > { %v8496_v10 = vadd.f32 %v8377_v58, %v2477_v25  ;;  %6149 = vmatprep.mubr.msk.bf16.mxu1 %vm7148_vm1, %v9475_v32 }
 0x257   : > { %v2479_v11 = vpop.f32.mrf.mxu1  ;;  %v2703_v62 = vpop.f32.mrf.mxu0 }
 0x259   : > { %v2480_v59 = vpop.f32.mrf.mxu1  ;;  %v8503_v46 = vpop.f32.mrf.mxu0 }
 0x25a   : > { %v8506_v35 = vadd.f32 %v8388_v31, %v2480_v59  ;;  %v6647_v31 = vld [vmem:[%s9462_s2 + $0x1f0] ss:$20 sps:$4 sm:$0xff]  }
 0x25b   : > { %v2482_v15 = vpop.f32.mrf.mxu1  ;;  %v2706_v19 = vpop.f32.mrf.mxu0 }
 0x25d   : > { %v2485_v4 = vpop.f32.mrf.mxu1  ;;  %6150 = vmatmul.mubr.msk.bf16.gmra.mxu1 %vm1290_vm2, %v6646_v33  ;;  %v8509_v25 = vpop.f32.mrf.mxu0 }
 0x25e   : > { %v8512_v58 = vadd.f32 %v8395_v5, %v2485_v4  ;;  %6153 = vmatprep.mubr.msk.bf16.mxu1 %vm7148_vm1, %v9475_v32 }
 0x25f   : > { %v2487_v11 = vpop.f32.mrf.mxu1  ;;  %v2711_v62 = vpop.f32.mrf.mxu0 }
 0x261   : > { %v2488_v41 = vpop.f32.mrf.mxu1  ;;  %v8519_v59 = vpop.f32.mrf.mxu0 }
 0x262   : > { %v8522_v15 = vadd.f32 %v8406_v38, %v2488_v41  ;;  %v6648_v38 = vld [vmem:[%s9462_s2 + $0x218] ss:$20 sps:$4 sm:$0xff]  }
 0x263   : > { %v2490_v33 = vpop.f32.mrf.mxu1  ;;  %v2714_v19 = vpop.f32.mrf.mxu0 }
 0x265   : > { %v2493_v39 = vpop.f32.mrf.mxu1  ;;  %6154 = vmatmul.mubr.msk.bf16.gmra.mxu1 %vm1290_vm2, %v6647_v31  ;;  %v8525_v5 = vpop.f32.mrf.mxu0 }
 0x266   : > { %v8528_v4 = vadd.f32 %v8413_v61, %v2493_v39  ;;  %6157 = vmatprep.mubr.msk.bf16.mxu1 %vm7148_vm1, %v9475_v32 }
 0x267   : > { %v2495_v11 = vpop.f32.mrf.mxu1  ;;  %v2719_v62 = vpop.f32.mrf.mxu0 }
 0x269   : > { %v2496_v28 = vpop.f32.mrf.mxu1  ;;  %v8535_v41 = vpop.f32.mrf.mxu0 }
 0x26a   : > { %v8538_v33 = vadd.f32 %v8424_v34, %v2496_v28  ;;  %v6649_v28 = vld [vmem:[%s9462_s2 + $0x240] ss:$20 sps:$4 sm:$0xff]  }
 0x26b   : > { %v2498_v31 = vpop.f32.mrf.mxu1  ;;  %v2722_v19 = vpop.f32.mrf.mxu0 }
 0x26d   : > { %v2501_v13 = vpop.f32.mrf.mxu1  ;;  %6158 = vmatmul.mubr.msk.bf16.gmra.mxu1 %vm1290_vm2, %v6648_v38  ;;  %v8541_v39 = vpop.f32.mrf.mxu0 }
 0x26e   : > { %v8544_v61 = vadd.f32 %v8431_v16, %v2501_v13  ;;  %6161 = vmatprep.mubr.msk.bf16.mxu1 %vm7148_vm1, %v9475_v32 }
 0x26f   : > { %v2503_v11 = vpop.f32.mrf.mxu1  ;;  %v2727_v62 = vpop.f32.mrf.mxu0 }
 0x271   : > { %v2504_v48 = vpop.f32.mrf.mxu1  ;;  %v8551_v34 = vpop.f32.mrf.mxu0 }
 0x272   : > { %v8554_v31 = vadd.f32 %v8442_v18, %v2504_v48  ;;  %v6650_v48 = vld [vmem:[%s9462_s2 + $0x268] ss:$20 sps:$4 sm:$0xff]  }
 0x273   : > { %v2506_v38 = vpop.f32.mrf.mxu1  ;;  %v2730_v19 = vpop.f32.mrf.mxu0 }
 0x275   : > { %v2509_v56 = vpop.f32.mrf.mxu1  ;;  %6162 = vmatmul.mubr.msk.bf16.gmra.mxu1 %vm1290_vm2, %v6649_v28  ;;  %v2733_v13 = vpop.f32.mrf.mxu0 }
 0x276   : > { %v8558_v16 = vadd.f32 %v8445_v37, %v2509_v56  ;;  %6165 = vmatprep.mubr.msk.bf16.mxu1 %vm7148_vm1, %v9475_v32 }
 0x277   : > { %v2511_v11 = vpop.f32.mrf.mxu1  ;;  %v2735_v62 = vpop.f32.mrf.mxu0 }
 0x279   : > { %v2512_v43 = vpop.f32.mrf.mxu1  ;;  %v2736_v18 = vpop.f32.mrf.mxu0 }
 0x27a   : > { %v8566_v38 = vadd.f32 %v8455_v14, %v2512_v43  ;;  %v6651_v43 = vld [vmem:[%s9462_s2 + $0x290] ss:$0 sps:$4 sm:$0x11]  }
 0x27b   : > { %v2514_v19 = vpop.f32.mrf.mxu1  ;;  %v2738_v28 = vpop.f32.mrf.mxu0 }
 0x27d   : > { %v2517_v40 = vpop.f32.mrf.mxu1  ;;  %6166 = vmatmul.mubr.msk.bf16.gmra.mxu1 %vm1290_vm2, %v6650_v48  ;;  %v2741_v56 = vpop.f32.mrf.mxu0 }
 0x27e   : > { %v8570_v37 = vadd.f32 %v8461_v9, %v2517_v40  ;;  %6169 = vmatprep.mubr.msk.bf16.mxu1 %vm7148_vm1, %v9475_v32 }
 0x27f   : > { %v2519_v11 = vpop.f32.mrf.mxu1  ;;  %v2743_v62 = vpop.f32.mrf.mxu0 }
 0x281   : > { %v2520_v23 = vpop.f32.mrf.mxu1  ;;  %v2744_v14 = vpop.f32.mrf.mxu0 }
 0x282   : > { %v8578_v19 = vadd.f32 %v8471_v57, %v2520_v23 }
 0x283   : > { %v2522_v28 = vpop.f32.mrf.mxu1  ;;  %v2746_v48 = vpop.f32.mrf.mxu0 }
 0x285   : > { %v2525_v20 = vpop.f32.mrf.mxu1  ;;  %6170 = vmatmul.mubr.msk.bf16.gmra.mxu1 %vm1290_vm2, %v6651_v43  ;;  %v2749_v40 = vpop.f32.mrf.mxu0 }
 0x286   : > { %v8582_v9 = vadd.f32 %v8477_v17, %v2525_v20 }
 0x287   : > { %v2527_v32 = vpop.f32.mrf.mxu1  ;;  %v2751_v11 = vpop.f32.mrf.mxu0 }
 0x289   : > { %v2528_v62 = vpop.f32.mrf.mxu1  ;;  %v2752_v44 = vpop.f32.mrf.mxu0 }
 0x28a   : > { %v8585_v6 = vadd.f32 %v8487_v50, %v2528_v62 }
 0x28b   : > { %v2530_v30 = vpop.f32.mrf.mxu1  ;;  %v2753_v60 = vpop.f32.mrf.mxu0 }
 0x28d   : > { %v2533_v23 = vpop.f32.mrf.mxu1 }
 0x28e   : > { %v8588_v57 = vadd.f32 %v8493_v36, %v2533_v23 }
 0x28f   : > { %v2535_v28 = vpop.f32.mrf.mxu1 }
 0x291   : > { %v2536_v48 = vpop.f32.mrf.mxu1 }
 0x292   : > { %v8591_v43 = vadd.f32 %v8503_v46, %v2536_v48 }
 0x293   : > { %v2538_v20 = vpop.f32.mrf.mxu1 }
 0x295   : > { %v2541_v17 = vpop.f32.mrf.mxu1 }
 0x296   : > { %v8594_v32 = vadd.f32 %v8509_v25, %v2541_v17 }
 0x297   : > { %v2543_v44 = vpop.f32.mrf.mxu1 }
 0x299   : > { %v2544_v11 = vpop.f32.mrf.mxu1 }
 0x29a   : > { %v8597_v50 = vadd.f32 %v8519_v59, %v2544_v11 }
 0x29b   : > { %v2546_v60 = vpop.f32.mrf.mxu1 }
 0x29d   : > { %v2549_v30 = vpop.f32.mrf.mxu1 }
 0x29e   : > { %v8600_v36 = vadd.f32 %v8525_v5, %v2549_v30 }
 0x29f   : > { %v2551_v62 = vpop.f32.mrf.mxu1 }
 0x2a1   : > { %v2552_v23 = vpop.f32.mrf.mxu1 }
 0x2a2   : > { %v8603_v46 = vadd.f32 %v8535_v41, %v2552_v23 }
 0x2a3   : > { %v2554_v28 = vpop.f32.mrf.mxu1 }
 0x2a4   : > { %9491 = vst [vmem:[#allocation23_spill] sm:$0xff] %v8603_v46 }
 0x2a5   : > { %v2557_v48 = vpop.f32.mrf.mxu1 }
 0x2a6   : > { %v8606_v25 = vadd.f32 %v8541_v39, %v2557_v48 }
 0x2a7   : > { %v2559_v20 = vpop.f32.mrf.mxu1 }
 0x2a8   : > { %9492 = vst [vmem:[#allocation24_spill] sm:$0xff] %v8606_v25 }
 0x2a9   : > { %v2560_v17 = vpop.f32.mrf.mxu1 }
 0x2aa   : > { %v8609_v59 = vadd.f32 %v8551_v34, %v2560_v17 }
 0x2ab   : > { %v2562_v44 = vpop.f32.mrf.mxu1 }
 0x2ad   : > { %v2565_v11 = vpop.f32.mrf.mxu1 }
 0x2ae   : > { %v8611_v60 = vadd.f32 %v2733_v13, %v2565_v11 }
 0x2af   : > { %v2567_v5 = vpop.f32.mrf.mxu1 }
 0x2b1   : > { %v2568_v30 = vpop.f32.mrf.mxu1 }
 0x2b2   : > { %v8613_v62 = vadd.f32 %v2736_v18, %v2568_v30  ;;  %v2923_v30 = vmul.f32 %v8152_v52, %v8152_v52  ;;  %v2925_v52 = vmul.f32 %v8173_v1, %v8173_v1 }
 0x2b3   : > { %v2570_v41 = vpop.f32.mrf.mxu1 }
 0x2b5   : > { %v2573_v23 = vpop.f32.mrf.mxu1 }
 0x2b6   : > { %v8615_v28 = vadd.f32 %v2741_v56, %v2573_v23 }
 0x2b7   : > { %v2575_v46 = vpop.f32.mrf.mxu1 }
 0x2b9   : > { %v2576_v39 = vpop.f32.mrf.mxu1 }
 0x2ba   : > { %v8617_v48 = vadd.f32 %v2744_v14, %v2576_v39 }
 0x2bb   : > { %v2578_v20 = vpop.f32.mrf.mxu1 }
 0x2bd   : > { %v2581_v25 = vpop.f32.mrf.mxu1 }
 0x2be   : > { %v8619_v34 = vadd.f32 %v2749_v40, %v2581_v25  ;;  %v2924_v40 = vmul.f32 %v8167_v24, %v8167_v24 }
 0x2bf   : > { %v2583_v17 = vpop.f32.mrf.mxu1 }
 0x2c1   : > { %v2584_v44 = vpop.f32.mrf.mxu1 }
 0x2c3   : > { %v2585_v13 = vpop.f32.mrf.mxu1 }
 0x2c5   : > { %v2789_v11 = vpop.f32.mrf.mxu1 }
 0x2c6   : > { %v2790_v5 = vadd.f32 %v2789_v11, %v8448_v42 }
 0x2c7   : > { %v6107_v18 = vpop.f32.mrf.mxu1 }
 0x2c8   : > { %v2956_v56 = vmul.f32 %v2790_v5, %v2790_v5  ;;  %v2926_v18 = vmul.f32 %v8185_v8, %v8185_v8 }
 0x2c9   : > { %v2792_v41 = vpop.f32.mrf.mxu1 }
 0x2ca   : > { %v8624_v46 = vadd.f32 %v2956_v56, %v2923_v30  ;;  %v2793_v14 = vadd.f32 %v2792_v41, %v8458_v55 }
 0x2cb   : > { %v6108_v23 = vpop.f32.mrf.mxu1 }
 0x2cc   : > { %v2957_v25 = vmul.f32 %v2793_v14, %v2793_v14  ;;  %v2927_v14 = vmul.f32 %v8191_v27, %v8191_v27 }
 0x2cd   : > { %v2797_v39 = vpop.f32.mrf.mxu1 }
 0x2ce   : > { %v8629_v20 = vadd.f32 %v2957_v25, %v2924_v40  ;;  %v2798_v42 = vadd.f32 %v2797_v39, %v8464_v47 }
 0x2cf   : > { %v6111_v17 = vpop.f32.mrf.mxu1 }
 0x2d0   : > { %v3214_v44 = vpack.c.bf16 %v8629_v20, %v8624_v46  ;;  %v2958_v13 = vmul.f32 %v2798_v42, %v2798_v42  ;;  %v2928_v42 = vmul.f32 %v8203_v22, %v8203_v22 }
 0x2d1   : > { %v2800_v11 = vpop.f32.mrf.mxu1 }
 0x2d2   : > { %v8636_v55 = vadd.f32 %v2958_v13, %v2925_v52  ;;  %v2801_v5 = vadd.f32 %v2800_v11, %v8474_v49  ;;  %v2929_v11 = vmul.f32 %v8209_v51, %v8209_v51 }
 0x2d3   : > { %v6112_v24 = vpop.f32.mrf.mxu1 }
 0x2d4   : > { %v2959_v30 = vmul.f32 %v2801_v5, %v2801_v5 }
 0x2d5   : > { %v2805_v56 = vpop.f32.mrf.mxu1 }
 0x2d6   : > { %v8641_v47 = vadd.f32 %v2959_v30, %v2926_v18  ;;  %v2806_v41 = vadd.f32 %v2805_v56, %v8480_v0  ;;  %v2930_v56 = vmul.f32 %v8221_v54, %v8221_v54  ;;  %v2931_v54 = vmul.f32 %v8227_v63, %v8227_v63 }
 0x2d7   : > { %v6115_v1 = vpop.f32.mrf.mxu1 }
 0x2d8   : > { %v3215_v23 = vpack.c.bf16 %v8641_v47, %v8636_v55  ;;  %v2960_v40 = vmul.f32 %v2806_v41, %v2806_v41  ;;  %v9501_v55 = vld [vmem:[#allocation14_spill] sm:$0xff] }
 0x2d9   : > { %v2808_v25 = vpop.f32.mrf.mxu1  ;;  %v2947_v47 = vmul.f32 %v9501_v55, %v9501_v55 }
 0x2da   : > { %v8648_v49 = vadd.f32 %v2960_v40, %v2927_v14  ;;  %v2809_v39 = vadd.f32 %v2808_v25, %v8490_v29  ;;  %v6654_v40 = vld [vmem:[%s9463_s3 + $0x4] ss:$12 sps:$4 sm:$0xff]  }
 0x2db   : > { %v6116_v8 = vpop.f32.mrf.mxu1  ;;  %4130 = vmatprep.mubr.bf16.mxu0 %v6654_v40 }
 0x2dc   : > { %v2961_v17 = vmul.f32 %v2809_v39, %v2809_v39 }
 0x2dd   : > { %v2813_v52 = vpop.f32.mrf.mxu1 }
 0x2de   : > { %v8653_v0 = vadd.f32 %v2961_v17, %v2928_v42  ;;  %v2814_v13 = vadd.f32 %v2813_v52, %v8496_v10  ;;  %v6655_v10 = vld [vmem:[%s9463_s3 + $0x8] ss:$12 sps:$4 sm:$0xff]   ;;  %v2932_v52 = vmul.f32 %v8239_v3, %v8239_v3  ;;  %v2934_v3 = vmul.f32 %v8257_v26, %v8257_v26 }
 0x2df   : > { %v6119_v27 = vpop.f32.mrf.mxu1  ;;  %6175 = vmatprep.mubr.msk.bf16.mxu1 %vm1290_vm2, %v6655_v10 }
 0x2e0   : > { %v3216_v5 = vpack.c.bf16 %v8653_v0, %v8648_v49  ;;  %v2962_v24 = vmul.f32 %v2814_v13, %v2814_v13  ;;  %v9500_v49 = vld [vmem:[#allocation13_spill] sm:$0xff] }
 0x2e1   : > { %v2816_v18 = vpop.f32.mrf.mxu1  ;;  %v2946_v0 = vmul.f32 %v9500_v49, %v9500_v49 }
 0x2e2   : > { %v8660_v29 = vadd.f32 %v2962_v24, %v2929_v11  ;;  %v2817_v30 = vadd.f32 %v2816_v18, %v8506_v35  ;;  %v2933_v18 = vmul.f32 %v8245_v12, %v8245_v12  ;;  %v2935_v12 = vmul.f32 %v8263_v21, %v8263_v21 }
 0x2e3   : > { %v6120_v22 = vpop.f32.mrf.mxu1 }
 0x2e4   : > { %v2963_v41 = vmul.f32 %v2817_v30, %v2817_v30 }
 0x2e5   : > { %v2821_v1 = vpop.f32.mrf.mxu1 }
 0x2e6   : > { %v8668_v51 = vadd.f32 %v2963_v41, %v2930_v56  ;;  %v2822_v14 = vadd.f32 %v2821_v1, %v8512_v58 }
 0x2e7   : > { %v6123_v35 = vpop.f32.mrf.mxu1 }
 0x2e8   : > { %v3217_v25 = vpack.c.bf16 %v8668_v51, %v8660_v29  ;;  %v2964_v39 = vmul.f32 %v2822_v14, %v2822_v14  ;;  %v9499_v29 = vld [vmem:[#allocation12_spill] sm:$0xff] }
 0x2e9   : > { %v2824_v8 = vpop.f32.mrf.mxu1  ;;  %v2945_v51 = vmul.f32 %v9499_v29, %v9499_v29 }
 0x2ea   : > { %v8679_v42 = vadd.f32 %v2964_v39, %v2931_v54  ;;  %v2825_v58 = vadd.f32 %v2824_v8, %v8522_v15 }
 0x2eb   : > { %v6124_v17 = vpop.f32.mrf.mxu1 }
 0x2ec   : > { %v2965_v13 = vmul.f32 %v2825_v58, %v2825_v58 }
 0x2ed   : > { %v2829_v27 = vpop.f32.mrf.mxu1 }
 0x2ee   : > { %v8684_v11 = vadd.f32 %v2965_v13, %v2932_v52  ;;  %v2830_v63 = vadd.f32 %v2829_v27, %v8528_v4  ;;  %v2936_v52 = vmul.f32 %v8275_v53, %v8275_v53 }
 0x2ef   : > { %v6127_v24 = vpop.f32.mrf.mxu1 }
 0x2f0   : > { %v3218_v30 = vpack.c.bf16 %v8684_v11, %v8679_v42  ;;  %v2966_v22 = vmul.f32 %v2830_v63, %v2830_v63  ;;  %v2937_v24 = vmul.f32 %v8284_v7, %v8284_v7  ;;  %v9498_v42 = vld [vmem:[#allocation11_spill] sm:$0xff] }
 0x2f1   : > { %v2832_v56 = vpop.f32.mrf.mxu1  ;;  %v2944_v11 = vmul.f32 %v9498_v42, %v9498_v42 }
 0x2f2   : > { %v2999_v15 = vadd.f32 %v2966_v22, %v2933_v18  ;;  %v2833_v41 = vadd.f32 %v2832_v56, %v8538_v33 }
 0x2f3   : > { %v6128_v10 = vpop.f32.mrf.mxu1 }
 0x2f4   : > { %v2967_v1 = vmul.f32 %v2833_v41, %v2833_v41  ;;  %v2938_v41 = vmul.f32 %v8293_v45, %v8293_v45  ;;  %v9494_v45 = vld [vmem:[#allocation7_spill] sm:$0xff] }
 0x2f5   : > { %v2837_v14 = vpop.f32.mrf.mxu1 }
 0x2f6   : > { %v3000_v40 = vadd.f32 %v2967_v1, %v2934_v3  ;;  %v2838_v4 = vadd.f32 %v2837_v14, %v8544_v61  ;;  %v2939_v14 = vmul.f32 %v8299_v2, %v8299_v2 }
 0x2f7   : > { %v6131_v35 = vpop.f32.mrf.mxu1 }
 0x2f8   : > { %v3219_v54 = vpack.c.bf16 %v3000_v40, %v2999_v15  ;;  %v2968_v39 = vmul.f32 %v2838_v4, %v2838_v4 }
 0x2f9   : > { %v2840_v8 = vpop.f32.mrf.mxu1 }
 0x2fa   : > { %v3001_v58 = vadd.f32 %v2968_v39, %v2935_v12  ;;  %v2841_v17 = vadd.f32 %v2840_v8, %v8554_v31  ;;  %v9493_v39 = vmov 0   ;;  %v2940_v8 = vmul.f32 %v9494_v45, %v9494_v45 }
 0x2fb   : > { %v6132_v33 = vpop.f32.mrf.mxu1 }
 0x2fc   : > { %v2969_v26 = vmul.f32 %v2841_v17, %v2841_v17 }
 0x2fd   : > { %v2845_v13 = vpop.f32.mrf.mxu1 }
 0x2fe   : > { %v3002_v27 = vadd.f32 %v2969_v26, %v2936_v52  ;;  %v2846_v63 = vadd.f32 %v2845_v13, %v8558_v16  ;;  %v9495_v52 = vld [vmem:[#allocation8_spill] sm:$0xff] }
 0x2ff   : > { %v6135_v61 = vpop.f32.mrf.mxu1 }
 0x300   : > { %v3220_v21 = vpack.c.bf16 %v3002_v27, %v3001_v58  ;;  %v2970_v18 = vmul.f32 %v2846_v63, %v2846_v63 }
 0x301   : > { %v2848_v22 = vpop.f32.mrf.mxu1 }
 0x302   : > { %v3003_v56 = vadd.f32 %v2970_v18, %v2937_v24  ;;  %v2849_v15 = vadd.f32 %v2848_v22, %v8566_v38 }
 0x303   : > { %v6136_v31 = vpop.f32.mrf.mxu1 }
 0x304   : > { %v2971_v53 = vmul.f32 %v2849_v15, %v2849_v15 }
 0x305   : > { %v2853_v10 = vpop.f32.mrf.mxu1 }
 0x306   : > { %v3004_v3 = vadd.f32 %v2971_v53, %v2938_v41  ;;  %v2854_v1 = vadd.f32 %v2853_v10, %v8570_v37 }
 0x307   : > { %v6139_v16 = vpop.f32.mrf.mxu1 }
 0x308   : > { %v3221_v7 = vpack.c.bf16 %v3004_v3, %v3003_v56  ;;  %v2972_v40 = vmul.f32 %v2854_v1, %v2854_v1 }
 0x309   : > { %v2856_v4 = vpop.f32.mrf.mxu1 }
 0x30a   : > { %v8709_v35 = vadd.f32 %v2972_v40, %v2939_v14  ;;  %v2857_v38 = vadd.f32 %v2856_v4, %v8578_v19  ;;  %4099 = vmatpush1.bf16.msra.mxu0 %v3221_v7  ;;  %v2941_v19 = vmul.f32 %v9495_v52, %v9495_v52  ;;  %v9502_v52 = vld [vmem:[#allocation23_spill] sm:$0xff] }
 0x30b   : > { %v6140_v12 = vpop.f32.mrf.mxu1  ;;  %4100 = vmatprep.subr.bf16.mxu0 %v9493_v39 }
 0x30c   : > { %v2973_v58 = vmul.f32 %v2857_v38, %v2857_v38 }
 0x30d   : > { %v2861_v37 = vpop.f32.mrf.mxu1 }
 0x30e   : > { %v8715_v17 = vadd.f32 %v2973_v58, %v2940_v8  ;;  %v2862_v2 = vadd.f32 %v2861_v37, %v8582_v9  ;;  %4101 = vmatpush1.bf16.msra.mxu0 %v3220_v21  ;;  %v9496_v9 = vld [vmem:[#allocation9_spill] sm:$0xff] }
 0x30f   : > { %v6143_v33 = vpop.f32.mrf.mxu1  ;;  %4102 = vmatprep.subr.bf16.mxu0 %v9493_v39  ;;  %v2942_v21 = vmul.f32 %v9496_v9, %v9496_v9 }
 0x310   : > { %v3222_v26 = vpack.c.bf16 %v8715_v17, %v8709_v35  ;;  %v2974_v13 = vmul.f32 %v2862_v2, %v2862_v2  ;;  %v6657_v35 = vld [vmem:[%s9463_s3 + $0x18] ss:$12 sps:$4 sm:$0xff]   ;;  %v6662_v17 = vld [vmem:[%s9463_s3 + $0x34] ss:$12 sps:$4 sm:$0xff]  }
 0x311   : > { %v2864_v27 = vpop.f32.mrf.mxu1 }
 0x312   : > { %v8723_v63 = vadd.f32 %v2974_v13, %v2941_v19  ;;  %v2865_v61 = vadd.f32 %v2864_v27, %v8585_v6  ;;  %4103 = vmatpush1.bf16.msra.mxu0 %v3219_v54  ;;  %v9497_v6 = vld [vmem:[#allocation10_spill] sm:$0xff]  ;;  %v9503_v13 = vld [vmem:[#allocation15_spill] sm:$0xff] }
 0x313   : > { %v6144_v24 = vpop.f32.mrf.mxu1  ;;  %4104 = vmatprep.subr.bf16.mxu0 %v9493_v39  ;;  %v2943_v54 = vmul.f32 %v9497_v6, %v9497_v6  ;;  %v2948_v46 = vmul.f32 %v9503_v13, %v9503_v13 }
 0x314   : > { %v2975_v18 = vmul.f32 %v2865_v61, %v2865_v61  ;;  %v9504_v61 = vld [vmem:[#allocation24_spill] sm:$0xff] }
 0x315   : > { %v2869_v22 = vpop.f32.mrf.mxu1 }
 0x316   : > { %v8729_v56 = vadd.f32 %v2975_v18, %v2942_v21  ;;  %v2870_v15 = vadd.f32 %v2869_v22, %v8588_v57  ;;  %4105 = vmatpush1.bf16.msra.mxu0 %v3218_v30  ;;  %v9505_v21 = vld [vmem:[#allocation16_spill] sm:$0xff] }
 0x317   : > { %v6147_v31 = vpop.f32.mrf.mxu1  ;;  %4106 = vmatprep.subr.bf16.mxu0 %v9493_v39  ;;  %v2949_v18 = vmul.f32 %v9505_v21, %v9505_v21 }
 0x318   : > { %v3223_v41 = vpack.c.bf16 %v8729_v56, %v8723_v63  ;;  %v2976_v53 = vmul.f32 %v2870_v15, %v2870_v15  ;;  %v6687_v63 = vld [vmem:[%s9463_s3 + $0xc8] ss:$12 sps:$4 sm:$0xff]   ;;  %v6695_v56 = vld [vmem:[%s9463_s3 + $0xf8] ss:$12 sps:$4 sm:$0xff]  }
 0x319   : > { %v2872_v10 = vpop.f32.mrf.mxu1 }
 0x31a   : > { %v8740_v3 = vadd.f32 %v2976_v53, %v2943_v54  ;;  %v2873_v1 = vadd.f32 %v2872_v10, %v8591_v43  ;;  %4107 = vmatpush1.bf16.msra.mxu0 %v3217_v25  ;;  %v9506_v10 = vld [vmem:[#allocation17_spill] sm:$0xff] }
 0x31b   : > { %v6148_v57 = vpop.f32.mrf.mxu1  ;;  %4108 = vmatprep.subr.bf16.mxu0 %v9493_v39 }
 0x31c   : > { %v2977_v30 = vmul.f32 %v2873_v1, %v2873_v1  ;;  %v2950_v1 = vmul.f32 %v9506_v10, %v9506_v10  ;;  %v6671_v10 = vld [vmem:[%s9463_s3 + $0x68] ss:$12 sps:$4 sm:$0xff]  }
 0x31d   : > { %v2877_v16 = vpop.f32.mrf.mxu1 }
 0x31e   : > { %v8749_v14 = vadd.f32 %v2977_v30, %v2944_v11  ;;  %v2878_v7 = vadd.f32 %v2877_v16, %v8594_v32  ;;  %4109 = vmatpush1.bf16.msra.mxu0 %v3216_v5 }
 0x31f   : > { %v6151_v43 = vpop.f32.mrf.mxu1  ;;  %4110 = vmatprep.subr.bf16.mxu0 %v9493_v39 }
 0x320   : > { %v3224_v25 = vpack.c.bf16 %v8749_v14, %v8740_v3  ;;  %v2978_v40 = vmul.f32 %v2878_v7, %v2878_v7  ;;  %v9507_v7 = vld [vmem:[#allocation18_spill] sm:$0xff] }
 0x321   : > { %v2880_v4 = vpop.f32.mrf.mxu1  ;;  %v2951_v43 = vmul.f32 %v9507_v7, %v9507_v7  ;;  %v6652_v3 = vld [vmem:[%s9463_s3] ss:$12 sps:$4 sm:$0xff]   ;;  %v6659_v14 = vld [vmem:[%s9463_s3 + $0x1c] ss:$12 sps:$4 sm:$0xff]  }
 0x322   : > { %v8760_v38 = vadd.f32 %v2978_v40, %v2945_v51  ;;  %v2881_v12 = vadd.f32 %v2880_v4, %v8597_v50  ;;  %4111 = vmatpush1.bf16.msra.mxu0 %v3215_v23  ;;  %v6712_v7 = vld [vmem:[%s9463_s3 + $0x170] ss:$12 sps:$4 sm:$0xff]  }
 0x323   : > { %v6152_v32 = vpop.f32.mrf.mxu1  ;;  %4112 = vmatprep.subr.bf16.mxu0 %v9493_v39 }
 0x324   : > { %v2979_v5 = vmul.f32 %v2881_v12, %v2881_v12  ;;  %v9508_v32 = vld [vmem:[#allocation19_spill] sm:$0xff] }
 0x325   : > { %v2885_v45 = vpop.f32.mrf.mxu1  ;;  %v2952_v49 = vmul.f32 %v9508_v32, %v9508_v32  ;;  %v6728_v32 = vld [vmem:[%s9463_s3 + $0x1d0] ss:$12 sps:$4 sm:$0xff]  }
 0x326   : > { %v8769_v8 = vadd.f32 %v2979_v5, %v2946_v0  ;;  %v2886_v58 = vadd.f32 %v2885_v45, %v8600_v36  ;;  %4113 = vmatpush1.bf16.msra.mxu0 %v3214_v44 }
 0x327   : > { %v6155_v50 = vpop.f32.mrf.mxu1  ;;  %4114 = vmatprep.subr.bf16.mxu0 %v9493_v39 }
 0x328   : > { %v3225_v23 = vpack.c.bf16 %v8769_v8, %v8760_v38  ;;  %v2980_v37 = vmul.f32 %v2886_v58, %v2886_v58  ;;  %v9509_v50 = vld [vmem:[#allocation20_spill] sm:$0xff] }
 0x329   : > { %v2888_v2 = vpop.f32.mrf.mxu1  ;;  %v2953_v55 = vmul.f32 %v9509_v50, %v9509_v50  ;;  %v6679_v38 = vld [vmem:[%s9463_s3 + $0x98] ss:$12 sps:$4 sm:$0xff]   ;;  %v6696_v8 = vld [vmem:[%s9463_s3 + $0x110] ss:$12 sps:$4 sm:$0xff]  }
 0x32a   : > { %v8780_v33 = vadd.f32 %v2980_v37, %v2947_v47  ;;  %v2889_v19 = vadd.f32 %v2888_v2, %v9502_v52  ;;  %v6691_v50 = vld [vmem:[%s9463_s3 + $0xdc] ss:$12 sps:$4 sm:$0xff]  }
 0x32b   : > { %v6156_v36 = vpop.f32.mrf.mxu1 }
 0x32c   : > { %v2981_v20 = vmul.f32 %v2889_v19, %v2889_v19  ;;  %v9510_v19 = vld [vmem:[#allocation21_spill] sm:$0xff] }
 0x32d   : > { %v2893_v44 = vpop.f32.mrf.mxu1  ;;  %v2954_v36 = vmul.f32 %v9510_v19, %v9510_v19  ;;  %v6699_v19 = vld [vmem:[%s9463_s3 + $0x10c] ss:$12 sps:$4 sm:$0xff]  }
 0x32e   : > { %v3014_v27 = vadd.f32 %v2981_v20, %v2948_v46  ;;  %v2894_v24 = vadd.f32 %v2893_v44, %v9504_v61 }
 0x32f   : > { %v6159_v9 = vpop.f32.mrf.mxu1 }
 0x330   : > { %v3226_v22 = vpack.c.bf16 %v3014_v27, %v8780_v33  ;;  %v2982_v15 = vmul.f32 %v2894_v24, %v2894_v24  ;;  %v9511_v27 = vld [vmem:[#allocation22_spill] sm:$0xff] }
 0x331   : > { %v2896_v31 = vpop.f32.mrf.mxu1  ;;  %v2955_v61 = vmul.f32 %v9511_v27, %v9511_v27  ;;  %v6707_v27 = vld [vmem:[%s9463_s3 + $0x13c] ss:$12 sps:$4 sm:$0xff]  }
 0x332   : > { %v3015_v6 = vadd.f32 %v2982_v15, %v2949_v18  ;;  %v2897_v54 = vadd.f32 %v2896_v31, %v8609_v59  ;;  %v9512_v31 = vld [vmem:[#allocation6_spill] sm:$0xff] }
 0x333   : > { %v6160_v53 = vpop.f32.mrf.mxu1 }
 0x334   : > { %v2983_v57 = vmul.f32 %v2897_v54, %v2897_v54  ;;  %v6663_v54 = vld [vmem:[%s9463_s3 + $0x38] ss:$12 sps:$4 sm:$0xff]   ;;  %v6664_v53 = vld [vmem:[%s9463_s3 + $0x50] ss:$12 sps:$4 sm:$0xff]  }
 0x335   : > { %v2901_v42 = vpop.f32.mrf.mxu1 }
 0x336   : > { %v3016_v11 = vadd.f32 %v2983_v57, %v2950_v1  ;;  %v2902_v30 = vadd.f32 %v2901_v42, %v8611_v60  ;;  %v6665_v1 = vld [vmem:[%s9463_s3 + $0x48] ss:$12 sps:$4 sm:$0xff]   ;;  %v6670_v57 = vld [vmem:[%s9463_s3 + $0x64] ss:$12 sps:$4 sm:$0xff]   ;;  %v6704_v42 = vld [vmem:[%s9463_s3 + $0x140] ss:$12 sps:$4 sm:$0xff]  }
 0x337   : > { %v6163_v16 = vpop.f32.mrf.mxu1 }
 0x338   : > { %v3227_v29 = vpack.c.bf16 %v3016_v11, %v3015_v6  ;;  %v2984_v51 = vmul.f32 %v2902_v30, %v2902_v30  ;;  %v6711_v11 = vld [vmem:[%s9463_s3 + $0x158] ss:$12 sps:$4 sm:$0xff]   ;;  %v6668_v30 = vld [vmem:[%s9463_s3 + $0x60] ss:$12 sps:$4 sm:$0xff]   ;;  %v6675_v16 = vld [vmem:[%s9463_s3 + $0x7c] ss:$12 sps:$4 sm:$0xff]  }
 0x339   : > { %v2904_v40 = vpop.f32.mrf.mxu1 }
 0x33a   : > { %v3017_v4 = vadd.f32 %v2984_v51, %v2951_v43  ;;  %v2905_v12 = vadd.f32 %v2904_v40, %v8613_v62  ;;  %v6719_v43 = vld [vmem:[%s9463_s3 + $0x188] ss:$12 sps:$4 sm:$0xff]   ;;  %v6720_v40 = vld [vmem:[%s9463_s3 + $0x1a0] ss:$12 sps:$4 sm:$0xff]  }
 0x33b   : > { %v6164_v59 = vpop.f32.mrf.mxu1  ;;  %v6678_v51 = vld [vmem:[%s9463_s3 + $0x94] ss:$12 sps:$4 sm:$0xff]  }
 0x33c   : > { %v2985_v0 = vmul.f32 %v2905_v12, %v2905_v12  ;;  %v6676_v12 = vld [vmem:[%s9463_s3 + $0x90] ss:$12 sps:$4 sm:$0xff]   ;;  %v6683_v59 = vld [vmem:[%s9463_s3 + $0xac] ss:$12 sps:$4 sm:$0xff]  }
 0x33d   : > { %v2909_v5 = vpop.f32.mrf.mxu1 }
 0x33e   : > { %v3018_v45 = vadd.f32 %v2985_v0, %v2952_v49  ;;  %v2910_v58 = vadd.f32 %v2909_v5, %v8615_v28  ;;  %v6735_v49 = vld [vmem:[%s9463_s3 + $0x1e8] ss:$12 sps:$4 sm:$0xff]   ;;  %v6686_v5 = vld [vmem:[%s9463_s3 + $0xc4] ss:$12 sps:$4 sm:$0xff]  }
 0x33f   : > { %v6167_v60 = vpop.f32.mrf.mxu1  ;;  %v6681_v0 = vld [vmem:[%s9463_s3 + $0xa8] ss:$12 sps:$4 sm:$0xff]  }
 0x340   : > { %v3228_v47 = vpack.c.bf16 %v3018_v45, %v3017_v4  ;;  %v2986_v37 = vmul.f32 %v2910_v58, %v2910_v58  ;;  %v6727_v4 = vld [vmem:[%s9463_s3 + $0x1b8] ss:$12 sps:$4 sm:$0xff]   ;;  %v6736_v45 = vld [vmem:[%s9463_s3 + $0x200] ss:$12 sps:$4 sm:$0xff]  }
 0x341   : > { %v2912_v2 = vpop.f32.mrf.mxu1  ;;  %v6743_v58 = vld [vmem:[%s9463_s3 + $0x218] ss:$12 sps:$4 sm:$0xff]   ;;  %v6684_v60 = vld [vmem:[%s9463_s3 + $0xc0] ss:$12 sps:$4 sm:$0xff]  }
 0x342   : > { %v3019_v33 = vadd.f32 %v2986_v37, %v2953_v55  ;;  %v2913_v52 = vadd.f32 %v2912_v2, %v8617_v48  ;;  %v6744_v55 = vld [vmem:[%s9463_s3 + $0x230] ss:$12 sps:$4 sm:$0xff]   ;;  %v6689_v37 = vld [vmem:[%s9463_s3 + $0xd8] ss:$12 sps:$4 sm:$0xff]   ;;  %v6694_v2 = vld [vmem:[%s9463_s3 + $0xf4] ss:$12 sps:$4 sm:$0xff]  }
 0x343   : > { %v6168_v62 = vpop.f32.mrf.mxu1 }
 0x344   : > { %v2987_v13 = vmul.f32 %v2913_v52, %v2913_v52  ;;  %v6759_v52 = vld [vmem:[%s9463_s3 + $0x278] ss:$12 sps:$4 sm:$0xff]   ;;  %v6692_v62 = vld [vmem:[%s9463_s3 + $0xf0] ss:$12 sps:$4 sm:$0xff]  }
 0x345   : > { %v2917_v46 = vpop.f32.mrf.mxu1 }
 0x346   : > { %v3020_v20 = vadd.f32 %v2987_v13, %v2954_v36  ;;  %v2918_v44 = vadd.f32 %v2917_v46, %v8619_v34  ;;  %v6656_v34 = vld [vmem:[%s9463_s3 + $0x20] ss:$12 sps:$4 sm:$0xff]   ;;  %v6760_v36 = vld [vmem:[%s9463_s3 + $0x290] ss:$12 sps:$4 sm:$0xff]   ;;  %v6697_v13 = vld [vmem:[%s9463_s3 + $0x108] ss:$12 sps:$4 sm:$0xff]  }
 0x347   : > { %v6171_v28 = vpop.f32.mrf.mxu1  ;;  %v6702_v46 = vld [vmem:[%s9463_s3 + $0x124] ss:$12 sps:$4 sm:$0xff]  }
 0x348   : > { %v3229_v24 = vpack.c.bf16 %v3020_v20, %v3019_v33  ;;  %v2988_v9 = vmul.f32 %v2918_v44, %v2918_v44  ;;  %v6752_v33 = vld [vmem:[%s9463_s3 + $0x260] ss:$12 sps:$4 sm:$0xff]   ;;  %v6767_v20 = vld [vmem:[%s9463_s3 + $0x2a8] ss:$12 sps:$4 sm:$0xff]  }
 0x349   : > { %v2920_v21 = vpop.f32.mrf.mxu1  ;;  %v6700_v44 = vld [vmem:[%s9463_s3 + $0x120] ss:$12 sps:$4 sm:$0xff]  }
 0x34a   : > { %v3021_v18 = vadd.f32 %v2988_v9, %v2955_v61  ;;  %4115 = vmatpush2.bf16.msra.mxu0 %v3229_v24  ;;  %v6768_v28 = vld [vmem:[%s9463_s3 + $0x2c0] ss:$12 sps:$4 sm:$0xff]   ;;  %v6705_v61 = vld [vmem:[%s9463_s3 + $0x138] ss:$12 sps:$4 sm:$0xff]   ;;  %v6708_v21 = vld [vmem:[%s9463_s3 + $0x150] ss:$12 sps:$4 sm:$0xff]  }
 0x34b   : > { %4116 = vmatprep.subr.bf16.mxu0 %v9493_v39  ;;  %v6172_v48 = vpop.f32.mrf.mxu1  ;;  %v6710_v24 = vld [vmem:[%s9463_s3 + $0x154] ss:$12 sps:$4 sm:$0xff]   ;;  %v6775_v9 = vld [vmem:[%s9463_s3 + $0x2d8] ss:$12 sps:$4 sm:$0xff]  }
 0x34c   : > { %v3230_v15 = vpack.c.bf16 %v3021_v18, %v3021_v18  ;;  %v6776_v18 = vld [vmem:[%s9463_s3 + $0x2f0] ss:$12 sps:$4 sm:$0xff]   ;;  %v6715_v48 = vld [vmem:[%s9463_s3 + $0x16c] ss:$12 sps:$4 sm:$0xff]  }
 0x34e   : > { %4117 = vmatpush2.bf16.msra.mxu0 %v3228_v47  ;;  %v4096_v6 = vand.u32 %v3230_v15, %v9512_v31  ;;  %v6751_v47 = vld [vmem:[%s9463_s3 + $0x248] ss:$12 sps:$4 sm:$0xff]   ;;  %v6718_v31 = vld [vmem:[%s9463_s3 + $0x184] ss:$12 sps:$4 sm:$0xff]  }
 0x34f   : > { %4118 = vmatprep.subr.bf16.mxu0 %v9493_v39  ;;  %v6713_v15 = vld [vmem:[%s9463_s3 + $0x168] ss:$12 sps:$4 sm:$0xff]  }
 0x350   : > { %6173 = vmatprep.subr.bf16.mxu1 %v4096_v6 }
 0x351   : > { %6174 = vmatpush3.bf16.msra.mxu1 %v4096_v6  ;;  %v6783_v6 = vld [vmem:[%s9463_s3 + $0x308] ss:$12 sps:$4 sm:$0xff]  }
 0x352   : > { %4119 = vmatpush2.bf16.msra.mxu0 %v3227_v29  ;;  %v6673_v29 = vld [vmem:[%s9463_s3 + $0x78] ss:$12 sps:$4 sm:$0xff]  }
 0x353   : > { %4120 = vmatprep.subr.bf16.mxu0 %v9493_v39 }
 0x354   : > { %6176 = vmatmul.mubr.msk.bf16.vlgmr.msra.gmra.mxu1 %vm1290_vm2, %v6656_v34  ;;  %v6716_v34 = vld [vmem:[%s9463_s3 + $0x180] ss:$12 sps:$4 sm:$0xff]  }
 0x355   : > { %6179 = vmatprep.mubr.msk.bf16.mxu1 %vm1290_vm2, %v6663_v54  ;;  %v6784_v54 = vld [vmem:[%s9463_s3 + $0x320] ss:$12 sps:$4 sm:$0xff]  }
 0x356   : > { %4121 = vmatpush2.bf16.msra.mxu0 %v3226_v22  ;;  %v6672_v22 = vld [vmem:[%s9463_s3 + $0x80] ss:$12 sps:$4 sm:$0xff]  }
 0x357   : > { %4122 = vmatprep.subr.bf16.mxu0 %v9493_v39 }
 0x35a   : > { %4123 = vmatpush2.bf16.msra.mxu0 %v3225_v23  ;;  %v6703_v23 = vld [vmem:[%s9463_s3 + $0x128] ss:$12 sps:$4 sm:$0xff]  }
 0x35b   : > { %4124 = vmatprep.subr.bf16.mxu0 %v9493_v39 }
 0x35c   : > { %6180 = vmatmul.mubr.msk.bf16.gmra.mxu1 %vm1290_vm2, %v6664_v53  ;;  %v6723_v53 = vld [vmem:[%s9463_s3 + $0x19c] ss:$12 sps:$4 sm:$0xff]  }
 0x35d   : > { %6183 = vmatprep.mubr.msk.bf16.mxu1 %vm1290_vm2, %v6671_v10  ;;  %v6721_v10 = vld [vmem:[%s9463_s3 + $0x198] ss:$12 sps:$4 sm:$0xff]  }
 0x35e   : > { %4125 = vmatpush2.bf16.msra.mxu0 %v3224_v25  ;;  %v6667_v25 = vld [vmem:[%s9463_s3 + $0x4c] ss:$12 sps:$4 sm:$0xff]  }
 0x35f   : > { %4126 = vmatprep.subr.bf16.mxu0 %v9493_v39 }
 0x362   : > { %4127 = vmatpush2.bf16.msra.mxu0 %v3223_v41  ;;  %v6660_v41 = vld [vmem:[%s9463_s3 + $0x30] ss:$12 sps:$4 sm:$0xff]  }
 0x363   : > { %4128 = vmatprep.subr.bf16.mxu0 %v9493_v39  ;;  %v6680_v39 = vld [vmem:[%s9463_s3 + $0xb0] ss:$12 sps:$4 sm:$0xff]  }
 0x364   : > { %6184 = vmatmul.mubr.msk.bf16.gmra.mxu1 %vm1290_vm2, %v6672_v22  ;;  %v6726_v22 = vld [vmem:[%s9463_s3 + $0x1b4] ss:$12 sps:$4 sm:$0xff]  }
 0x365   : > { %6187 = vmatprep.mubr.msk.bf16.mxu1 %vm1290_vm2, %v6679_v38  ;;  %v6791_v38 = vld [vmem:[%s9463_s3 + $0x338] ss:$12 sps:$4 sm:$0xff]  }
 0x366   : > { %4129 = vmatpush2.bf16.msra.mxu0 %v3222_v26  ;;  %v6688_v26 = vld [vmem:[%s9463_s3 + $0xe0] ss:$12 sps:$4 sm:$0xff]  }
 0x369   : > { %4131 = vmatmul.mubr.bf16.vlgmr.msra.gmra.mxu0 %v6652_v3  ;;  %v6724_v3 = vld [vmem:[%s9463_s3 + $0x1b0] ss:$12 sps:$4 sm:$0xff]  }
 0x36a   : > { %4138 = vmatprep.mubr.bf16.mxu0 %v6659_v14  ;;  %v6792_v14 = vld [vmem:[%s9463_s3 + $0x350] ss:$12 sps:$4 sm:$0xff]  }
 0x36c   : > { %6188 = vmatmul.mubr.msk.bf16.gmra.mxu1 %vm1290_vm2, %v6680_v39  ;;  %v6731_v39 = vld [vmem:[%s9463_s3 + $0x1cc] ss:$12 sps:$4 sm:$0xff]  }
 0x36d   : > { %6191 = vmatprep.mubr.msk.bf16.mxu1 %vm1290_vm2, %v6687_v63  ;;  %v6729_v63 = vld [vmem:[%s9463_s3 + $0x1c8] ss:$12 sps:$4 sm:$0xff]  }
 0x371   : > { %4139 = vmatmul.mubr.bf16.gmra.mxu0 %v6657_v35  ;;  %v6734_v35 = vld [vmem:[%s9463_s3 + $0x1e4] ss:$12 sps:$4 sm:$0xff]  }
 0x372   : > { %4146 = vmatprep.mubr.bf16.mxu0 %v6662_v17  ;;  %v6799_v17 = vld [vmem:[%s9463_s3 + $0x368] ss:$12 sps:$4 sm:$0xff]  }
 0x374   : > { %6192 = vmatmul.mubr.msk.bf16.gmra.mxu1 %vm1290_vm2, %v6688_v26  ;;  %v6732_v26 = vld [vmem:[%s9463_s3 + $0x1e0] ss:$12 sps:$4 sm:$0xff]  }
 0x375   : > { %6195 = vmatprep.mubr.msk.bf16.mxu1 %vm1290_vm2, %v6695_v56  ;;  %v6800_v56 = vld [vmem:[%s9463_s3 + $0x380] ss:$12 sps:$4 sm:$0xff]  }
 0x379   : > { %4147 = vmatmul.mubr.bf16.gmra.mxu0 %v6660_v41  ;;  %v6739_v41 = vld [vmem:[%s9463_s3 + $0x1fc] ss:$12 sps:$4 sm:$0xff]  }
 0x37a   : > { %4154 = vmatprep.mubr.bf16.mxu0 %v6667_v25  ;;  %v6737_v25 = vld [vmem:[%s9463_s3 + $0x1f8] ss:$12 sps:$4 sm:$0xff]  }
 0x37c   : > { %6196 = vmatmul.mubr.msk.bf16.gmra.mxu1 %vm1290_vm2, %v6696_v8  ;;  %v6742_v8 = vld [vmem:[%s9463_s3 + $0x214] ss:$12 sps:$4 sm:$0xff]  }
 0x37d   : > { %6199 = vmatprep.mubr.msk.bf16.mxu1 %vm1290_vm2, %v6703_v23  ;;  %v6807_v23 = vld [vmem:[%s9463_s3 + $0x398] ss:$12 sps:$4 sm:$0xff]  }
 0x381   : > { %4155 = vmatmul.mubr.bf16.gmra.mxu0 %v6665_v1  ;;  %v6740_v1 = vld [vmem:[%s9463_s3 + $0x210] ss:$12 sps:$4 sm:$0xff]  }
 0x382   : > { %4162 = vmatprep.mubr.bf16.mxu0 %v6670_v57  ;;  %v6808_v57 = vld [vmem:[%s9463_s3 + $0x3b0] ss:$12 sps:$4 sm:$0xff]  }
 0x384   : > { %6200 = vmatmul.mubr.msk.bf16.gmra.mxu1 %vm1290_vm2, %v6704_v42  ;;  %v6747_v42 = vld [vmem:[%s9463_s3 + $0x22c] ss:$12 sps:$4 sm:$0xff]  }
 0x385   : > { %6203 = vmatprep.mubr.msk.bf16.mxu1 %vm1290_vm2, %v6711_v11  ;;  %v6745_v11 = vld [vmem:[%s9463_s3 + $0x228] ss:$12 sps:$4 sm:$0xff]  }
 0x389   : > { %4163 = vmatmul.mubr.bf16.gmra.mxu0 %v6668_v30  ;;  %v6750_v30 = vld [vmem:[%s9463_s3 + $0x244] ss:$12 sps:$4 sm:$0xff]  }
 0x38a   : > { %4170 = vmatprep.mubr.bf16.mxu0 %v6675_v16 }
 0x38c   : > { %6204 = vmatmul.mubr.msk.bf16.gmra.mxu1 %vm1290_vm2, %v6712_v7 }
 0x38d   : > { %6207 = vmatprep.mubr.msk.bf16.mxu1 %vm1290_vm2, %v6719_v43  ;;  %v6815_v43 = vld [vmem:[%s9463_s3 + $0x3c8] ss:$12 sps:$4 sm:$0xff]  }
 0x391   : > { %4171 = vmatmul.mubr.bf16.gmra.mxu0 %v6673_v29  ;;  %v6748_v29 = vld [vmem:[%s9463_s3 + $0x240] ss:$12 sps:$4 sm:$0xff]  }
 0x392   : > { %4178 = vmatprep.mubr.bf16.mxu0 %v6678_v51  ;;  %v6816_v51 = vld [vmem:[%s9463_s3 + $0x3e0] ss:$12 sps:$4 sm:$0xff]  }
 0x394   : > { %6208 = vmatmul.mubr.msk.bf16.gmra.mxu1 %vm1290_vm2, %v6720_v40  ;;  %v6755_v40 = vld [vmem:[%s9463_s3 + $0x25c] ss:$12 sps:$4 sm:$0xff]  }
 0x395   : > { %6211 = vmatprep.mubr.msk.bf16.mxu1 %vm1290_vm2, %v6727_v4 }
 0x399   : > { %4179 = vmatmul.mubr.bf16.gmra.mxu0 %v6676_v12 }
 0x39a   : > { %4186 = vmatprep.mubr.bf16.mxu0 %v6683_v59 }
 0x39c   : > { %6212 = vmatmul.mubr.msk.bf16.gmra.mxu1 %vm1290_vm2, %v6728_v32 }
 0x39d   : > { %6215 = vmatprep.mubr.msk.bf16.mxu1 %vm1290_vm2, %v6735_v49 }
 0x3a1   : > { %4187 = vmatmul.mubr.bf16.gmra.mxu0 %v6681_v0 }
 0x3a2   : > { %4194 = vmatprep.mubr.bf16.mxu0 %v6686_v5 }
 0x3a4   : > { %6216 = vmatmul.mubr.msk.bf16.gmra.mxu1 %vm1290_vm2, %v6736_v45  ;;  %v6753_v45 = vld [vmem:[%s9463_s3 + $0x258] ss:$12 sps:$4 sm:$0xff]  }
 0x3a5   : > { %6219 = vmatprep.mubr.msk.bf16.mxu1 %vm1290_vm2, %v6743_v58 }
 0x3a9   : > { %4195 = vmatmul.mubr.bf16.gmra.mxu0 %v6684_v60  ;;  %v6758_v60 = vld [vmem:[%s9463_s3 + $0x274] ss:$12 sps:$4 sm:$0xff]  }
 0x3aa   : > { %4202 = vmatprep.mubr.bf16.mxu0 %v6691_v50 }
 0x3ac   : > { %6220 = vmatmul.mubr.msk.bf16.gmra.mxu1 %vm1290_vm2, %v6744_v55 }
 0x3ad   : > { %6223 = vmatprep.mubr.msk.bf16.mxu1 %vm1290_vm2, %v6751_v47 }
 0x3b1   : > { %4203 = vmatmul.mubr.bf16.gmra.mxu0 %v6689_v37 }
 0x3b2   : > { %4210 = vmatprep.mubr.bf16.mxu0 %v6694_v2 }
 0x3b4   : > { %6224 = vmatmul.mubr.msk.bf16.gmra.mxu1 %vm1290_vm2, %v6752_v33 }
 0x3b5   : > { %6227 = vmatprep.mubr.msk.bf16.mxu1 %vm1290_vm2, %v6759_v52 }
 0x3b9   : > { %4211 = vmatmul.mubr.bf16.gmra.mxu0 %v6692_v62 }
 0x3ba   : > { %4218 = vmatprep.mubr.bf16.mxu0 %v6699_v19  ;;  %v6823_v19 = vld [vmem:[%s9463_s3 + $0x3f8] ss:$12 sps:$4 sm:$0xff]  }
 0x3bc   : > { %6228 = vmatmul.mubr.msk.bf16.gmra.mxu1 %vm1290_vm2, %v6760_v36 }
 0x3bd   : > { %6231 = vmatprep.mubr.msk.bf16.mxu1 %vm1290_vm2, %v6767_v20 }
 0x3c1   : > { %4219 = vmatmul.mubr.bf16.gmra.mxu0 %v6697_v13  ;;  %v6756_v13 = vld [vmem:[%s9463_s3 + $0x270] ss:$12 sps:$4 sm:$0xff]  }
 0x3c2   : > { %4226 = vmatprep.mubr.bf16.mxu0 %v6702_v46  ;;  %v6824_v46 = vld [vmem:[%s9463_s3 + $0x410] ss:$12 sps:$4 sm:$0xff]  }
 0x3c4   : > { %6232 = vmatmul.mubr.msk.bf16.gmra.mxu1 %vm1290_vm2, %v6768_v28 }
 0x3c5   : > { %6235 = vmatprep.mubr.msk.bf16.mxu1 %vm1290_vm2, %v6775_v9 }
 0x3c9   : > { %4227 = vmatmul.mubr.bf16.gmra.mxu0 %v6700_v44  ;;  %v6763_v44 = vld [vmem:[%s9463_s3 + $0x28c] ss:$12 sps:$4 sm:$0xff]  }
 0x3ca   : > { %4234 = vmatprep.mubr.bf16.mxu0 %v6707_v27 }
 0x3cc   : > { %6236 = vmatmul.mubr.msk.bf16.gmra.mxu1 %vm1290_vm2, %v6776_v18 }
 0x3cd   : > { %6239 = vmatprep.mubr.msk.bf16.mxu1 %vm1290_vm2, %v6783_v6 }
 0x3d1   : > { %4235 = vmatmul.mubr.bf16.gmra.mxu0 %v6705_v61 }
 0x3d2   : > { %4242 = vmatprep.mubr.bf16.mxu0 %v6710_v24 }
 0x3d4   : > { %6240 = vmatmul.mubr.msk.bf16.gmra.mxu1 %vm1290_vm2, %v6784_v54 }
 0x3d5   : > { %6243 = vmatprep.mubr.msk.bf16.mxu1 %vm1290_vm2, %v6791_v38 }
 0x3d9   : > { %4243 = vmatmul.mubr.bf16.gmra.mxu0 %v6708_v21 }
 0x3da   : > { %4250 = vmatprep.mubr.bf16.mxu0 %v6715_v48 }
 0x3dc   : > { %6244 = vmatmul.mubr.msk.bf16.gmra.mxu1 %vm1290_vm2, %v6792_v14 }
 0x3dd   : > { %6247 = vmatprep.mubr.msk.bf16.mxu1 %vm1290_vm2, %v6799_v17 }
 0x3e1   : > { %4251 = vmatmul.mubr.bf16.gmra.mxu0 %v6713_v15 }
 0x3e2   : > { %4258 = vmatprep.mubr.bf16.mxu0 %v6718_v31 }
 0x3e4   : > { %6248 = vmatmul.mubr.msk.bf16.gmra.mxu1 %vm1290_vm2, %v6800_v56 }
 0x3e5   : > { %6251 = vmatprep.mubr.msk.bf16.mxu1 %vm1290_vm2, %v6807_v23  ;;  %v6831_v23 = vld [vmem:[%s9463_s3 + $0x428] ss:$12 sps:$4 sm:$0xff]  }
 0x3e9   : > { %4259 = vmatmul.mubr.bf16.gmra.mxu0 %v6716_v34  ;;  %v6761_v34 = vld [vmem:[%s9463_s3 + $0x288] ss:$12 sps:$4 sm:$0xff]  }
 0x3ea   : > { %4266 = vmatprep.mubr.bf16.mxu0 %v6723_v53 }
 0x3ec   : > { %6252 = vmatmul.mubr.msk.bf16.gmra.mxu1 %vm1290_vm2, %v6808_v57  ;;  %v6764_v57 = vld [vmem:[%s9463_s3 + $0x2a0] ss:$12 sps:$4 sm:$0xff]  }
 0x3ed   : > { %6255 = vmatprep.mubr.msk.bf16.mxu1 %vm1290_vm2, %v6815_v43 }
 0x3f1   : > { %4267 = vmatmul.mubr.bf16.gmra.mxu0 %v6721_v10  ;;  %v6766_v10 = vld [vmem:[%s9463_s3 + $0x2a4] ss:$12 sps:$4 sm:$0xff]  }
 0x3f2   : > { %4274 = vmatprep.mubr.bf16.mxu0 %v6726_v22 }
 0x3f4   : > { %6256 = vmatmul.mubr.msk.bf16.gmra.mxu1 %vm1290_vm2, %v6816_v51 }
 0x3f5   : > { %6259 = vmatprep.mubr.msk.bf16.mxu1 %vm1290_vm2, %v6823_v19 }
 0x3f9   : > { %4275 = vmatmul.mubr.bf16.gmra.mxu0 %v6724_v3 }
 0x3fa   : > { %4282 = vmatprep.mubr.bf16.mxu0 %v6731_v39 }
 0x3fc   : > { %6260 = vmatmul.mubr.msk.bf16.gmra.mxu1 %vm1290_vm2, %v6824_v46 }
 0x3fd   : > { %6263 = vmatprep.mubr.msk.bf16.mxu1 %vm1290_vm2, %v6831_v23 }
 0x401   : > { %4283 = vmatmul.mubr.bf16.gmra.mxu0 %v6729_v63 }
 0x402   : > { %4290 = vmatprep.mubr.bf16.mxu0 %v6734_v35 }
 0x409   : > { %4291 = vmatmul.mubr.bf16.gmra.mxu0 %v6732_v26 }
 0x40a   : > { %4298 = vmatprep.mubr.bf16.mxu0 %v6739_v41 }
 0x411   : > { %4299 = vmatmul.mubr.bf16.gmra.mxu0 %v6737_v25 }
 0x412   : > { %4306 = vmatprep.mubr.bf16.mxu0 %v6742_v8 }
 0x414   : > { %v6177_v16 = vpop.f32.mrf.mxu1 }
 0x416   : > { %v4549_v7 = vpop.f32.mrf.mxu1 }
 0x418   : > { %v6178_v4 = vpop.f32.mrf.mxu1 }
 0x419   : > { %4307 = vmatmul.mubr.bf16.gmra.mxu0 %v6740_v1 }
 0x41a   : > { %4314 = vmatprep.mubr.bf16.mxu0 %v6747_v42  ;;  %v4552_v49 = vpop.f32.mrf.mxu1  ;;  %v6832_v42 = vld [vmem:[%s9463_s3 + $0x440] ss:$12 sps:$4 sm:$0xff]  }
 0x41b   : > { %6264 = vmatmul.mubr.msk.bf16.gmra.mxu1 %vm1290_vm2, %v6832_v42 }
 0x41c   : > { %v6181_v55 = vpop.f32.mrf.mxu1 }
 0x41e   : > { %v4565_v52 = vpop.f32.mrf.mxu1 }
 0x420   : > { %v6182_v27 = vpop.f32.mrf.mxu1 }
 0x421   : > { %4315 = vmatmul.mubr.bf16.gmra.mxu0 %v6745_v11 }
 0x422   : > { %4322 = vmatprep.mubr.bf16.mxu0 %v6750_v30  ;;  %v4568_v48 = vpop.f32.mrf.mxu1 }
 0x424   : > { %v6185_v3 = vpop.f32.mrf.mxu1 }
 0x426   : > { %v4581_v41 = vpop.f32.mrf.mxu1 }
 0x429   : > { %v4132_v12 = vpop.f32.mrf.mxu0  ;;  %4323 = vmatmul.mubr.bf16.gmra.mxu0 %v6748_v29  ;;  %v6186_v29 = vpop.f32.mrf.mxu1 }
 0x42a   : > { %v4550_v59 = vadd.f32 %v4549_v7, %v4132_v12  ;;  %4330 = vmatprep.mubr.bf16.mxu0 %v6755_v40 }
 0x42b   : > { %v4134_v32 = vpop.f32.mrf.mxu0 }
 0x42c   : > { %v4932_v0 = vmax.f32 %v4550_v59, 1e-10 }
 0x42d   : > { %v4135_v5 = vpop.f32.mrf.mxu0 }
 0x42e   : > { %6844 = vlog2.f32 %v4932_v0  ;;  %v4553_v58 = vadd.f32 %v4552_v49, %v4135_v5  ;;  %v4584_v0 = vpop.f32.mrf.mxu1 }
 0x42f   : > { %v4137_v50 = vpop.f32.mrf.mxu0 }
 0x430   : > { %v4933_v47 = vmax.f32 %v4553_v58, 1e-10 }
 0x431   : > { %v4140_v37 = vpop.f32.mrf.mxu0  ;;  %4331 = vmatmul.mubr.bf16.gmra.mxu0 %v6753_v45 }
 0x432   : > { %6846 = vlog2.f32 %v4933_v47  ;;  %v4558_v2 = vadd.f32 %v6177_v16, %v4140_v37  ;;  %4338 = vmatprep.mubr.bf16.mxu0 %v6758_v60  ;;  %v6771_v16 = vld [vmem:[%s9463_s3 + $0x2bc] ss:$12 sps:$4 sm:$0xff]   ;;  %v6769_v60 = vld [vmem:[%s9463_s3 + $0x2b8] ss:$12 sps:$4 sm:$0xff]   ;;  %v6774_v47 = vld [vmem:[%s9463_s3 + $0x2d4] ss:$12 sps:$4 sm:$0xff]  }
 0x433   : > { %v4142_v33 = vpop.f32.mrf.mxu0 }
 0x434   : > { %v4934_v62 = vmax.f32 %v4558_v2, 1e-10  ;;  %v6189_v33 = vpop.f32.mrf.mxu1 }
 0x435   : > { %v4143_v36 = vpop.f32.mrf.mxu0 }
 0x436   : > { %6848 = vlog2.f32 %v4934_v62  ;;  %v4561_v20 = vadd.f32 %v6178_v4, %v4143_v36 }
 0x437   : > { %v4145_v28 = vpop.f32.mrf.mxu0 }
 0x438   : > { %v4935_v61 = vmax.f32 %v4561_v20, 1e-10 }
 0x439   : > { %v4148_v24 = vpop.f32.mrf.mxu0  ;;  %4339 = vmatmul.mubr.bf16.gmra.mxu0 %v6756_v13 }
 0x43a   : > { %6850 = vlog2.f32 %v4935_v61  ;;  %v4566_v9 = vadd.f32 %v4565_v52, %v4148_v24  ;;  %4346 = vmatprep.mubr.bf16.mxu0 %v6763_v44  ;;  %v4597_v44 = vpop.f32.mrf.mxu1  ;;  %v6839_v61 = vld [vmem:[%s9463_s3 + $0x458] ss:$12 sps:$4 sm:$0xff]  }
 0x43b   : > { %v6845_v21 = vpop.eup %6844  ;;  %v4150_v18 = vpop.f32.mrf.mxu0  ;;  %6267 = vmatprep.mubr.msk.bf16.mxu1 %vm1290_vm2, %v6839_v61 }
 0x43c   : > { %v5029_v15 = vmul.f32 0.6931472, %v6845_v21  ;;  %v4936_v31 = vmax.f32 %v4566_v9, 1e-10  ;;  %v6772_v9 = vld [vmem:[%s9463_s3 + $0x2d0] ss:$12 sps:$4 sm:$0xff]  }
 0x43d   : > { %v4151_v6 = vpop.f32.mrf.mxu0  ;;  %v6840_v21 = vld [vmem:[%s9463_s3 + $0x470] ss:$12 sps:$4 sm:$0xff]  }
 0x43e   : > { %v5220_v54 = vmul.f32 4.3429446, %v5029_v15  ;;  %6852 = vlog2.f32 %v4936_v31  ;;  %v4569_v53 = vadd.f32 %v4568_v48, %v4151_v6  ;;  %v6779_v15 = vld [vmem:[%s9463_s3 + $0x2ec] ss:$12 sps:$4 sm:$0xff]   ;;  %6268 = vmatmul.mubr.msk.bf16.gmra.mxu1 %vm1290_vm2, %v6840_v21 }
 0x43f   : > { %v6847_v22 = vpop.eup %6846  ;;  %v4153_v38 = vpop.f32.mrf.mxu0 }
 0x440   : > { %5316 = vst [vmem:[%s9168_s23] sm:$0xff] %v5220_v54  ;;  %v5031_v14 = vmul.f32 0.6931472, %v6847_v22  ;;  %v4937_v39 = vmax.f32 %v4569_v53, 1e-10 }
 0x441   : > { %v4156_v63 = vpop.f32.mrf.mxu0  ;;  %4347 = vmatmul.mubr.bf16.gmra.mxu0 %v6761_v34  ;;  %v6190_v34 = vpop.f32.mrf.mxu1 }
 0x442   : > { %v5221_v35 = vmul.f32 4.3429446, %v5031_v14  ;;  %6854 = vlog2.f32 %v4937_v39  ;;  %v4574_v17 = vadd.f32 %v6181_v55, %v4156_v63  ;;  %4354 = vmatprep.mubr.bf16.mxu0 %v6766_v10 }
 0x443   : > { %v6849_v26 = vpop.eup %6848  ;;  %v4158_v56 = vpop.f32.mrf.mxu0 }
 0x444   : > { %5317 = vst [vmem:[%s9168_s23 + $0x8] sm:$0xff] %v5221_v35  ;;  %v5033_v25 = vmul.f32 0.6931472, %v6849_v26  ;;  %v4938_v8 = vmax.f32 %v4574_v17, 1e-10  ;;  %v4600_v39 = vpop.f32.mrf.mxu1 }
 0x445   : > { %v4159_v1 = vpop.f32.mrf.mxu0  ;;  %v6777_v26 = vld [vmem:[%s9463_s3 + $0x2e8] ss:$12 sps:$4 sm:$0xff]  }
 0x446   : > { %v5222_v11 = vmul.f32 4.3429446, %v5033_v25  ;;  %6856 = vlog2.f32 %v4938_v8  ;;  %v4577_v30 = vadd.f32 %v6182_v27, %v4159_v1  ;;  %v6782_v25 = vld [vmem:[%s9463_s3 + $0x304] ss:$12 sps:$4 sm:$0xff]   ;;  %v6193_v1 = vpop.f32.mrf.mxu1 }
 0x447   : > { %v6851_v7 = vpop.eup %6850  ;;  %v4161_v43 = vpop.f32.mrf.mxu0 }
 0x448   : > { %5318 = vst [vmem:[%s9168_s23 + $0x10] sm:$0xff] %v5222_v11  ;;  %v5035_v51 = vmul.f32 0.6931472, %v6851_v7  ;;  %v4939_v40 = vmax.f32 %v4577_v30, 1e-10 }
 0x449   : > { %v4164_v4 = vpop.f32.mrf.mxu0  ;;  %4355 = vmatmul.mubr.bf16.gmra.mxu0 %v6764_v57 }
 0x44a   : > { %v5223_v12 = vmul.f32 4.3429446, %v5035_v51  ;;  %6858 = vlog2.f32 %v4939_v40  ;;  %v4582_v59 = vadd.f32 %v4581_v41, %v4164_v4  ;;  %4362 = vmatprep.mubr.bf16.mxu0 %v6771_v16 }
 0x44b   : > { %v6853_v32 = vpop.eup %6852  ;;  %v4166_v49 = vpop.f32.mrf.mxu0 }
 0x44c   : > { %5319 = vst [vmem:[%s9168_s23 + $0x18] sm:$0xff] %v5223_v12  ;;  %v5037_v5 = vmul.f32 0.6931472, %v6853_v32  ;;  %v4940_v45 = vmax.f32 %v4582_v59, 1e-10 }
 0x44d   : > { %v4167_v58 = vpop.f32.mrf.mxu0  ;;  %v6780_v12 = vld [vmem:[%s9463_s3 + $0x300] ss:$12 sps:$4 sm:$0xff]   ;;  %v6787_v49 = vld [vmem:[%s9463_s3 + $0x31c] ss:$12 sps:$4 sm:$0xff]  }
 0x44e   : > { %v5224_v50 = vmul.f32 4.3429446, %v5037_v5  ;;  %6860 = vlog2.f32 %v4940_v45  ;;  %v4585_v55 = vadd.f32 %v4584_v0, %v4167_v58 }
 0x44f   : > { %v6855_v37 = vpop.eup %6854  ;;  %v4169_v2 = vpop.f32.mrf.mxu0 }
 0x450   : > { %5320 = vst [vmem:[%s9168_s23 + $0x20] sm:$0xff] %v5224_v50  ;;  %v5039_v52 = vmul.f32 0.6931472, %v6855_v37  ;;  %v4941_v62 = vmax.f32 %v4585_v55, 1e-10 }
 0x451   : > { %v4172_v19 = vpop.f32.mrf.mxu0  ;;  %4363 = vmatmul.mubr.bf16.gmra.mxu0 %v6769_v60 }
 0x452   : > { %v5225_v36 = vmul.f32 4.3429446, %v5039_v52  ;;  %6862 = vlog2.f32 %v4941_v62  ;;  %v4590_v13 = vadd.f32 %v6185_v3, %v4172_v19  ;;  %4370 = vmatprep.mubr.bf16.mxu0 %v6774_v47 }
 0x453   : > { %v6857_v46 = vpop.eup %6856  ;;  %v4174_v20 = vpop.f32.mrf.mxu0 }
 0x454   : > { %5321 = vst [vmem:[%s9168_s23 + $0x28] sm:$0xff] %v5225_v36  ;;  %v5041_v28 = vmul.f32 0.6931472, %v6857_v46  ;;  %v4942_v27 = vmax.f32 %v4590_v13, 1e-10 }
 0x455   : > { %v4175_v24 = vpop.f32.mrf.mxu0  ;;  %v6785_v36 = vld [vmem:[%s9463_s3 + $0x318] ss:$12 sps:$4 sm:$0xff]   ;;  %v6790_v20 = vld [vmem:[%s9463_s3 + $0x334] ss:$12 sps:$4 sm:$0xff]  }
 0x456   : > { %v5226_v18 = vmul.f32 4.3429446, %v5041_v28  ;;  %6864 = vlog2.f32 %v4942_v27  ;;  %v4593_v48 = vadd.f32 %v6186_v29, %v4175_v24  ;;  %v4613_v29 = vpop.f32.mrf.mxu1 }
 0x457   : > { %v6859_v31 = vpop.eup %6858  ;;  %v4177_v6 = vpop.f32.mrf.mxu0 }
 0x458   : > { %5322 = vst [vmem:[%s9168_s23 + $0x30] sm:$0xff] %v5226_v18  ;;  %v5043_v54 = vmul.f32 0.6931472, %v6859_v31  ;;  %v4943_v53 = vmax.f32 %v4593_v48, 1e-10  ;;  %v6194_v45 = vpop.f32.mrf.mxu1 }
 0x459   : > { %v4180_v10 = vpop.f32.mrf.mxu0  ;;  %4371 = vmatmul.mubr.bf16.gmra.mxu0 %v6772_v9 }
 0x45a   : > { %v5227_v22 = vmul.f32 4.3429446, %v5043_v54  ;;  %6866 = vlog2.f32 %v4943_v53  ;;  %v4598_v38 = vadd.f32 %v4597_v44, %v4180_v10  ;;  %4378 = vmatprep.mubr.bf16.mxu0 %v6779_v15  ;;  %v6788_v53 = vld [vmem:[%s9463_s3 + $0x330] ss:$12 sps:$4 sm:$0xff]  }
 0x45b   : > { %v6861_v3 = vpop.eup %6860  ;;  %v4182_v14 = vpop.f32.mrf.mxu0 }
 0x45c   : > { %5323 = vst [vmem:[%s9168_s23 + $0x38] sm:$0xff] %v5227_v22  ;;  %v5045_v63 = vmul.f32 0.6931472, %v6861_v3  ;;  %v4944_v35 = vmax.f32 %v4598_v38, 1e-10 }
 0x45d   : > { %v4183_v17 = vpop.f32.mrf.mxu0  ;;  %v6795_v38 = vld [vmem:[%s9463_s3 + $0x34c] ss:$12 sps:$4 sm:$0xff]  }
 0x45e   : > { %v5228_v56 = vmul.f32 4.3429446, %v5045_v63  ;;  %6868 = vlog2.f32 %v4944_v35  ;;  %v4601_v41 = vadd.f32 %v4600_v39, %v4183_v17 }
 0x45f   : > { %v6863_v8 = vpop.eup %6862  ;;  %v4185_v23 = vpop.f32.mrf.mxu0 }
 0x460   : > { %5324 = vst [vmem:[%s9168_s23 + $0x40] sm:$0xff] %v5228_v56  ;;  %v5047_v57 = vmul.f32 0.6931472, %v6863_v8  ;;  %v4945_v42 = vmax.f32 %v4601_v41, 1e-10 }
 0x461   : > { %v4188_v11 = vpop.f32.mrf.mxu0  ;;  %4379 = vmatmul.mubr.bf16.gmra.mxu0 %v6777_v26 }
 0x462   : > { %v5229_v30 = vmul.f32 4.3429446, %v5047_v57  ;;  %6870 = vlog2.f32 %v4945_v42  ;;  %v4606_v16 = vadd.f32 %v6189_v33, %v4188_v11  ;;  %4386 = vmatprep.mubr.bf16.mxu0 %v6782_v25  ;;  %v4616_v33 = vpop.f32.mrf.mxu1  ;;  %v6793_v42 = vld [vmem:[%s9463_s3 + $0x348] ss:$12 sps:$4 sm:$0xff]  }
 0x463   : > { %v6865_v7 = vpop.eup %6864  ;;  %v4190_v43 = vpop.f32.mrf.mxu0 }
 0x464   : > { %5325 = vst [vmem:[%s9168_s23 + $0x48] sm:$0xff] %v5229_v30  ;;  %v5049_v51 = vmul.f32 0.6931472, %v6865_v7  ;;  %v4946_v40 = vmax.f32 %v4606_v16, 1e-10  ;;  %v6197_v27 = vpop.f32.mrf.mxu1 }
 0x465   : > { %v4191_v4 = vpop.f32.mrf.mxu0  ;;  %v6798_v16 = vld [vmem:[%s9463_s3 + $0x364] ss:$12 sps:$4 sm:$0xff]  }
 0x466   : > { %v5230_v59 = vmul.f32 4.3429446, %v5049_v51  ;;  %6872 = vlog2.f32 %v4946_v40  ;;  %v4609_v32 = vadd.f32 %v6190_v34, %v4191_v4  ;;  %v4629_v31 = vpop.f32.mrf.mxu1 }
 0x467   : > { %v6867_v0 = vpop.eup %6866  ;;  %v4193_v5 = vpop.f32.mrf.mxu0 }
 0x468   : > { %5326 = vst [vmem:[%s9168_s23 + $0x50] sm:$0xff] %v5230_v59  ;;  %v5051_v58 = vmul.f32 0.6931472, %v6867_v0  ;;  %v4947_v60 = vmax.f32 %v4609_v32, 1e-10  ;;  %v6198_v39 = vpop.f32.mrf.mxu1 }
 0x469   : > { %v4196_v50 = vpop.f32.mrf.mxu0  ;;  %4387 = vmatmul.mubr.bf16.gmra.mxu0 %v6780_v12 }
 0x46a   : > { %v5231_v55 = vmul.f32 4.3429446, %v5051_v58  ;;  %6874 = vlog2.f32 %v4947_v60  ;;  %v4614_v47 = vadd.f32 %v4613_v29, %v4196_v50  ;;  %4394 = vmatprep.mubr.bf16.mxu0 %v6787_v49  ;;  %v4632_v8 = vpop.f32.mrf.mxu1  ;;  %v6796_v60 = vld [vmem:[%s9463_s3 + $0x360] ss:$12 sps:$4 sm:$0xff]  }
 0x46b   : > { %v6869_v37 = vpop.eup %6868  ;;  %v4198_v2 = vpop.f32.mrf.mxu0 }
 0x46c   : > { %5327 = vst [vmem:[%s9168_s23 + $0x58] sm:$0xff] %v5231_v55  ;;  %v5053_v52 = vmul.f32 0.6931472, %v6869_v37  ;;  %v4948_v62 = vmax.f32 %v4614_v47, 1e-10  ;;  %v6201_v29 = vpop.f32.mrf.mxu1 }
 0x46d   : > { %v4199_v19 = vpop.f32.mrf.mxu0  ;;  %v6803_v47 = vld [vmem:[%s9463_s3 + $0x37c] ss:$12 sps:$4 sm:$0xff]  }
 0x46e   : > { %v5232_v13 = vmul.f32 4.3429446, %v5053_v52  ;;  %6876 = vlog2.f32 %v4948_v62  ;;  %v4617_v46 = vadd.f32 %v4616_v33, %v4199_v19  ;;  %v4645_v0 = vpop.f32.mrf.mxu1 }
 0x46f   : > { %v6871_v44 = vpop.eup %6870  ;;  %v4201_v28 = vpop.f32.mrf.mxu0 }
 0x470   : > { %5328 = vst [vmem:[%s9168_s23 + $0x60] sm:$0xff] %v5232_v13  ;;  %v5055_v61 = vmul.f32 0.6931472, %v6871_v44  ;;  %v4949_v24 = vmax.f32 %v4617_v46, 1e-10  ;;  %v6202_v33 = vpop.f32.mrf.mxu1 }
 0x471   : > { %v4204_v9 = vpop.f32.mrf.mxu0  ;;  %4395 = vmatmul.mubr.bf16.gmra.mxu0 %v6785_v36 }
 0x472   : > { %v5233_v21 = vmul.f32 4.3429446, %v5055_v61  ;;  %6878 = vlog2.f32 %v4949_v24  ;;  %v4622_v18 = vadd.f32 %v6193_v1, %v4204_v9  ;;  %4402 = vmatprep.mubr.bf16.mxu0 %v6790_v20  ;;  %v4648_v44 = vpop.f32.mrf.mxu1  ;;  %v6801_v24 = vld [vmem:[%s9463_s3 + $0x378] ss:$12 sps:$4 sm:$0xff]  }
 0x473   : > { %v6873_v48 = vpop.eup %6872  ;;  %v4206_v15 = vpop.f32.mrf.mxu0 }
 0x474   : > { %5329 = vst [vmem:[%s9168_s23 + $0x68] sm:$0xff] %v5233_v21  ;;  %v5057_v6 = vmul.f32 0.6931472, %v6873_v48  ;;  %v4950_v34 = vmax.f32 %v4622_v18, 1e-10 }
 0x475   : > { %v4207_v54 = vpop.f32.mrf.mxu0  ;;  %v6806_v18 = vld [vmem:[%s9463_s3 + $0x394] ss:$12 sps:$4 sm:$0xff]  }
 0x476   : > { %v5234_v10 = vmul.f32 4.3429446, %v5057_v6  ;;  %6880 = vlog2.f32 %v4950_v34  ;;  %v4625_v22 = vadd.f32 %v6194_v45, %v4207_v54 }
 0x477   : > { %v6875_v3 = vpop.eup %6874  ;;  %v4209_v14 = vpop.f32.mrf.mxu0 }
 0x478   : > { %5330 = vst [vmem:[%s9168_s23 + $0x70] sm:$0xff] %v5234_v10  ;;  %v5059_v63 = vmul.f32 0.6931472, %v6875_v3  ;;  %v4951_v35 = vmax.f32 %v4625_v22, 1e-10 }
 0x479   : > { %v4212_v17 = vpop.f32.mrf.mxu0  ;;  %4403 = vmatmul.mubr.bf16.gmra.mxu0 %v6788_v53 }
 0x47a   : > { %v5235_v26 = vmul.f32 4.3429446, %v5059_v63  ;;  %6882 = vlog2.f32 %v4951_v35  ;;  %v4630_v56 = vadd.f32 %v4629_v31, %v4212_v17  ;;  %4410 = vmatprep.mubr.bf16.mxu0 %v6795_v38  ;;  %v6205_v31 = vpop.f32.mrf.mxu1  ;;  %v6804_v35 = vld [vmem:[%s9463_s3 + $0x390] ss:$12 sps:$4 sm:$0xff]  }
 0x47b   : > { %v6877_v41 = vpop.eup %6876  ;;  %v4214_v25 = vpop.f32.mrf.mxu0 }
 0x47c   : > { %5331 = vst [vmem:[%s9168_s23 + $0x78] sm:$0xff] %v5235_v26  ;;  %v5061_v23 = vmul.f32 0.6931472, %v6877_v41  ;;  %v4952_v1 = vmax.f32 %v4630_v56, 1e-10  ;;  %v4661_v3 = vpop.f32.mrf.mxu1 }
 0x47d   : > { %v4215_v57 = vpop.f32.mrf.mxu0  ;;  %v6811_v56 = vld [vmem:[%s9463_s3 + $0x3ac] ss:$12 sps:$4 sm:$0xff]  }
 0x47e   : > { %v5236_v11 = vmul.f32 4.3429446, %v5061_v23  ;;  %6884 = vlog2.f32 %v4952_v1  ;;  %v4633_v30 = vadd.f32 %v4632_v8, %v4215_v57  ;;  %v6206_v8 = vpop.f32.mrf.mxu1 }
 0x47f   : > { %v6879_v7 = vpop.eup %6878  ;;  %v4217_v43 = vpop.f32.mrf.mxu0 }
 0x480   : > { %5332 = vst [vmem:[%s9168_s23 + $0x80] sm:$0xff] %v5236_v11  ;;  %v5063_v51 = vmul.f32 0.6931472, %v6879_v7  ;;  %v4953_v40 = vmax.f32 %v4633_v30, 1e-10  ;;  %v4664_v7 = vpop.f32.mrf.mxu1 }
 0x481   : > { %v4220_v4 = vpop.f32.mrf.mxu0  ;;  %4411 = vmatmul.mubr.bf16.gmra.mxu0 %v6793_v42 }
 0x482   : > { %v5237_v12 = vmul.f32 4.3429446, %v5063_v51  ;;  %6886 = vlog2.f32 %v4953_v40  ;;  %v4638_v59 = vadd.f32 %v6197_v27, %v4220_v4  ;;  %4418 = vmatprep.mubr.bf16.mxu0 %v6798_v16  ;;  %v6809_v40 = vld [vmem:[%s9463_s3 + $0x3a8] ss:$12 sps:$4 sm:$0xff]  }
 0x483   : > { %v6881_v32 = vpop.eup %6880  ;;  %v4222_v49 = vpop.f32.mrf.mxu0 }
 0x484   : > { %5333 = vst [vmem:[%s9168_s23 + $0x88] sm:$0xff] %v5237_v12  ;;  %v5065_v5 = vmul.f32 0.6931472, %v6881_v32  ;;  %v4954_v45 = vmax.f32 %v4638_v59, 1e-10 }
 0x485   : > { %v4223_v58 = vpop.f32.mrf.mxu0  ;;  %v6814_v59 = vld [vmem:[%s9463_s3 + $0x3c4] ss:$12 sps:$4 sm:$0xff]  }
 0x486   : > { %v5238_v50 = vmul.f32 4.3429446, %v5065_v5  ;;  %6888 = vlog2.f32 %v4954_v45  ;;  %v4641_v55 = vadd.f32 %v6198_v39, %v4223_v58 }
 0x487   : > { %v6883_v37 = vpop.eup %6882  ;;  %v4225_v2 = vpop.f32.mrf.mxu0 }
 0x488   : > { %5334 = vst [vmem:[%s9168_s23 + $0x90] sm:$0xff] %v5238_v50  ;;  %v5067_v52 = vmul.f32 0.6931472, %v6883_v37  ;;  %v4955_v62 = vmax.f32 %v4641_v55, 1e-10 }
 0x489   : > { %v4228_v19 = vpop.f32.mrf.mxu0  ;;  %4419 = vmatmul.mubr.bf16.gmra.mxu0 %v6796_v60 }
 0x48a   : > { %v5239_v36 = vmul.f32 4.3429446, %v5067_v52  ;;  %6890 = vlog2.f32 %v4955_v62  ;;  %v4646_v13 = vadd.f32 %v4645_v0, %v4228_v19  ;;  %4426 = vmatprep.mubr.bf16.mxu0 %v6803_v47  ;;  %v6209_v0 = vpop.f32.mrf.mxu1  ;;  %v6812_v62 = vld [vmem:[%s9463_s3 + $0x3c0] ss:$12 sps:$4 sm:$0xff]  }
 0x48b   : > { %v6885_v46 = vpop.eup %6884  ;;  %v4230_v20 = vpop.f32.mrf.mxu0 }
 0x48c   : > { %5335 = vst [vmem:[%s9168_s23 + $0x98] sm:$0xff] %v5239_v36  ;;  %v5069_v28 = vmul.f32 0.6931472, %v6885_v46  ;;  %v4956_v27 = vmax.f32 %v4646_v13, 1e-10  ;;  %v4677_v37 = vpop.f32.mrf.mxu1 }
 0x48d   : > { %v4231_v61 = vpop.f32.mrf.mxu0  ;;  %v6819_v13 = vld [vmem:[%s9463_s3 + $0x3dc] ss:$12 sps:$4 sm:$0xff]  }
 0x48e   : > { %v5240_v9 = vmul.f32 4.3429446, %v5069_v28  ;;  %6892 = vlog2.f32 %v4956_v27  ;;  %v4649_v21 = vadd.f32 %v4648_v44, %v4231_v61  ;;  %v6210_v44 = vpop.f32.mrf.mxu1 }
 0x48f   : > { %v6887_v48 = vpop.eup %6886  ;;  %v4233_v15 = vpop.f32.mrf.mxu0 }
 0x490   : > { %5336 = vst [vmem:[%s9168_s23 + $0xa0] sm:$0xff] %v5240_v9  ;;  %v5071_v6 = vmul.f32 0.6931472, %v6887_v48  ;;  %v4957_v34 = vmax.f32 %v4649_v21, 1e-10  ;;  %v4680_v48 = vpop.f32.mrf.mxu1 }
 0x491   : > { %v4236_v54 = vpop.f32.mrf.mxu0  ;;  %4427 = vmatmul.mubr.bf16.gmra.mxu0 %v6801_v24 }
 0x492   : > { %v5241_v53 = vmul.f32 4.3429446, %v5071_v6  ;;  %6894 = vlog2.f32 %v4957_v34  ;;  %v4654_v10 = vadd.f32 %v6201_v29, %v4236_v54  ;;  %4434 = vmatprep.mubr.bf16.mxu0 %v6806_v18  ;;  %v6817_v34 = vld [vmem:[%s9463_s3 + $0x3d8] ss:$12 sps:$4 sm:$0xff]  }
 0x493   : > { %v6889_v22 = vpop.eup %6888  ;;  %v4238_v38 = vpop.f32.mrf.mxu0 }
 0x494   : > { %5337 = vst [vmem:[%s9168_s23 + $0xa8] sm:$0xff] %v5241_v53  ;;  %v5073_v14 = vmul.f32 0.6931472, %v6889_v22  ;;  %v4958_v39 = vmax.f32 %v4654_v10, 1e-10 }
 0x495   : > { %v4239_v63 = vpop.f32.mrf.mxu0  ;;  %v6822_v10 = vld [vmem:[%s9463_s3 + $0x3f4] ss:$12 sps:$4 sm:$0xff]  }
 0x496   : > { %v5242_v17 = vmul.f32 4.3429446, %v5073_v14  ;;  %6896 = vlog2.f32 %v4958_v39  ;;  %v4657_v26 = vadd.f32 %v6202_v33, %v4239_v63 }
 0x497   : > { %v6891_v41 = vpop.eup %6890  ;;  %v4241_v25 = vpop.f32.mrf.mxu0 }
 0x498   : > { %5338 = vst [vmem:[%s9168_s23 + $0xb0] sm:$0xff] %v5242_v17  ;;  %v5075_v23 = vmul.f32 0.6931472, %v6891_v41  ;;  %v4959_v1 = vmax.f32 %v4657_v26, 1e-10 }
 0x499   : > { %v4244_v57 = vpop.f32.mrf.mxu0  ;;  %4435 = vmatmul.mubr.bf16.gmra.mxu0 %v6804_v35 }
 0x49a   : > { %v5243_v42 = vmul.f32 4.3429446, %v5075_v23  ;;  %6898 = vlog2.f32 %v4959_v1  ;;  %v4662_v11 = vadd.f32 %v4661_v3, %v4244_v57  ;;  %4442 = vmatprep.mubr.bf16.mxu0 %v6811_v56  ;;  %v6213_v3 = vpop.f32.mrf.mxu1  ;;  %v6820_v1 = vld [vmem:[%s9463_s3 + $0x3f0] ss:$12 sps:$4 sm:$0xff]  }
 0x49b   : > { %v6893_v30 = vpop.eup %6892  ;;  %v4246_v16 = vpop.f32.mrf.mxu0 }
 0x49c   : > { %5339 = vst [vmem:[%s9168_s23 + $0xb8] sm:$0xff] %v5243_v42  ;;  %v5077_v43 = vmul.f32 0.6931472, %v6893_v30  ;;  %v4960_v29 = vmax.f32 %v4662_v11, 1e-10  ;;  %v4693_v41 = vpop.f32.mrf.mxu1 }
 0x49d   : > { %v4247_v51 = vpop.f32.mrf.mxu0  ;;  %v6827_v11 = vld [vmem:[%s9463_s3 + $0x40c] ss:$12 sps:$4 sm:$0xff]  }
 0x49e   : > { %v5244_v4 = vmul.f32 4.3429446, %v5077_v43  ;;  %6900 = vlog2.f32 %v4960_v29  ;;  %v4665_v12 = vadd.f32 %v4664_v7, %v4247_v51  ;;  %v6214_v7 = vpop.f32.mrf.mxu1 }
 0x49f   : > { %v6895_v32 = vpop.eup %6894  ;;  %v4249_v49 = vpop.f32.mrf.mxu0 }
 0x4a0   : > { %5340 = vst [vmem:[%s9168_s23 + $0xc0] sm:$0xff] %v5244_v4  ;;  %v5079_v5 = vmul.f32 0.6931472, %v6895_v32  ;;  %v4961_v45 = vmax.f32 %v4665_v12, 1e-10  ;;  %v4696_v32 = vpop.f32.mrf.mxu1 }
 0x4a1   : > { %v4252_v58 = vpop.f32.mrf.mxu0  ;;  %4443 = vmatmul.mubr.bf16.gmra.mxu0 %v6809_v40 }
 0x4a2   : > { %v5245_v60 = vmul.f32 4.3429446, %v5079_v5  ;;  %6902 = vlog2.f32 %v4961_v45  ;;  %v4670_v50 = vadd.f32 %v6205_v31, %v4252_v58  ;;  %4450 = vmatprep.mubr.bf16.mxu0 %v6814_v59  ;;  %v6825_v45 = vld [vmem:[%s9463_s3 + $0x408] ss:$12 sps:$4 sm:$0xff]  }
 0x4a3   : > { %v6897_v55 = vpop.eup %6896  ;;  %v4254_v47 = vpop.f32.mrf.mxu0 }
 0x4a4   : > { %5341 = vst [vmem:[%s9168_s23 + $0xc8] sm:$0xff] %v5245_v60  ;;  %v5081_v2 = vmul.f32 0.6931472, %v6897_v55  ;;  %v4962_v33 = vmax.f32 %v4670_v50, 1e-10 }
 0x4a5   : > { %v4255_v52 = vpop.f32.mrf.mxu0  ;;  %v6830_v50 = vld [vmem:[%s9463_s3 + $0x424] ss:$12 sps:$4 sm:$0xff]  }
 0x4a6   : > { %v5246_v19 = vmul.f32 4.3429446, %v5081_v2  ;;  %6904 = vlog2.f32 %v4962_v33  ;;  %v4673_v36 = vadd.f32 %v6206_v8, %v4255_v52 }
 0x4a7   : > { %v6899_v46 = vpop.eup %6898  ;;  %v4257_v20 = vpop.f32.mrf.mxu0 }
 0x4a8   : > { %5342 = vst [vmem:[%s9168_s23 + $0xd0] sm:$0xff] %v5246_v19  ;;  %v5083_v28 = vmul.f32 0.6931472, %v6899_v46  ;;  %v4963_v27 = vmax.f32 %v4673_v36, 1e-10 }
 0x4a9   : > { %v4260_v61 = vpop.f32.mrf.mxu0  ;;  %4451 = vmatmul.mubr.bf16.gmra.mxu0 %v6812_v62 }
 0x4aa   : > { %v5247_v24 = vmul.f32 4.3429446, %v5083_v28  ;;  %6906 = vlog2.f32 %v4963_v27  ;;  %v4678_v9 = vadd.f32 %v4677_v37, %v4260_v61  ;;  %4458 = vmatprep.mubr.bf16.mxu0 %v6819_v13  ;;  %v6217_v37 = vpop.f32.mrf.mxu1  ;;  %v6828_v27 = vld [vmem:[%s9463_s3 + $0x420] ss:$12 sps:$4 sm:$0xff]  }
 0x4ab   : > { %v6901_v21 = vpop.eup %6900  ;;  %v4262_v18 = vpop.f32.mrf.mxu0 }
 0x4ac   : > { %5343 = vst [vmem:[%s9168_s23 + $0xd8] sm:$0xff] %v5247_v24  ;;  %v5085_v15 = vmul.f32 0.6931472, %v6901_v21  ;;  %v4964_v31 = vmax.f32 %v4678_v9, 1e-10  ;;  %v4709_v46 = vpop.f32.mrf.mxu1 }
 0x4ad   : > { %v4263_v6 = vpop.f32.mrf.mxu0  ;;  %v6835_v9 = vld [vmem:[%s9463_s3 + $0x43c] ss:$12 sps:$4 sm:$0xff]  }
 0x4ae   : > { %v5248_v54 = vmul.f32 4.3429446, %v5085_v15  ;;  %6908 = vlog2.f32 %v4964_v31  ;;  %v4681_v53 = vadd.f32 %v4680_v48, %v4263_v6  ;;  %v6218_v48 = vpop.f32.mrf.mxu1 }
 0x4af   : > { %v6903_v22 = vpop.eup %6902  ;;  %v4265_v38 = vpop.f32.mrf.mxu0 }
 0x4b0   : > { %5344 = vst [vmem:[%s9168_s23 + $0xe0] sm:$0xff] %v5248_v54  ;;  %v5087_v14 = vmul.f32 0.6931472, %v6903_v22  ;;  %v4965_v39 = vmax.f32 %v4681_v53, 1e-10  ;;  %v4712_v22 = vpop.f32.mrf.mxu1 }
 0x4b1   : > { %v4268_v63 = vpop.f32.mrf.mxu0  ;;  %4459 = vmatmul.mubr.bf16.gmra.mxu0 %v6817_v34 }
 0x4b2   : > { %v5249_v35 = vmul.f32 4.3429446, %v5087_v14  ;;  %6910 = vlog2.f32 %v4965_v39  ;;  %v4686_v17 = vadd.f32 %v6209_v0, %v4268_v63  ;;  %4466 = vmatprep.mubr.bf16.mxu0 %v6822_v10  ;;  %v6833_v39 = vld [vmem:[%s9463_s3 + $0x438] ss:$12 sps:$4 sm:$0xff]  }
 0x4b3   : > { %v6905_v26 = vpop.eup %6904  ;;  %v4270_v56 = vpop.f32.mrf.mxu0 }
 0x4b4   : > { %5345 = vst [vmem:[%s9168_s23 + $0xe8] sm:$0xff] %v5249_v35  ;;  %v5089_v25 = vmul.f32 0.6931472, %v6905_v26  ;;  %v4966_v8 = vmax.f32 %v4686_v17, 1e-10 }
 0x4b5   : > { %v4271_v23 = vpop.f32.mrf.mxu0  ;;  %v6838_v17 = vld [vmem:[%s9463_s3 + $0x454] ss:$12 sps:$4 sm:$0xff]  }
 0x4b6   : > { %v5250_v57 = vmul.f32 4.3429446, %v5089_v25  ;;  %6912 = vlog2.f32 %v4966_v8  ;;  %v4689_v42 = vadd.f32 %v6210_v44, %v4271_v23 }
 0x4b7   : > { %v6907_v30 = vpop.eup %6906  ;;  %v4273_v16 = vpop.f32.mrf.mxu0 }
 0x4b8   : > { %5346 = vst [vmem:[%s9168_s23 + $0xf0] sm:$0xff] %v5250_v57  ;;  %v5091_v43 = vmul.f32 0.6931472, %v6907_v30  ;;  %v4967_v29 = vmax.f32 %v4689_v42, 1e-10 }
 0x4b9   : > { %v4276_v51 = vpop.f32.mrf.mxu0  ;;  %4467 = vmatmul.mubr.bf16.gmra.mxu0 %v6820_v1 }
 0x4ba   : > { %v5251_v40 = vmul.f32 4.3429446, %v5091_v43  ;;  %6914 = vlog2.f32 %v4967_v29  ;;  %v4694_v4 = vadd.f32 %v4693_v41, %v4276_v51  ;;  %4474 = vmatprep.mubr.bf16.mxu0 %v6827_v11  ;;  %v6221_v41 = vpop.f32.mrf.mxu1  ;;  %v6836_v29 = vld [vmem:[%s9463_s3 + $0x450] ss:$12 sps:$4 sm:$0xff]  }
 0x4bb   : > { %v6909_v12 = vpop.eup %6908  ;;  %v4278_v59 = vpop.f32.mrf.mxu0 }
 0x4bc   : > { %5347 = vst [vmem:[%s9168_s23 + $0xf8] sm:$0xff] %v5251_v40  ;;  %v5093_v49 = vmul.f32 0.6931472, %v6909_v12  ;;  %v4968_v0 = vmax.f32 %v4694_v4, 1e-10  ;;  %v4725_v30 = vpop.f32.mrf.mxu1 }
 0x4bd   : > { %v4279_v5 = vpop.f32.mrf.mxu0  ;;  %v6843_v4 = vld [vmem:[%s9463_s3 + $0x46c] ss:$12 sps:$4 sm:$0xff]  }
 0x4be   : > { %v5252_v58 = vmul.f32 4.3429446, %v5093_v49  ;;  %6916 = vlog2.f32 %v4968_v0  ;;  %v4697_v60 = vadd.f32 %v4696_v32, %v4279_v5  ;;  %v6222_v32 = vpop.f32.mrf.mxu1 }
 0x4bf   : > { %v6911_v55 = vpop.eup %6910  ;;  %v4281_v47 = vpop.f32.mrf.mxu0 }
 0x4c0   : > { %5348 = vst [vmem:[%s9168_s23 + $0x100] sm:$0xff] %v5252_v58  ;;  %v5095_v2 = vmul.f32 0.6931472, %v6911_v55  ;;  %v4969_v33 = vmax.f32 %v4697_v60, 1e-10  ;;  %v4728_v55 = vpop.f32.mrf.mxu1 }
 0x4c1   : > { %v4284_v52 = vpop.f32.mrf.mxu0  ;;  %4475 = vmatmul.mubr.bf16.gmra.mxu0 %v6825_v45 }
 0x4c2   : > { %v5253_v62 = vmul.f32 4.3429446, %v5095_v2  ;;  %6918 = vlog2.f32 %v4969_v33  ;;  %v4702_v19 = vadd.f32 %v6213_v3, %v4284_v52  ;;  %4482 = vmatprep.mubr.bf16.mxu0 %v6830_v50  ;;  %v6841_v33 = vld [vmem:[%s9463_s3 + $0x468] ss:$12 sps:$4 sm:$0xff]  }
 0x4c3   : > { %v6913_v36 = vpop.eup %6912  ;;  %v4286_v13 = vpop.f32.mrf.mxu0 }
 0x4c4   : > { %5349 = vst [vmem:[%s9168_s23 + $0x108] sm:$0xff] %v5253_v62  ;;  %v5097_v20 = vmul.f32 0.6931472, %v6913_v36  ;;  %v4970_v44 = vmax.f32 %v4702_v19, 1e-10  ;;  %v6225_v13 = vpop.f32.mrf.mxu1 }
 0x4c5   : > { %v4287_v28 = vpop.f32.mrf.mxu0 }
 0x4c6   : > { %v5254_v61 = vmul.f32 4.3429446, %v5097_v20  ;;  %6920 = vlog2.f32 %v4970_v44  ;;  %v4705_v24 = vadd.f32 %v6214_v7, %v4287_v28 }
 0x4c7   : > { %v6915_v21 = vpop.eup %6914  ;;  %v4289_v18 = vpop.f32.mrf.mxu0 }
 0x4c8   : > { %5350 = vst [vmem:[%s9168_s23 + $0x110] sm:$0xff] %v5254_v61  ;;  %v5099_v15 = vmul.f32 0.6931472, %v6915_v21  ;;  %v4971_v31 = vmax.f32 %v4705_v24, 1e-10 }
 0x4c9   : > { %v4292_v6 = vpop.f32.mrf.mxu0  ;;  %4483 = vmatmul.mubr.bf16.gmra.mxu0 %v6828_v27 }
 0x4ca   : > { %v5255_v34 = vmul.f32 4.3429446, %v5099_v15  ;;  %6922 = vlog2.f32 %v4971_v31  ;;  %v4710_v54 = vadd.f32 %v4709_v46, %v4292_v6  ;;  %4490 = vmatprep.mubr.bf16.mxu0 %v6835_v9  ;;  %v4741_v9 = vpop.f32.mrf.mxu1 }
 0x4cb   : > { %v6917_v53 = vpop.eup %6916  ;;  %v4294_v10 = vpop.f32.mrf.mxu0 }
 0x4cc   : > { %5351 = vst [vmem:[%s9168_s23 + $0x118] sm:$0xff] %v5255_v34  ;;  %v5101_v38 = vmul.f32 0.6931472, %v6917_v53  ;;  %v4972_v3 = vmax.f32 %v4710_v54, 1e-10  ;;  %v6226_v54 = vpop.f32.mrf.mxu1 }
 0x4cd   : > { %v4295_v14 = vpop.f32.mrf.mxu0 }
 0x4ce   : > { %v5256_v63 = vmul.f32 4.3429446, %v5101_v38  ;;  %6924 = vlog2.f32 %v4972_v3  ;;  %v4713_v35 = vadd.f32 %v4712_v22, %v4295_v14 }
 0x4cf   : > { %v6919_v26 = vpop.eup %6918  ;;  %v4297_v56 = vpop.f32.mrf.mxu0 }
 0x4d0   : > { %5352 = vst [vmem:[%s9168_s23 + $0x120] sm:$0xff] %v5256_v63  ;;  %v5103_v25 = vmul.f32 0.6931472, %v6919_v26  ;;  %v4973_v8 = vmax.f32 %v4713_v35, 1e-10  ;;  %v4744_v63 = vpop.f32.mrf.mxu1 }
 0x4d1   : > { %v4300_v23 = vpop.f32.mrf.mxu0  ;;  %4491 = vmatmul.mubr.bf16.gmra.mxu0 %v6833_v39 }
 0x4d2   : > { %v5257_v1 = vmul.f32 4.3429446, %v5103_v25  ;;  %6926 = vlog2.f32 %v4973_v8  ;;  %v4718_v57 = vadd.f32 %v6217_v37, %v4300_v23  ;;  %4498 = vmatprep.mubr.bf16.mxu0 %v6838_v17  ;;  %v6229_v23 = vpop.f32.mrf.mxu1 }
 0x4d3   : > { %v6921_v42 = vpop.eup %6920  ;;  %v4302_v11 = vpop.f32.mrf.mxu0 }
 0x4d4   : > { %5353 = vst [vmem:[%s9168_s23 + $0x128] sm:$0xff] %v5257_v1  ;;  %v5105_v16 = vmul.f32 0.6931472, %v6921_v42  ;;  %v4974_v7 = vmax.f32 %v4718_v57, 1e-10 }
 0x4d5   : > { %v4303_v43 = vpop.f32.mrf.mxu0 }
 0x4d6   : > { %v5258_v51 = vmul.f32 4.3429446, %v5105_v16  ;;  %6928 = vlog2.f32 %v4974_v7  ;;  %v4721_v40 = vadd.f32 %v6218_v48, %v4303_v43  ;;  %v4757_v43 = vpop.f32.mrf.mxu1 }
 0x4d7   : > { %v6923_v12 = vpop.eup %6922  ;;  %v4305_v59 = vpop.f32.mrf.mxu0 }
 0x4d8   : > { %5354 = vst [vmem:[%s9168_s23 + $0x130] sm:$0xff] %v5258_v51  ;;  %v5107_v49 = vmul.f32 0.6931472, %v6923_v12  ;;  %v4975_v0 = vmax.f32 %v4721_v40, 1e-10 }
 0x4d9   : > { %v4308_v5 = vpop.f32.mrf.mxu0  ;;  %4499 = vmatmul.mubr.bf16.gmra.mxu0 %v6836_v29 }
 0x4da   : > { %v5259_v45 = vmul.f32 4.3429446, %v5107_v49  ;;  %6930 = vlog2.f32 %v4975_v0  ;;  %v4726_v58 = vadd.f32 %v4725_v30, %v4308_v5  ;;  %4506 = vmatprep.mubr.bf16.mxu0 %v6843_v4  ;;  %v6230_v49 = vpop.f32.mrf.mxu1 }
 0x4db   : > { %v6925_v60 = vpop.eup %6924  ;;  %v4310_v50 = vpop.f32.mrf.mxu0 }
 0x4dc   : > { %5355 = vst [vmem:[%s9168_s23 + $0x138] sm:$0xff] %v5259_v45  ;;  %v5109_v47 = vmul.f32 0.6931472, %v6925_v60  ;;  %v4976_v37 = vmax.f32 %v4726_v58, 1e-10 }
 0x4dd   : > { %v4311_v2 = vpop.f32.mrf.mxu0 }
 0x4de   : > { %v5260_v52 = vmul.f32 4.3429446, %v5109_v47  ;;  %6932 = vlog2.f32 %v4976_v37  ;;  %v4729_v62 = vadd.f32 %v4728_v55, %v4311_v2  ;;  %v4760_v47 = vpop.f32.mrf.mxu1 }
 0x4df   : > { %v6927_v19 = vpop.eup %6926  ;;  %v4313_v36 = vpop.f32.mrf.mxu0 }
 0x4e0   : > { %5356 = vst [vmem:[%s9168_s23 + $0x140] sm:$0xff] %v5260_v52  ;;  %v5111_v46 = vmul.f32 0.6931472, %v6927_v19  ;;  %v4977_v20 = vmax.f32 %v4729_v62, 1e-10 }
 0x4e1   : > { %v4316_v44 = vpop.f32.mrf.mxu0  ;;  %4507 = vmatmul.mubr.bf16.gmra.mxu0 %v6841_v33 }
 0x4e2   : > { %v5261_v28 = vmul.f32 4.3429446, %v5111_v46  ;;  %6934 = vlog2.f32 %v4977_v20  ;;  %v4734_v27 = vadd.f32 %v6221_v41, %v4316_v44 }
 0x4e3   : > { %v6929_v61 = vpop.eup %6928  ;;  %v4318_v24 = vpop.f32.mrf.mxu0 }
 0x4e4   : > { %5357 = vst [vmem:[%s9168_s23 + $0x148] sm:$0xff] %v5261_v28  ;;  %v5113_v21 = vmul.f32 0.6931472, %v6929_v61  ;;  %v4978_v18 = vmax.f32 %v4734_v27, 1e-10 }
 0x4e5   : > { %v4319_v48 = vpop.f32.mrf.mxu0 }
 0x4e6   : > { %v5262_v15 = vmul.f32 4.3429446, %v5113_v21  ;;  %6936 = vlog2.f32 %v4978_v18  ;;  %v4737_v31 = vadd.f32 %v6222_v32, %v4319_v48 }
 0x4e7   : > { %v6931_v6 = vpop.eup %6930  ;;  %v4321_v34 = vpop.f32.mrf.mxu0 }
 0x4e8   : > { %5358 = vst [vmem:[%s9168_s23 + $0x150] sm:$0xff] %v5262_v15  ;;  %v5115_v53 = vmul.f32 0.6931472, %v6931_v6  ;;  %v4979_v10 = vmax.f32 %v4737_v31, 1e-10 }
 0x4e9   : > { %v4324_v22 = vpop.f32.mrf.mxu0 }
 0x4ea   : > { %v5263_v38 = vmul.f32 4.3429446, %v5115_v53  ;;  %6938 = vlog2.f32 %v4979_v10  ;;  %v4742_v3 = vadd.f32 %v4741_v9, %v4324_v22 }
 0x4eb   : > { %v6933_v14 = vpop.eup %6932  ;;  %v4326_v39 = vpop.f32.mrf.mxu0 }
 0x4ec   : > { %5359 = vst [vmem:[%s9168_s23 + $0x158] sm:$0xff] %v5263_v38  ;;  %v5117_v35 = vmul.f32 0.6931472, %v6933_v14  ;;  %v4980_v17 = vmax.f32 %v4742_v3, 1e-10 }
 0x4ed   : > { %v4327_v26 = vpop.f32.mrf.mxu0 }
 0x4ee   : > { %v5264_v56 = vmul.f32 4.3429446, %v5117_v35  ;;  %6940 = vlog2.f32 %v4980_v17  ;;  %v4745_v41 = vadd.f32 %v4744_v63, %v4327_v26 }
 0x4ef   : > { %v6935_v25 = vpop.eup %6934  ;;  %v4329_v8 = vpop.f32.mrf.mxu0 }
 0x4f0   : > { %5360 = vst [vmem:[%s9168_s23 + $0x160] sm:$0xff] %v5264_v56  ;;  %v5119_v1 = vmul.f32 0.6931472, %v6935_v25  ;;  %v4981_v57 = vmax.f32 %v4745_v41, 1e-10 }
 0x4f1   : > { %v4332_v42 = vpop.f32.mrf.mxu0 }
 0x4f2   : > { %v5265_v11 = vmul.f32 4.3429446, %v5119_v1  ;;  %6942 = vlog2.f32 %v4981_v57  ;;  %v4750_v30 = vadd.f32 %v6225_v13, %v4332_v42  ;;  %v6233_v13 = vpop.f32.mrf.mxu1 }
 0x4f3   : > { %v6937_v16 = vpop.eup %6936  ;;  %v4334_v7 = vpop.f32.mrf.mxu0 }
 0x4f4   : > { %5361 = vst [vmem:[%s9168_s23 + $0x168] sm:$0xff] %v5265_v11  ;;  %v5121_v29 = vmul.f32 0.6931472, %v6937_v16  ;;  %v4982_v51 = vmax.f32 %v4750_v30, 1e-10  ;;  %v4773_v9 = vpop.f32.mrf.mxu1 }
 0x4f5   : > { %v4335_v40 = vpop.f32.mrf.mxu0 }
 0x4f6   : > { %v5266_v4 = vmul.f32 4.3429446, %v5121_v29  ;;  %6944 = vlog2.f32 %v4982_v51  ;;  %v4753_v12 = vadd.f32 %v6226_v54, %v4335_v40  ;;  %v6234_v54 = vpop.f32.mrf.mxu1 }
 0x4f7   : > { %v6939_v59 = vpop.eup %6938  ;;  %v4337_v32 = vpop.f32.mrf.mxu0 }
 0x4f8   : > { %5362 = vst [vmem:[%s9168_s23 + $0x170] sm:$0xff] %v5266_v4  ;;  %v5123_v0 = vmul.f32 0.6931472, %v6939_v59  ;;  %v4983_v5 = vmax.f32 %v4753_v12, 1e-10  ;;  %v4776_v63 = vpop.f32.mrf.mxu1 }
 0x4f9   : > { %v4340_v45 = vpop.f32.mrf.mxu0 }
 0x4fa   : > { %v5267_v58 = vmul.f32 4.3429446, %v5123_v0  ;;  %6946 = vlog2.f32 %v4983_v5  ;;  %v4758_v60 = vadd.f32 %v4757_v43, %v4340_v45 }
 0x4fb   : > { %v6941_v50 = vpop.eup %6940  ;;  %v4342_v55 = vpop.f32.mrf.mxu0 }
 0x4fc   : > { %5363 = vst [vmem:[%s9168_s23 + $0x178] sm:$0xff] %v5267_v58  ;;  %v5125_v37 = vmul.f32 0.6931472, %v6941_v50  ;;  %v4984_v2 = vmax.f32 %v4758_v60, 1e-10 }
 0x4fd   : > { %v4343_v33 = vpop.f32.mrf.mxu0 }
 0x4fe   : > { %v5268_v52 = vmul.f32 4.3429446, %v5125_v37  ;;  %6948 = vlog2.f32 %v4984_v2  ;;  %v4761_v62 = vadd.f32 %v4760_v47, %v4343_v33 }
 0x4ff   : > { %v6943_v19 = vpop.eup %6942  ;;  %v4345_v36 = vpop.f32.mrf.mxu0 }
 0x500   : > { %5364 = vst [vmem:[%s9168_s23 + $0x180] sm:$0xff] %v5268_v52  ;;  %v5127_v46 = vmul.f32 0.6931472, %v6943_v19  ;;  %v4985_v20 = vmax.f32 %v4761_v62, 1e-10 }
 0x501   : > { %v4348_v44 = vpop.f32.mrf.mxu0 }
 0x502   : > { %v5269_v28 = vmul.f32 4.3429446, %v5127_v46  ;;  %6950 = vlog2.f32 %v4985_v20  ;;  %v4766_v27 = vadd.f32 %v6229_v23, %v4348_v44  ;;  %v6237_v23 = vpop.f32.mrf.mxu1 }
 0x503   : > { %v6945_v61 = vpop.eup %6944  ;;  %v4350_v24 = vpop.f32.mrf.mxu0 }
 0x504   : > { %5365 = vst [vmem:[%s9168_s23 + $0x188] sm:$0xff] %v5269_v28  ;;  %v5129_v21 = vmul.f32 0.6931472, %v6945_v61  ;;  %v4986_v18 = vmax.f32 %v4766_v27, 1e-10  ;;  %v4789_v43 = vpop.f32.mrf.mxu1 }
 0x505   : > { %v4351_v48 = vpop.f32.mrf.mxu0 }
 0x506   : > { %v5270_v15 = vmul.f32 4.3429446, %v5129_v21  ;;  %6952 = vlog2.f32 %v4986_v18  ;;  %v4769_v31 = vadd.f32 %v6230_v49, %v4351_v48  ;;  %v6238_v49 = vpop.f32.mrf.mxu1 }
 0x507   : > { %v6947_v6 = vpop.eup %6946  ;;  %v4353_v34 = vpop.f32.mrf.mxu0 }
 0x508   : > { %5366 = vst [vmem:[%s9168_s23 + $0x190] sm:$0xff] %v5270_v15  ;;  %v5131_v53 = vmul.f32 0.6931472, %v6947_v6  ;;  %v4987_v10 = vmax.f32 %v4769_v31, 1e-10  ;;  %v4792_v47 = vpop.f32.mrf.mxu1 }
 0x509   : > { %v4356_v22 = vpop.f32.mrf.mxu0 }
 0x50a   : > { %v5271_v38 = vmul.f32 4.3429446, %v5131_v53  ;;  %6954 = vlog2.f32 %v4987_v10  ;;  %v4774_v3 = vadd.f32 %v4773_v9, %v4356_v22 }
 0x50b   : > { %v6949_v14 = vpop.eup %6948  ;;  %v4358_v39 = vpop.f32.mrf.mxu0 }
 0x50c   : > { %5367 = vst [vmem:[%s9168_s23 + $0x198] sm:$0xff] %v5271_v38  ;;  %v5133_v35 = vmul.f32 0.6931472, %v6949_v14  ;;  %v4988_v17 = vmax.f32 %v4774_v3, 1e-10 }
 0x50d   : > { %v4359_v26 = vpop.f32.mrf.mxu0 }
 0x50e   : > { %v5272_v56 = vmul.f32 4.3429446, %v5133_v35  ;;  %6956 = vlog2.f32 %v4988_v17  ;;  %v4777_v41 = vadd.f32 %v4776_v63, %v4359_v26 }
 0x50f   : > { %v6951_v25 = vpop.eup %6950  ;;  %v4361_v8 = vpop.f32.mrf.mxu0 }
 0x510   : > { %5368 = vst [vmem:[%s9168_s23 + $0x1a0] sm:$0xff] %v5272_v56  ;;  %v5135_v1 = vmul.f32 0.6931472, %v6951_v25  ;;  %v4989_v57 = vmax.f32 %v4777_v41, 1e-10 }
 0x511   : > { %v4364_v42 = vpop.f32.mrf.mxu0 }
 0x512   : > { %v5273_v11 = vmul.f32 4.3429446, %v5135_v1  ;;  %6958 = vlog2.f32 %v4989_v57  ;;  %v4782_v30 = vadd.f32 %v6233_v13, %v4364_v42  ;;  %v6241_v13 = vpop.f32.mrf.mxu1 }
 0x513   : > { %v6953_v16 = vpop.eup %6952  ;;  %v4366_v7 = vpop.f32.mrf.mxu0 }
 0x514   : > { %5369 = vst [vmem:[%s9168_s23 + $0x1a8] sm:$0xff] %v5273_v11  ;;  %v5137_v29 = vmul.f32 0.6931472, %v6953_v16  ;;  %v4990_v51 = vmax.f32 %v4782_v30, 1e-10  ;;  %v4805_v9 = vpop.f32.mrf.mxu1 }
 0x515   : > { %v4367_v40 = vpop.f32.mrf.mxu0 }
 0x516   : > { %v5274_v4 = vmul.f32 4.3429446, %v5137_v29  ;;  %6960 = vlog2.f32 %v4990_v51  ;;  %v4785_v12 = vadd.f32 %v6234_v54, %v4367_v40  ;;  %v6242_v54 = vpop.f32.mrf.mxu1 }
 0x517   : > { %v6955_v59 = vpop.eup %6954  ;;  %v4369_v32 = vpop.f32.mrf.mxu0 }
 0x518   : > { %5370 = vst [vmem:[%s9168_s23 + $0x1b0] sm:$0xff] %v5274_v4  ;;  %v5139_v0 = vmul.f32 0.6931472, %v6955_v59  ;;  %v4991_v5 = vmax.f32 %v4785_v12, 1e-10  ;;  %v4808_v63 = vpop.f32.mrf.mxu1 }
 0x519   : > { %v4372_v45 = vpop.f32.mrf.mxu0 }
 0x51a   : > { %v5275_v58 = vmul.f32 4.3429446, %v5139_v0  ;;  %6962 = vlog2.f32 %v4991_v5  ;;  %v4790_v60 = vadd.f32 %v4789_v43, %v4372_v45 }
 0x51b   : > { %v6957_v50 = vpop.eup %6956  ;;  %v4374_v55 = vpop.f32.mrf.mxu0 }
 0x51c   : > { %5371 = vst [vmem:[%s9168_s23 + $0x1b8] sm:$0xff] %v5275_v58  ;;  %v5141_v37 = vmul.f32 0.6931472, %v6957_v50  ;;  %v4992_v2 = vmax.f32 %v4790_v60, 1e-10 }
 0x51d   : > { %v4375_v33 = vpop.f32.mrf.mxu0 }
 0x51e   : > { %v5276_v52 = vmul.f32 4.3429446, %v5141_v37  ;;  %6964 = vlog2.f32 %v4992_v2  ;;  %v4793_v62 = vadd.f32 %v4792_v47, %v4375_v33 }
 0x51f   : > { %v6959_v19 = vpop.eup %6958  ;;  %v4377_v36 = vpop.f32.mrf.mxu0 }
 0x520   : > { %5372 = vst [vmem:[%s9168_s23 + $0x1c0] sm:$0xff] %v5276_v52  ;;  %v5143_v46 = vmul.f32 0.6931472, %v6959_v19  ;;  %v4993_v20 = vmax.f32 %v4793_v62, 1e-10 }
 0x521   : > { %v4380_v44 = vpop.f32.mrf.mxu0 }
 0x522   : > { %v5277_v28 = vmul.f32 4.3429446, %v5143_v46  ;;  %6966 = vlog2.f32 %v4993_v20  ;;  %v4798_v27 = vadd.f32 %v6237_v23, %v4380_v44  ;;  %v6245_v23 = vpop.f32.mrf.mxu1 }
 0x523   : > { %v6961_v61 = vpop.eup %6960  ;;  %v4382_v24 = vpop.f32.mrf.mxu0 }
 0x524   : > { %5373 = vst [vmem:[%s9168_s23 + $0x1c8] sm:$0xff] %v5277_v28  ;;  %v5145_v21 = vmul.f32 0.6931472, %v6961_v61  ;;  %v4994_v18 = vmax.f32 %v4798_v27, 1e-10  ;;  %v4821_v43 = vpop.f32.mrf.mxu1 }
 0x525   : > { %v4383_v48 = vpop.f32.mrf.mxu0 }
 0x526   : > { %v5278_v15 = vmul.f32 4.3429446, %v5145_v21  ;;  %6968 = vlog2.f32 %v4994_v18  ;;  %v4801_v31 = vadd.f32 %v6238_v49, %v4383_v48  ;;  %v6246_v49 = vpop.f32.mrf.mxu1 }
 0x527   : > { %v6963_v6 = vpop.eup %6962  ;;  %v4385_v34 = vpop.f32.mrf.mxu0 }
 0x528   : > { %5374 = vst [vmem:[%s9168_s23 + $0x1d0] sm:$0xff] %v5278_v15  ;;  %v5147_v53 = vmul.f32 0.6931472, %v6963_v6  ;;  %v4995_v10 = vmax.f32 %v4801_v31, 1e-10  ;;  %v4824_v47 = vpop.f32.mrf.mxu1 }
 0x529   : > { %v4388_v22 = vpop.f32.mrf.mxu0 }
 0x52a   : > { %v5279_v38 = vmul.f32 4.3429446, %v5147_v53  ;;  %6970 = vlog2.f32 %v4995_v10  ;;  %v4806_v3 = vadd.f32 %v4805_v9, %v4388_v22 }
 0x52b   : > { %v6965_v14 = vpop.eup %6964  ;;  %v4390_v39 = vpop.f32.mrf.mxu0 }
 0x52c   : > { %5375 = vst [vmem:[%s9168_s23 + $0x1d8] sm:$0xff] %v5279_v38  ;;  %v5149_v35 = vmul.f32 0.6931472, %v6965_v14  ;;  %v4996_v17 = vmax.f32 %v4806_v3, 1e-10 }
 0x52d   : > { %v4391_v26 = vpop.f32.mrf.mxu0 }
 0x52e   : > { %v5280_v56 = vmul.f32 4.3429446, %v5149_v35  ;;  %6972 = vlog2.f32 %v4996_v17  ;;  %v4809_v41 = vadd.f32 %v4808_v63, %v4391_v26 }
 0x52f   : > { %v6967_v25 = vpop.eup %6966  ;;  %v4393_v8 = vpop.f32.mrf.mxu0 }
 0x530   : > { %5376 = vst [vmem:[%s9168_s23 + $0x1e0] sm:$0xff] %v5280_v56  ;;  %v5151_v1 = vmul.f32 0.6931472, %v6967_v25  ;;  %v4997_v57 = vmax.f32 %v4809_v41, 1e-10 }
 0x531   : > { %v4396_v42 = vpop.f32.mrf.mxu0 }
 0x532   : > { %v5281_v11 = vmul.f32 4.3429446, %v5151_v1  ;;  %6974 = vlog2.f32 %v4997_v57  ;;  %v4814_v30 = vadd.f32 %v6241_v13, %v4396_v42  ;;  %v6249_v13 = vpop.f32.mrf.mxu1 }
 0x533   : > { %v6969_v16 = vpop.eup %6968  ;;  %v4398_v7 = vpop.f32.mrf.mxu0 }
 0x534   : > { %5377 = vst [vmem:[%s9168_s23 + $0x1e8] sm:$0xff] %v5281_v11  ;;  %v5153_v29 = vmul.f32 0.6931472, %v6969_v16  ;;  %v4998_v51 = vmax.f32 %v4814_v30, 1e-10  ;;  %v4837_v9 = vpop.f32.mrf.mxu1 }
 0x535   : > { %v4399_v40 = vpop.f32.mrf.mxu0 }
 0x536   : > { %v5282_v4 = vmul.f32 4.3429446, %v5153_v29  ;;  %6976 = vlog2.f32 %v4998_v51  ;;  %v4817_v12 = vadd.f32 %v6242_v54, %v4399_v40  ;;  %v6250_v54 = vpop.f32.mrf.mxu1 }
 0x537   : > { %v6971_v59 = vpop.eup %6970  ;;  %v4401_v32 = vpop.f32.mrf.mxu0 }
 0x538   : > { %5378 = vst [vmem:[%s9168_s23 + $0x1f0] sm:$0xff] %v5282_v4  ;;  %v5155_v0 = vmul.f32 0.6931472, %v6971_v59  ;;  %v4999_v5 = vmax.f32 %v4817_v12, 1e-10  ;;  %v4840_v63 = vpop.f32.mrf.mxu1 }
 0x539   : > { %v4404_v45 = vpop.f32.mrf.mxu0 }
 0x53a   : > { %v5283_v58 = vmul.f32 4.3429446, %v5155_v0  ;;  %6978 = vlog2.f32 %v4999_v5  ;;  %v4822_v60 = vadd.f32 %v4821_v43, %v4404_v45 }
 0x53b   : > { %v6973_v50 = vpop.eup %6972  ;;  %v4406_v55 = vpop.f32.mrf.mxu0 }
 0x53c   : > { %5379 = vst [vmem:[%s9168_s23 + $0x1f8] sm:$0xff] %v5283_v58  ;;  %v5157_v37 = vmul.f32 0.6931472, %v6973_v50  ;;  %v5000_v2 = vmax.f32 %v4822_v60, 1e-10 }
 0x53d   : > { %v4407_v33 = vpop.f32.mrf.mxu0 }
 0x53e   : > { %v5284_v52 = vmul.f32 4.3429446, %v5157_v37  ;;  %6980 = vlog2.f32 %v5000_v2  ;;  %v4825_v62 = vadd.f32 %v4824_v47, %v4407_v33 }
 0x53f   : > { %v6975_v19 = vpop.eup %6974  ;;  %v4409_v36 = vpop.f32.mrf.mxu0 }
 0x540   : > { %5380 = vst [vmem:[%s9168_s23 + $0x200] sm:$0xff] %v5284_v52  ;;  %v5159_v46 = vmul.f32 0.6931472, %v6975_v19  ;;  %v5001_v20 = vmax.f32 %v4825_v62, 1e-10 }
 0x541   : > { %v4412_v44 = vpop.f32.mrf.mxu0 }
 0x542   : > { %v5285_v28 = vmul.f32 4.3429446, %v5159_v46  ;;  %6982 = vlog2.f32 %v5001_v20  ;;  %v4830_v27 = vadd.f32 %v6245_v23, %v4412_v44  ;;  %v6253_v23 = vpop.f32.mrf.mxu1 }
 0x543   : > { %v6977_v61 = vpop.eup %6976  ;;  %v4414_v24 = vpop.f32.mrf.mxu0 }
 0x544   : > { %5381 = vst [vmem:[%s9168_s23 + $0x208] sm:$0xff] %v5285_v28  ;;  %v5161_v21 = vmul.f32 0.6931472, %v6977_v61  ;;  %v5002_v18 = vmax.f32 %v4830_v27, 1e-10  ;;  %v4853_v43 = vpop.f32.mrf.mxu1 }
 0x545   : > { %v4415_v48 = vpop.f32.mrf.mxu0 }
 0x546   : > { %v5286_v15 = vmul.f32 4.3429446, %v5161_v21  ;;  %6984 = vlog2.f32 %v5002_v18  ;;  %v4833_v31 = vadd.f32 %v6246_v49, %v4415_v48  ;;  %v6254_v49 = vpop.f32.mrf.mxu1 }
 0x547   : > { %v6979_v6 = vpop.eup %6978  ;;  %v4417_v34 = vpop.f32.mrf.mxu0 }
 0x548   : > { %5382 = vst [vmem:[%s9168_s23 + $0x210] sm:$0xff] %v5286_v15  ;;  %v5163_v53 = vmul.f32 0.6931472, %v6979_v6  ;;  %v5003_v10 = vmax.f32 %v4833_v31, 1e-10  ;;  %v4856_v47 = vpop.f32.mrf.mxu1 }
 0x549   : > { %v4420_v22 = vpop.f32.mrf.mxu0 }
 0x54a   : > { %v5287_v38 = vmul.f32 4.3429446, %v5163_v53  ;;  %6986 = vlog2.f32 %v5003_v10  ;;  %v4838_v3 = vadd.f32 %v4837_v9, %v4420_v22 }
 0x54b   : > { %v6981_v14 = vpop.eup %6980  ;;  %v4422_v39 = vpop.f32.mrf.mxu0 }
 0x54c   : > { %5383 = vst [vmem:[%s9168_s23 + $0x218] sm:$0xff] %v5287_v38  ;;  %v5165_v35 = vmul.f32 0.6931472, %v6981_v14  ;;  %v5004_v17 = vmax.f32 %v4838_v3, 1e-10 }
 0x54d   : > { %v4423_v26 = vpop.f32.mrf.mxu0 }
 0x54e   : > { %v5288_v56 = vmul.f32 4.3429446, %v5165_v35  ;;  %6988 = vlog2.f32 %v5004_v17  ;;  %v4841_v41 = vadd.f32 %v4840_v63, %v4423_v26 }
 0x54f   : > { %v6983_v25 = vpop.eup %6982  ;;  %v4425_v8 = vpop.f32.mrf.mxu0 }
 0x550   : > { %5384 = vst [vmem:[%s9168_s23 + $0x220] sm:$0xff] %v5288_v56  ;;  %v5167_v1 = vmul.f32 0.6931472, %v6983_v25  ;;  %v5005_v57 = vmax.f32 %v4841_v41, 1e-10 }
 0x551   : > { %v4428_v42 = vpop.f32.mrf.mxu0 }
 0x552   : > { %v5289_v11 = vmul.f32 4.3429446, %v5167_v1  ;;  %6990 = vlog2.f32 %v5005_v57  ;;  %v4846_v30 = vadd.f32 %v6249_v13, %v4428_v42  ;;  %v6257_v13 = vpop.f32.mrf.mxu1 }
 0x553   : > { %v6985_v16 = vpop.eup %6984  ;;  %v4430_v7 = vpop.f32.mrf.mxu0 }
 0x554   : > { %5385 = vst [vmem:[%s9168_s23 + $0x228] sm:$0xff] %v5289_v11  ;;  %v5169_v29 = vmul.f32 0.6931472, %v6985_v16  ;;  %v5006_v51 = vmax.f32 %v4846_v30, 1e-10  ;;  %v4869_v9 = vpop.f32.mrf.mxu1 }
 0x555   : > { %v4431_v40 = vpop.f32.mrf.mxu0 }
 0x556   : > { %v5290_v4 = vmul.f32 4.3429446, %v5169_v29  ;;  %6992 = vlog2.f32 %v5006_v51  ;;  %v4849_v12 = vadd.f32 %v6250_v54, %v4431_v40  ;;  %v6258_v54 = vpop.f32.mrf.mxu1 }
 0x557   : > { %v6987_v59 = vpop.eup %6986  ;;  %v4433_v32 = vpop.f32.mrf.mxu0 }
 0x558   : > { %5386 = vst [vmem:[%s9168_s23 + $0x230] sm:$0xff] %v5290_v4  ;;  %v5171_v0 = vmul.f32 0.6931472, %v6987_v59  ;;  %v5007_v5 = vmax.f32 %v4849_v12, 1e-10  ;;  %v4872_v63 = vpop.f32.mrf.mxu1 }
 0x559   : > { %v4436_v45 = vpop.f32.mrf.mxu0 }
 0x55a   : > { %v5291_v58 = vmul.f32 4.3429446, %v5171_v0  ;;  %6994 = vlog2.f32 %v5007_v5  ;;  %v4854_v60 = vadd.f32 %v4853_v43, %v4436_v45 }
 0x55b   : > { %v6989_v50 = vpop.eup %6988  ;;  %v4438_v55 = vpop.f32.mrf.mxu0 }
 0x55c   : > { %5387 = vst [vmem:[%s9168_s23 + $0x238] sm:$0xff] %v5291_v58  ;;  %v5173_v37 = vmul.f32 0.6931472, %v6989_v50  ;;  %v5008_v2 = vmax.f32 %v4854_v60, 1e-10 }
 0x55d   : > { %v4439_v33 = vpop.f32.mrf.mxu0 }
 0x55e   : > { %v5292_v52 = vmul.f32 4.3429446, %v5173_v37  ;;  %6996 = vlog2.f32 %v5008_v2  ;;  %v4857_v62 = vadd.f32 %v4856_v47, %v4439_v33 }
 0x55f   : > { %v6991_v19 = vpop.eup %6990  ;;  %v4441_v36 = vpop.f32.mrf.mxu0 }
 0x560   : > { %5388 = vst [vmem:[%s9168_s23 + $0x240] sm:$0xff] %v5292_v52  ;;  %v5175_v46 = vmul.f32 0.6931472, %v6991_v19  ;;  %v5009_v20 = vmax.f32 %v4857_v62, 1e-10 }
 0x561   : > { %v4444_v44 = vpop.f32.mrf.mxu0 }
 0x562   : > { %v5293_v28 = vmul.f32 4.3429446, %v5175_v46  ;;  %6998 = vlog2.f32 %v5009_v20  ;;  %v4862_v27 = vadd.f32 %v6253_v23, %v4444_v44  ;;  %v6261_v23 = vpop.f32.mrf.mxu1 }
 0x563   : > { %v6993_v61 = vpop.eup %6992  ;;  %v4446_v24 = vpop.f32.mrf.mxu0 }
 0x564   : > { %5389 = vst [vmem:[%s9168_s23 + $0x248] sm:$0xff] %v5293_v28  ;;  %v5177_v21 = vmul.f32 0.6931472, %v6993_v61  ;;  %v5010_v18 = vmax.f32 %v4862_v27, 1e-10  ;;  %v4885_v43 = vpop.f32.mrf.mxu1 }
 0x565   : > { %v4447_v48 = vpop.f32.mrf.mxu0 }
 0x566   : > { %v5294_v15 = vmul.f32 4.3429446, %v5177_v21  ;;  %7000 = vlog2.f32 %v5010_v18  ;;  %v4865_v31 = vadd.f32 %v6254_v49, %v4447_v48  ;;  %v6262_v49 = vpop.f32.mrf.mxu1 }
 0x567   : > { %v6995_v6 = vpop.eup %6994  ;;  %v4449_v34 = vpop.f32.mrf.mxu0 }
 0x568   : > { %5390 = vst [vmem:[%s9168_s23 + $0x250] sm:$0xff] %v5294_v15  ;;  %v5179_v53 = vmul.f32 0.6931472, %v6995_v6  ;;  %v5011_v10 = vmax.f32 %v4865_v31, 1e-10  ;;  %v4888_v47 = vpop.f32.mrf.mxu1 }
 0x569   : > { %v4452_v22 = vpop.f32.mrf.mxu0 }
 0x56a   : > { %v5295_v38 = vmul.f32 4.3429446, %v5179_v53  ;;  %7002 = vlog2.f32 %v5011_v10  ;;  %v4870_v3 = vadd.f32 %v4869_v9, %v4452_v22 }
 0x56b   : > { %v6997_v14 = vpop.eup %6996  ;;  %v4454_v39 = vpop.f32.mrf.mxu0 }
 0x56c   : > { %5391 = vst [vmem:[%s9168_s23 + $0x258] sm:$0xff] %v5295_v38  ;;  %v5181_v35 = vmul.f32 0.6931472, %v6997_v14  ;;  %v5012_v17 = vmax.f32 %v4870_v3, 1e-10 }
 0x56d   : > { %v4455_v26 = vpop.f32.mrf.mxu0 }
 0x56e   : > { %v5296_v56 = vmul.f32 4.3429446, %v5181_v35  ;;  %7004 = vlog2.f32 %v5012_v17  ;;  %v4873_v41 = vadd.f32 %v4872_v63, %v4455_v26 }
 0x56f   : > { %v6999_v25 = vpop.eup %6998  ;;  %v4457_v8 = vpop.f32.mrf.mxu0 }
 0x570   : > { %5392 = vst [vmem:[%s9168_s23 + $0x260] sm:$0xff] %v5296_v56  ;;  %v5183_v1 = vmul.f32 0.6931472, %v6999_v25  ;;  %v5013_v57 = vmax.f32 %v4873_v41, 1e-10 }
 0x571   : > { %v4460_v42 = vpop.f32.mrf.mxu0 }
 0x572   : > { %v5297_v11 = vmul.f32 4.3429446, %v5183_v1  ;;  %7006 = vlog2.f32 %v5013_v57  ;;  %v4878_v30 = vadd.f32 %v6257_v13, %v4460_v42  ;;  %v6265_v13 = vpop.f32.mrf.mxu1 }
 0x573   : > { %v7001_v16 = vpop.eup %7000  ;;  %v4462_v7 = vpop.f32.mrf.mxu0 }
 0x574   : > { %5393 = vst [vmem:[%s9168_s23 + $0x268] sm:$0xff] %v5297_v11  ;;  %v5185_v29 = vmul.f32 0.6931472, %v7001_v16  ;;  %v5014_v51 = vmax.f32 %v4878_v30, 1e-10  ;;  %v4901_v9 = vpop.f32.mrf.mxu1 }
 0x575   : > { %v4463_v40 = vpop.f32.mrf.mxu0 }
 0x576   : > { %v5298_v4 = vmul.f32 4.3429446, %v5185_v29  ;;  %7008 = vlog2.f32 %v5014_v51  ;;  %v4881_v12 = vadd.f32 %v6258_v54, %v4463_v40  ;;  %v6266_v54 = vpop.f32.mrf.mxu1 }
 0x577   : > { %v7003_v59 = vpop.eup %7002  ;;  %v4465_v32 = vpop.f32.mrf.mxu0 }
 0x578   : > { %5394 = vst [vmem:[%s9168_s23 + $0x270] sm:$0xff] %v5298_v4  ;;  %v5187_v0 = vmul.f32 0.6931472, %v7003_v59  ;;  %v5015_v5 = vmax.f32 %v4881_v12, 1e-10  ;;  %v4904_v63 = vpop.f32.mrf.mxu1 }
 0x579   : > { %v4468_v45 = vpop.f32.mrf.mxu0 }
 0x57a   : > { %v5299_v58 = vmul.f32 4.3429446, %v5187_v0  ;;  %7010 = vlog2.f32 %v5015_v5  ;;  %v4886_v60 = vadd.f32 %v4885_v43, %v4468_v45 }
 0x57b   : > { %v7005_v50 = vpop.eup %7004  ;;  %v4470_v55 = vpop.f32.mrf.mxu0 }
 0x57c   : > { %5395 = vst [vmem:[%s9168_s23 + $0x278] sm:$0xff] %v5299_v58  ;;  %v5189_v37 = vmul.f32 0.6931472, %v7005_v50  ;;  %v5016_v2 = vmax.f32 %v4886_v60, 1e-10 }
 0x57d   : > { %v4471_v33 = vpop.f32.mrf.mxu0 }
 0x57e   : > { %v5300_v52 = vmul.f32 4.3429446, %v5189_v37  ;;  %7012 = vlog2.f32 %v5016_v2  ;;  %v4889_v62 = vadd.f32 %v4888_v47, %v4471_v33 }
 0x57f   : > { %v7007_v19 = vpop.eup %7006  ;;  %v4473_v36 = vpop.f32.mrf.mxu0 }
 0x580   : > { %5396 = vst [vmem:[%s9168_s23 + $0x280] sm:$0xff] %v5300_v52  ;;  %v5191_v46 = vmul.f32 0.6931472, %v7007_v19  ;;  %v5017_v20 = vmax.f32 %v4889_v62, 1e-10 }
 0x581   : > { %v4476_v44 = vpop.f32.mrf.mxu0 }
 0x582   : > { %v5301_v28 = vmul.f32 4.3429446, %v5191_v46  ;;  %7014 = vlog2.f32 %v5017_v20  ;;  %v4894_v27 = vadd.f32 %v6261_v23, %v4476_v44  ;;  %v6269_v23 = vpop.f32.mrf.mxu1 }
 0x583   : > { %v7009_v61 = vpop.eup %7008  ;;  %v4478_v24 = vpop.f32.mrf.mxu0 }
 0x584   : > { %5397 = vst [vmem:[%s9168_s23 + $0x288] sm:$0xff] %v5301_v28  ;;  %v5193_v21 = vmul.f32 0.6931472, %v7009_v61  ;;  %v5018_v18 = vmax.f32 %v4894_v27, 1e-10  ;;  %v4917_v43 = vpop.f32.mrf.mxu1 }
 0x585   : > { %v4479_v48 = vpop.f32.mrf.mxu0 }
 0x586   : > { %v5302_v15 = vmul.f32 4.3429446, %v5193_v21  ;;  %7016 = vlog2.f32 %v5018_v18  ;;  %v4897_v31 = vadd.f32 %v6262_v49, %v4479_v48  ;;  %v6270_v49 = vpop.f32.mrf.mxu1 }
 0x587   : > { %v7011_v6 = vpop.eup %7010  ;;  %v4481_v34 = vpop.f32.mrf.mxu0 }
 0x588   : > { %5398 = vst [vmem:[%s9168_s23 + $0x290] sm:$0xff] %v5302_v15  ;;  %v5195_v53 = vmul.f32 0.6931472, %v7011_v6  ;;  %v5019_v10 = vmax.f32 %v4897_v31, 1e-10  ;;  %v4920_v47 = vpop.f32.mrf.mxu1 }
 0x589   : > { %v4484_v22 = vpop.f32.mrf.mxu0 }
 0x58a   : > { %v5303_v38 = vmul.f32 4.3429446, %v5195_v53  ;;  %7018 = vlog2.f32 %v5019_v10  ;;  %v4902_v3 = vadd.f32 %v4901_v9, %v4484_v22 }
 0x58b   : > { %v7013_v14 = vpop.eup %7012  ;;  %v4486_v39 = vpop.f32.mrf.mxu0 }
 0x58c   : > { %5399 = vst [vmem:[%s9168_s23 + $0x298] sm:$0xff] %v5303_v38  ;;  %v5197_v35 = vmul.f32 0.6931472, %v7013_v14  ;;  %v5020_v17 = vmax.f32 %v4902_v3, 1e-10 }
 0x58d   : > { %v4487_v26 = vpop.f32.mrf.mxu0 }
 0x58e   : > { %v5304_v56 = vmul.f32 4.3429446, %v5197_v35  ;;  %7020 = vlog2.f32 %v5020_v17  ;;  %v4905_v41 = vadd.f32 %v4904_v63, %v4487_v26 }
 0x58f   : > { %v7015_v25 = vpop.eup %7014  ;;  %v4489_v8 = vpop.f32.mrf.mxu0 }
 0x590   : > { %5400 = vst [vmem:[%s9168_s23 + $0x2a0] sm:$0xff] %v5304_v56  ;;  %v5199_v1 = vmul.f32 0.6931472, %v7015_v25  ;;  %v5021_v57 = vmax.f32 %v4905_v41, 1e-10 }
 0x591   : > { %v4492_v42 = vpop.f32.mrf.mxu0 }
 0x592   : > { %v5305_v11 = vmul.f32 4.3429446, %v5199_v1  ;;  %7022 = vlog2.f32 %v5021_v57  ;;  %v4910_v30 = vadd.f32 %v6265_v13, %v4492_v42 }
 0x593   : > { %v7017_v16 = vpop.eup %7016  ;;  %v4494_v7 = vpop.f32.mrf.mxu0 }
 0x594   : > { %5401 = vst [vmem:[%s9168_s23 + $0x2a8] sm:$0xff] %v5305_v11  ;;  %v5201_v29 = vmul.f32 0.6931472, %v7017_v16  ;;  %v5022_v51 = vmax.f32 %v4910_v30, 1e-10 }
 0x595   : > { %v4495_v40 = vpop.f32.mrf.mxu0 }
 0x596   : > { %v5306_v4 = vmul.f32 4.3429446, %v5201_v29  ;;  %7024 = vlog2.f32 %v5022_v51  ;;  %v4913_v12 = vadd.f32 %v6266_v54, %v4495_v40 }
 0x597   : > { %v7019_v59 = vpop.eup %7018  ;;  %v4497_v32 = vpop.f32.mrf.mxu0 }
 0x598   : > { %5402 = vst [vmem:[%s9168_s23 + $0x2b0] sm:$0xff] %v5306_v4  ;;  %v5203_v0 = vmul.f32 0.6931472, %v7019_v59  ;;  %v5023_v5 = vmax.f32 %v4913_v12, 1e-10 }
 0x599   : > { %v4500_v45 = vpop.f32.mrf.mxu0 }
 0x59a   : > { %v5307_v58 = vmul.f32 4.3429446, %v5203_v0  ;;  %7026 = vlog2.f32 %v5023_v5  ;;  %v4918_v60 = vadd.f32 %v4917_v43, %v4500_v45 }
 0x59b   : > { %v7021_v50 = vpop.eup %7020  ;;  %v4502_v55 = vpop.f32.mrf.mxu0 }
 0x59c   : > { %5403 = vst [vmem:[%s9168_s23 + $0x2b8] sm:$0xff] %v5307_v58  ;;  %v5205_v37 = vmul.f32 0.6931472, %v7021_v50  ;;  %v5024_v2 = vmax.f32 %v4918_v60, 1e-10 }
 0x59d   : > { %v4503_v33 = vpop.f32.mrf.mxu0 }
 0x59e   : > { %v5308_v52 = vmul.f32 4.3429446, %v5205_v37  ;;  %7028 = vlog2.f32 %v5024_v2  ;;  %v4921_v62 = vadd.f32 %v4920_v47, %v4503_v33 }
 0x59f   : > { %v7023_v19 = vpop.eup %7022  ;;  %v4505_v36 = vpop.f32.mrf.mxu0 }
 0x5a0   : > { %5404 = vst [vmem:[%s9168_s23 + $0x2c0] sm:$0xff] %v5308_v52  ;;  %v5207_v13 = vmul.f32 0.6931472, %v7023_v19  ;;  %v5025_v46 = vmax.f32 %v4921_v62, 1e-10 }
 0x5a1   : > { %v4508_v20 = vpop.f32.mrf.mxu0 }
 0x5a2   : > { %v5309_v44 = vmul.f32 4.3429446, %v5207_v13  ;;  %7030 = vlog2.f32 %v5025_v46  ;;  %v4926_v28 = vadd.f32 %v6269_v23, %v4508_v20 }
 0x5a3   : > { %v7025_v27 = vpop.eup %7024  ;;  %v4510_v61 = vpop.f32.mrf.mxu0 }
 0x5a4   : > { %5405 = vst [vmem:[%s9168_s23 + $0x2c8] sm:$0xff] %v5309_v44  ;;  %v5209_v24 = vmul.f32 0.6931472, %v7025_v27  ;;  %v5026_v9 = vmax.f32 %v4926_v28, 1e-10 }
 0x5a5   : > { %v4511_v21 = vpop.f32.mrf.mxu0 }
 0x5a6   : > { %v5310_v18 = vmul.f32 4.3429446, %v5209_v24  ;;  %7032 = vlog2.f32 %v5026_v9  ;;  %v4929_v48 = vadd.f32 %v6270_v49, %v4511_v21 }
 0x5a7   : > { %v7027_v15 = vpop.eup %7026  ;;  %v4513_v31 = vpop.f32.mrf.mxu0 }
 0x5a8   : > { %5406 = vst [vmem:[%s9168_s23 + $0x2d0] sm:$0xff] %v5310_v18  ;;  %v5211_v6 = vmul.f32 0.6931472, %v7027_v15  ;;  %v5027_v34 = vmax.f32 %v4929_v48, 1e-10 }
 0x5aa   : > { %v5311_v54 = vmul.f32 4.3429446, %v5211_v6  ;;  %7034 = vlog2.f32 %v5027_v34 }
 0x5ab   : > { %v7029_v53 = vpop.eup %7028 }
 0x5ac   : > { %5407 = vst [vmem:[%s9168_s23 + $0x2d8] sm:$0xff] %v5311_v54  ;;  %v5213_v10 = vmul.f32 0.6931472, %v7029_v53 }
 0x5ae   : > { %v5312_v22 = vmul.f32 4.3429446, %v5213_v10 }
 0x5af   : > { %v7031_v38 = vpop.eup %7030 }
 0x5b0   : > { %5408 = vst [vmem:[%s9168_s23 + $0x2e0] sm:$0xff] %v5312_v22  ;;  %v5215_v3 = vmul.f32 0.6931472, %v7031_v38 }
 0x5b2   : > { %v5313_v14 = vmul.f32 4.3429446, %v5215_v3 }
 0x5b3   : > { %v7033_v39 = vpop.eup %7032 }
 0x5b4   : > { %5409 = vst [vmem:[%s9168_s23 + $0x2e8] sm:$0xff] %v5313_v14  ;;  %v5217_v63 = vmul.f32 0.6931472, %v7033_v39 }
 0x5b6   : > { %v5314_v35 = vmul.f32 4.3429446, %v5217_v63 }
 0x5b7   : > { %v7035_v17 = vpop.eup %7034 }
 0x5b8   : > { %5410 = vst [vmem:[%s9168_s23 + $0x2f0] sm:$0xff] %v5314_v35  ;;  %v5219_v26 = vmul.f32 0.6931472, %v7035_v17 }
 0x5ba   : > { %v5315_v56 = vmul.f32 4.3429446, %v5219_v26 }
 0x5bc   : > { %5411 = vst [vmem:[%s9168_s23 + $0x2f8] sm:$0xff] %v5315_v56 }
 0x5bd   : > { %7065 = shalt.err (!%p7062_p7)
}
 0x5be   : > { %s7066_s23 = scalar_lea.hbm %s9404_s19, 12288  ;;  %s7070_s14 = scalar_lea.hbm %s9464_s4, 49152 }
 0x5bf   : > { %p7067_p10 = scmp.ne.s32.totalorder %s9404_s19, %s7066_s23  ;;  %p7071_p13 = scmp.lt.s32.totalorder %s9404_s19, %s9464_s4 }
 0x5c0   : > { %p7072_p0 = scmp.lt.s32.totalorder %s7070_s14, %s7066_s23 }
 0x5c1   : > { %p7068_p11 = pnand %p7067_p10, %p7238_p8 }
 0x5c2   : > { %p7073_p1 = por %p7072_p0, %p7071_p13 }
 0x5c3   : > { %p7069_p12 = pneg %p7068_p11 }
 0x5c5   : > { %p7074_p2 = pnand %p7073_p1, %p7069_p12 }
 0x5c7   : > { %7077 = shalt.err (!%p7074_p2)
}
 0x5c8   : > { %s7150_s5 = smov 128   ;;  %s7151_s6 = smov 256  }
 0x5c9   : > { %s7152_s7 = smov 8  }
 0x5ca   : > { %6308 = dma.vmem_to_hbm [thread:$0]  (%p7238_p8), %s9406_s9, 12288, %s9404_s19, %s5413_s18, %s7150_s5, %s7151_s6, %s7152_s7  }
 0x5cb PF: > { %p6314_p3 = scmp.ge.s32.totalorder %s7144_s22, 2  ;;  %s5442_s10 = sand.u32 1, %s7116_s15  }
 0x5cc   : > { %s5443_s11 = scalar_lea.sflag [#allocation4], %s5442_s10 }
 0x5cd   : > { %p6311_p4 = pnand %p6314_p3, %p7242_p9 }
 0x5cf   : > { %p6312_p5 = pneg %p6311_p4 }
 0x5d1   : > { %7111 = dma.done.wait (%p6312_p5), %s5443_s11, 12288  }
 0x5d2   : > { %7113 = vsyncadd (%p6312_p5), %s5443_s11, 4294955008  ;;  %s17_s22 = sadd.s32 1, %s7144_s22   ;;  %s9513_s15 = smov %s7120_s16 }
 0x5d3   : > { %p14_p6 = scmp.ge.s32.totalorder %s17_s22, 6   ;;  %s9514_s16 = smov %s7124_s17 }
 0x5d4   : > { %s9515_s17 = smov %s7250_s8  ;;  %s9516_s18 = smov %s7136_s20 }
 0x5d5   : > { %s9517_s19 = smov %s7140_s21  ;;  %s9518_s20 = smov %s9521_s25 }
 0x5d6   : > { %s9519_s21 = smov %s9525_s26  ;;  %16 = sbr.rel (!%p14_p6) target bundleno = 5 (0x5), region = 117 }
 0x5db   :  { %5448 = vsyncpa [#allocation4], 1 }
 0x5dc   :  { %5450 = vsyncpa [#allocation4 + $0x1], 1 }

</bundles_post_ra>
